<compile_context>
chip_gen: v5e
topology: v5e:2x2
jax: 0.10.0
libtpu: 0.0.40
codegen_flags: <defaults>
</compile_context>

<pallas_src>
import jax
import jax.numpy as jnp
import numpy as np
from jax.experimental import pallas as pl
from jax.experimental.pallas import tpu as pltpu

BT_CONV = 8      # images per conv grid step (review: 8-16)
BT_MLP_MAX = 256 # batch tile for the fc stage (fits v5e 16 MiB scoped VMEM)


def conv_relu_pool_kernel(p_ref, w_ref, b_ref, o_ref):
    # p_ref: (BT, 25, 676) im2col patches; taps on sublanes, positions on lanes,
    #        columns grouped by pool phase [(0,0) 0:169, (0,1) 169:338,
    #        (1,0) 338:507, (1,1) 507:676].
    # w_ref: (20, 25)  conv weights, col index = ky*5+kx
    # b_ref: (20, 1)   conv bias
    # o_ref: (BT, 20, 169) pooled output, channel-major (== NCHW flatten order)
    w = w_ref[...]
    bias = b_ref[...]
    for b in range(p_ref.shape[0]):                                # static unroll
        conv = jnp.dot(w, p_ref[b], preferred_element_type=jnp.float32)  # (20,676)
        conv = jnp.maximum(conv + bias, 0.0)                       # bias + ReLU
        # 2x2 max pool, stride 2: max over the four pool-phase lane slices.
        pooled = jnp.maximum(
            jnp.maximum(conv[:, 0:169], conv[:, 169:338]),
            jnp.maximum(conv[:, 338:507], conv[:, 507:676]))       # (20, 169)
        o_ref[b] = pooled


def mlp_kernel(x_ref, w1_ref, b1_ref, w2_ref, b2_ref, o_ref):
    # x_ref: (BT2, 3380); w1: (3380, 100); w2: (100, 10); out: (BT2, 10)
    h = jnp.dot(x_ref[...], w1_ref[...], preferred_element_type=jnp.float32)
    h = jnp.maximum(h + b1_ref[...], 0.0)                          # fc1 + ReLU
    o_ref[...] = jnp.dot(h, w2_ref[...],
                         preferred_element_type=jnp.float32) + b2_ref[...]


def init_params(key):
    # Deterministic synthetic params matching CNN_1.__init__ shapes.
    k = jax.random.split(key, 6)
    return {
        "conv_w": 0.01 * jax.random.normal(k[0], (20, 1, 5, 5), jnp.float32),
        "conv_b": 0.01 * jax.random.normal(k[1], (20,), jnp.float32),
        "fc1_w": 0.01 * jax.random.normal(k[2], (100, 3380), jnp.float32),
        "fc1_b": 0.01 * jax.random.normal(k[3], (100,), jnp.float32),
        "fc2_w": 0.01 * jax.random.normal(k[4], (10, 100), jnp.float32),
        "fc2_b": 0.01 * jax.random.normal(k[5], (10,), jnp.float32),
    }


def _im2col_phase_patches(x):
    # x: (B, 1, 28, 28) -> (B, 25, 676): taps (ky*5+kx) on the sublane axis,
    # positions on lanes with col = pi*338 + pj*169 + i*13 + j (pool-phase major).
    B = x.shape[0]
    xp = jnp.pad(x[:, 0], ((0, 0), (1, 1), (1, 1)))                # (B, 30, 30)
    taps = [xp[:, ky:ky + 26, kx:kx + 26]
            for ky in range(5) for kx in range(5)]                 # 25 x (B,26,26)
    t = jnp.stack(taps, axis=1)                                    # (B, 25, 26, 26)
    t = t.reshape(B, 25, 13, 2, 13, 2)                             # (B,25,i,pi,j,pj)
    t = t.transpose(0, 1, 3, 5, 2, 4)                              # (B,25,pi,pj,i,j)
    return t.reshape(B, 25, 676)


@jax.jit
def cnn1_forward(x, params):
    B = x.shape[0]
    Bp = -(-B // BT_CONV) * BT_CONV
    if Bp != B:
        x = jnp.pad(x, ((0, Bp - B), (0, 0), (0, 0), (0, 0)))

    patches = _im2col_phase_patches(x)                             # (Bp, 25, 676)
    wc = params["conv_w"].reshape(20, 25)                          # (20, 25)
    bc = params["conv_b"].reshape(20, 1)

    pooled = pl.pallas_call(
        conv_relu_pool_kernel,
        out_shape=jax.ShapeDtypeStruct((Bp, 20, 169), jnp.float32),
        grid=(Bp // BT_CONV,),
        in_specs=[
            pl.BlockSpec((BT_CONV, 25, 676), lambda i: (i, 0, 0)),
            pl.BlockSpec((20, 25), lambda i: (0, 0)),
            pl.BlockSpec((20, 1), lambda i: (0, 0)),
        ],
        out_specs=pl.BlockSpec((BT_CONV, 20, 169), lambda i: (i, 0, 0)),
        compiler_params=pltpu.CompilerParams(dimension_semantics=("parallel",)),
    )(patches, wc, bc)                                             # (Bp, 20, 169)

    # (Bp, 20, 169) is already NCHW flatten order -> free reshape, no transpose.
    feat = pooled.reshape(Bp, 3380)

    bt2 = min(BT_MLP_MAX, Bp)
    Bp2 = -(-Bp // bt2) * bt2
    if Bp2 != Bp:
        feat = jnp.pad(feat, ((0, Bp2 - Bp), (0, 0)))

    w1 = params["fc1_w"].T                                         # (3380, 100)
    b1 = params["fc1_b"].reshape(1, 100)
    w2 = params["fc2_w"].T                                         # (100, 10)
    b2 = params["fc2_b"].reshape(1, 10)

    out = pl.pallas_call(
        mlp_kernel,
        out_shape=jax.ShapeDtypeStruct((Bp2, 10), jnp.float32),
        grid=(Bp2 // bt2,),
        in_specs=[
            pl.BlockSpec((bt2, 3380), lambda i: (i, 0)),
            pl.BlockSpec((3380, 100), lambda i: (0, 0)),   # resident weights
            pl.BlockSpec((1, 100), lambda i: (0, 0)),
            pl.BlockSpec((100, 10), lambda i: (0, 0)),
            pl.BlockSpec((1, 10), lambda i: (0, 0)),
        ],
        out_specs=pl.BlockSpec((bt2, 10), lambda i: (i, 0)),
        compiler_params=pltpu.CompilerParams(dimension_semantics=("parallel",)),
    )(feat, w1, b1, w2, b2)
    return out[:B]


def reference_forward(x, params):
    # Pure-JAX reference of the PyTorch forward (HIGHEST precision).
    conv = jax.lax.conv_general_dilated(
        x, params["conv_w"], window_strides=(1, 1), padding=((1, 1), (1, 1)),
        dimension_numbers=("NCHW", "OIHW", "NCHW"),
        precision=jax.lax.Precision.HIGHEST)
    conv = jnp.maximum(conv + params["conv_b"][None, :, None, None], 0.0)
    pooled = jax.lax.reduce_window(conv, -jnp.inf, jax.lax.max,
                                   (1, 1, 2, 2), (1, 1, 2, 2), "VALID")
    feat = pooled.reshape(x.shape[0], -1)
    h = jnp.maximum(
        jnp.dot(feat, params["fc1_w"].T, precision=jax.lax.Precision.HIGHEST)
        + params["fc1_b"], 0.0)
    return (jnp.dot(h, params["fc2_w"].T, precision=jax.lax.Precision.HIGHEST)
            + params["fc2_b"])


if __name__ == "__main__":
    key = jax.random.PRNGKey(0)
    pkey, xkey = jax.random.split(key)
    params = init_params(pkey)
    # fc1 expects 3380 = 20*13*13 features -> spatial must be 28x28 (MNIST-like)
    x = jax.random.normal(xkey, (2, 1, 28, 28), jnp.float32)

    out = jax.block_until_ready(cnn1_forward(x, params))
    assert out.shape == (2, 10) and out.dtype == jnp.float32

    ref = reference_forward(x, params)
    np.testing.assert_allclose(np.asarray(out), np.asarray(ref),
                               rtol=5e-4, atol=1e-5)
    print("KERNEL_OK")
</pallas_src>

<mosaic_0001>
module attributes {stable_mosaic.version = 11 : i64} {
  func.func @conv_relu_pool_kernel(%arg0: i32, %arg1: memref<8x25x676xf32, #tpu.memory_space<vmem>>, %arg2: memref<20x25xf32, #tpu.memory_space<vmem>>, %arg3: memref<20x1xf32, #tpu.memory_space<vmem>>, %arg4: memref<8x20x169xf32, #tpu.memory_space<vmem>>) attributes {dimension_semantics = [#tpu.dimension_semantics<parallel>], iteration_bounds = array<i64: 1>, scalar_prefetch = 0 : i64, scratch_operands = 0 : i64, tpu.core_type = #tpu.core_type<tc>, window_params = [{transform_indices = @transform_0, window_bounds = array<i64: 8, 25, 676>}, {pipeline_mode = #tpu.pipeline_mode<synchronous>, transform_indices = @transform_1, window_bounds = array<i64: 20, 25>}, {pipeline_mode = #tpu.pipeline_mode<synchronous>, transform_indices = @transform_2, window_bounds = array<i64: 20, 1>}, {transform_indices = @transform_3, window_bounds = array<i64: 8, 20, 169>}]} {
    %c0 = arith.constant 0 : index
    %c0_0 = arith.constant 0 : index
    %0 = vector.load %arg2[%c0, %c0_0] : memref<20x25xf32, #tpu.memory_space<vmem>>, vector<20x25xf32>
    %c0_1 = arith.constant 0 : index
    %c0_2 = arith.constant 0 : index
    %1 = vector.load %arg3[%c0_1, %c0_2] : memref<20x1xf32, #tpu.memory_space<vmem>>, vector<20x1xf32>
    %c0_3 = arith.constant 0 : index
    %c0_4 = arith.constant 0 : index
    %c0_5 = arith.constant 0 : index
    %2 = vector.load %arg1[%c0_3, %c0_4, %c0_5] : memref<8x25x676xf32, #tpu.memory_space<vmem>>, vector<1x25x676xf32>
    %3 = vector.shape_cast %2 : vector<1x25x676xf32> to vector<25x676xf32>
    %cst = arith.constant dense<0.000000e+00> : vector<20x676xf32>
    %4 = tpu.matmul %0, %3, %cst {dimension_numbers = #tpu.dot_dimension_numbers<[1], [0], [0], [1], [0, 0, 1, 1], [], []>} : vector<20x25xf32>, vector<25x676xf32>, vector<20x676xf32> -> vector<20x676xf32>
    %5 = vector.broadcast %1 : vector<20x1xf32> to vector<20x676xf32>
    %6 = arith.addf %4, %5 : vector<20x676xf32>
    %cst_6 = arith.constant 0.000000e+00 : f32
    %7 = vector.broadcast %cst_6 : f32 to vector<20x676xf32>
    %8 = arith.maximumf %6, %7 : vector<20x676xf32>
    %9 = vector.extract_strided_slice %8 {offsets = [0, 0], sizes = [20, 169], strides = [1, 1]} : vector<20x676xf32> to vector<20x169xf32>
    %10 = vector.extract_strided_slice %8 {offsets = [0, 169], sizes = [20, 169], strides = [1, 1]} : vector<20x676xf32> to vector<20x169xf32>
    %11 = arith.maximumf %9, %10 : vector<20x169xf32>
    %12 = vector.extract_strided_slice %8 {offsets = [0, 338], sizes = [20, 169], strides = [1, 1]} : vector<20x676xf32> to vector<20x169xf32>
    %13 = vector.extract_strided_slice %8 {offsets = [0, 507], sizes = [20, 169], strides = [1, 1]} : vector<20x676xf32> to vector<20x169xf32>
    %14 = arith.maximumf %12, %13 : vector<20x169xf32>
    %15 = arith.maximumf %11, %14 : vector<20x169xf32>
    %c0_7 = arith.constant 0 : index
    %c0_8 = arith.constant 0 : index
    %c0_9 = arith.constant 0 : index
    %16 = vector.load %arg4[%c0_7, %c0_8, %c0_9] : memref<8x20x169xf32, #tpu.memory_space<vmem>>, vector<1x20x169xf32>
    %17 = vector.shape_cast %16 : vector<1x20x169xf32> to vector<20x169xf32>
    %18 = vector.shape_cast %15 : vector<20x169xf32> to vector<1x20x169xf32>
    tpu.vector_store %arg4[%c0_7, %c0_8, %c0_9], %18 {strides = array<i32>} : memref<8x20x169xf32, #tpu.memory_space<vmem>>, vector<1x20x169xf32>,
    %c1 = arith.constant 1 : index
    %c0_10 = arith.constant 0 : index
    %c0_11 = arith.constant 0 : index
    %19 = vector.load %arg1[%c1, %c0_10, %c0_11] : memref<8x25x676xf32, #tpu.memory_space<vmem>>, vector<1x25x676xf32>
    %20 = vector.shape_cast %19 : vector<1x25x676xf32> to vector<25x676xf32>
    %cst_12 = arith.constant dense<0.000000e+00> : vector<20x676xf32>
    %21 = tpu.matmul %0, %20, %cst_12 {dimension_numbers = #tpu.dot_dimension_numbers<[1], [0], [0], [1], [0, 0, 1, 1], [], []>} : vector<20x25xf32>, vector<25x676xf32>, vector<20x676xf32> -> vector<20x676xf32>
    %22 = vector.broadcast %1 : vector<20x1xf32> to vector<20x676xf32>
    %23 = arith.addf %21, %22 : vector<20x676xf32>
    %cst_13 = arith.constant 0.000000e+00 : f32
    %24 = vector.broadcast %cst_13 : f32 to vector<20x676xf32>
    %25 = arith.maximumf %23, %24 : vector<20x676xf32>
    %26 = vector.extract_strided_slice %25 {offsets = [0, 0], sizes = [20, 169], strides = [1, 1]} : vector<20x676xf32> to vector<20x169xf32>
    %27 = vector.extract_strided_slice %25 {offsets = [0, 169], sizes = [20, 169], strides = [1, 1]} : vector<20x676xf32> to vector<20x169xf32>
    %28 = arith.maximumf %26, %27 : vector<20x169xf32>
    %29 = vector.extract_strided_slice %25 {offsets = [0, 338], sizes = [20, 169], strides = [1, 1]} : vector<20x676xf32> to vector<20x169xf32>
    %30 = vector.extract_strided_slice %25 {offsets = [0, 507], sizes = [20, 169], strides = [1, 1]} : vector<20x676xf32> to vector<20x169xf32>
    %31 = arith.maximumf %29, %30 : vector<20x169xf32>
    %32 = arith.maximumf %28, %31 : vector<20x169xf32>
    %c1_14 = arith.constant 1 : index
    %c0_15 = arith.constant 0 : index
    %c0_16 = arith.constant 0 : index
    %33 = vector.load %arg4[%c1_14, %c0_15, %c0_16] : memref<8x20x169xf32, #tpu.memory_space<vmem>>, vector<1x20x169xf32>
    %34 = vector.shape_cast %33 : vector<1x20x169xf32> to vector<20x169xf32>
    %35 = vector.shape_cast %32 : vector<20x169xf32> to vector<1x20x169xf32>
    tpu.vector_store %arg4[%c1_14, %c0_15, %c0_16], %35 {strides = array<i32>} : memref<8x20x169xf32, #tpu.memory_space<vmem>>, vector<1x20x169xf32>,
    %c2 = arith.constant 2 : index
    %c0_17 = arith.constant 0 : index
    %c0_18 = arith.constant 0 : index
    %36 = vector.load %arg1[%c2, %c0_17, %c0_18] : memref<8x25x676xf32, #tpu.memory_space<vmem>>, vector<1x25x676xf32>
    %37 = vector.shape_cast %36 : vector<1x25x676xf32> to vector<25x676xf32>
    %cst_19 = arith.constant dense<0.000000e+00> : vector<20x676xf32>
    %38 = tpu.matmul %0, %37, %cst_19 {dimension_numbers = #tpu.dot_dimension_numbers<[1], [0], [0], [1], [0, 0, 1, 1], [], []>} : vector<20x25xf32>, vector<25x676xf32>, vector<20x676xf32> -> vector<20x676xf32>
    %39 = vector.broadcast %1 : vector<20x1xf32> to vector<20x676xf32>
    %40 = arith.addf %38, %39 : vector<20x676xf32>
    %cst_20 = arith.constant 0.000000e+00 : f32
    %41 = vector.broadcast %cst_20 : f32 to vector<20x676xf32>
    %42 = arith.maximumf %40, %41 : vector<20x676xf32>
    %43 = vector.extract_strided_slice %42 {offsets = [0, 0], sizes = [20, 169], strides = [1, 1]} : vector<20x676xf32> to vector<20x169xf32>
    %44 = vector.extract_strided_slice %42 {offsets = [0, 169], sizes = [20, 169], strides = [1, 1]} : vector<20x676xf32> to vector<20x169xf32>
    %45 = arith.maximumf %43, %44 : vector<20x169xf32>
    %46 = vector.extract_strided_slice %42 {offsets = [0, 338], sizes = [20, 169], strides = [1, 1]} : vector<20x676xf32> to vector<20x169xf32>
    %47 = vector.extract_strided_slice %42 {offsets = [0, 507], sizes = [20, 169], strides = [1, 1]} : vector<20x676xf32> to vector<20x169xf32>
    %48 = arith.maximumf %46, %47 : vector<20x169xf32>
    %49 = arith.maximumf %45, %48 : vector<20x169xf32>
    %c2_21 = arith.constant 2 : index
    %c0_22 = arith.constant 0 : index
    %c0_23 = arith.constant 0 : index
    %50 = vector.load %arg4[%c2_21, %c0_22, %c0_23] : memref<8x20x169xf32, #tpu.memory_space<vmem>>, vector<1x20x169xf32>
    %51 = vector.shape_cast %50 : vector<1x20x169xf32> to vector<20x169xf32>
    %52 = vector.shape_cast %49 : vector<20x169xf32> to vector<1x20x169xf32>
    tpu.vector_store %arg4[%c2_21, %c0_22, %c0_23], %52 {strides = array<i32>} : memref<8x20x169xf32, #tpu.memory_space<vmem>>, vector<1x20x169xf32>,
    %c3 = arith.constant 3 : index
    %c0_24 = arith.constant 0 : index
    %c0_25 = arith.constant 0 : index
    %53 = vector.load %arg1[%c3, %c0_24, %c0_25] : memref<8x25x676xf32, #tpu.memory_space<vmem>>, vector<1x25x676xf32>
    %54 = vector.shape_cast %53 : vector<1x25x676xf32> to vector<25x676xf32>
    %cst_26 = arith.constant dense<0.000000e+00> : vector<20x676xf32>
    %55 = tpu.matmul %0, %54, %cst_26 {dimension_numbers = #tpu.dot_dimension_numbers<[1], [0], [0], [1], [0, 0, 1, 1], [], []>} : vector<20x25xf32>, vector<25x676xf32>, vector<20x676xf32> -> vector<20x676xf32>
    %56 = vector.broadcast %1 : vector<20x1xf32> to vector<20x676xf32>
    %57 = arith.addf %55, %56 : vector<20x676xf32>
    %cst_27 = arith.constant 0.000000e+00 : f32
    %58 = vector.broadcast %cst_27 : f32 to vector<20x676xf32>
    %59 = arith.maximumf %57, %58 : vector<20x676xf32>
    %60 = vector.extract_strided_slice %59 {offsets = [0, 0], sizes = [20, 169], strides = [1, 1]} : vector<20x676xf32> to vector<20x169xf32>
    %61 = vector.extract_strided_slice %59 {offsets = [0, 169], sizes = [20, 169], strides = [1, 1]} : vector<20x676xf32> to vector<20x169xf32>
    %62 = arith.maximumf %60, %61 : vector<20x169xf32>
    %63 = vector.extract_strided_slice %59 {offsets = [0, 338], sizes = [20, 169], strides = [1, 1]} : vector<20x676xf32> to vector<20x169xf32>
    %64 = vector.extract_strided_slice %59 {offsets = [0, 507], sizes = [20, 169], strides = [1, 1]} : vector<20x676xf32> to vector<20x169xf32>
    %65 = arith.maximumf %63, %64 : vector<20x169xf32>
    %66 = arith.maximumf %62, %65 : vector<20x169xf32>
    %c3_28 = arith.constant 3 : index
    %c0_29 = arith.constant 0 : index
    %c0_30 = arith.constant 0 : index
    %67 = vector.load %arg4[%c3_28, %c0_29, %c0_30] : memref<8x20x169xf32, #tpu.memory_space<vmem>>, vector<1x20x169xf32>
    %68 = vector.shape_cast %67 : vector<1x20x169xf32> to vector<20x169xf32>
    %69 = vector.shape_cast %66 : vector<20x169xf32> to vector<1x20x169xf32>
    tpu.vector_store %arg4[%c3_28, %c0_29, %c0_30], %69 {strides = array<i32>} : memref<8x20x169xf32, #tpu.memory_space<vmem>>, vector<1x20x169xf32>,
    %c4 = arith.constant 4 : index
    %c0_31 = arith.constant 0 : index
    %c0_32 = arith.constant 0 : index
    %70 = vector.load %arg1[%c4, %c0_31, %c0_32] : memref<8x25x676xf32, #tpu.memory_space<vmem>>, vector<1x25x676xf32>
    %71 = vector.shape_cast %70 : vector<1x25x676xf32> to vector<25x676xf32>
    %cst_33 = arith.constant dense<0.000000e+00> : vector<20x676xf32>
    %72 = tpu.matmul %0, %71, %cst_33 {dimension_numbers = #tpu.dot_dimension_numbers<[1], [0], [0], [1], [0, 0, 1, 1], [], []>} : vector<20x25xf32>, vector<25x676xf32>, vector<20x676xf32> -> vector<20x676xf32>
    %73 = vector.broadcast %1 : vector<20x1xf32> to vector<20x676xf32>
    %74 = arith.addf %72, %73 : vector<20x676xf32>
    %cst_34 = arith.constant 0.000000e+00 : f32
    %75 = vector.broadcast %cst_34 : f32 to vector<20x676xf32>
    %76 = arith.maximumf %74, %75 : vector<20x676xf32>
    %77 = vector.extract_strided_slice %76 {offsets = [0, 0], sizes = [20, 169], strides = [1, 1]} : vector<20x676xf32> to vector<20x169xf32>
    %78 = vector.extract_strided_slice %76 {offsets = [0, 169], sizes = [20, 169], strides = [1, 1]} : vector<20x676xf32> to vector<20x169xf32>
    %79 = arith.maximumf %77, %78 : vector<20x169xf32>
    %80 = vector.extract_strided_slice %76 {offsets = [0, 338], sizes = [20, 169], strides = [1, 1]} : vector<20x676xf32> to vector<20x169xf32>
    %81 = vector.extract_strided_slice %76 {offsets = [0, 507], sizes = [20, 169], strides = [1, 1]} : vector<20x676xf32> to vector<20x169xf32>
    %82 = arith.maximumf %80, %81 : vector<20x169xf32>
    %83 = arith.maximumf %79, %82 : vector<20x169xf32>
    %c4_35 = arith.constant 4 : index
    %c0_36 = arith.constant 0 : index
    %c0_37 = arith.constant 0 : index
    %84 = vector.load %arg4[%c4_35, %c0_36, %c0_37] : memref<8x20x169xf32, #tpu.memory_space<vmem>>, vector<1x20x169xf32>
    %85 = vector.shape_cast %84 : vector<1x20x169xf32> to vector<20x169xf32>
    %86 = vector.shape_cast %83 : vector<20x169xf32> to vector<1x20x169xf32>
    tpu.vector_store %arg4[%c4_35, %c0_36, %c0_37], %86 {strides = array<i32>} : memref<8x20x169xf32, #tpu.memory_space<vmem>>, vector<1x20x169xf32>,
    %c5 = arith.constant 5 : index
    %c0_38 = arith.constant 0 : index
    %c0_39 = arith.constant 0 : index
    %87 = vector.load %arg1[%c5, %c0_38, %c0_39] : memref<8x25x676xf32, #tpu.memory_space<vmem>>, vector<1x25x676xf32>
    %88 = vector.shape_cast %87 : vector<1x25x676xf32> to vector<25x676xf32>
    %cst_40 = arith.constant dense<0.000000e+00> : vector<20x676xf32>
    %89 = tpu.matmul %0, %88, %cst_40 {dimension_numbers = #tpu.dot_dimension_numbers<[1], [0], [0], [1], [0, 0, 1, 1], [], []>} : vector<20x25xf32>, vector<25x676xf32>, vector<20x676xf32> -> vector<20x676xf32>
    %90 = vector.broadcast %1 : vector<20x1xf32> to vector<20x676xf32>
    %91 = arith.addf %89, %90 : vector<20x676xf32>
    %cst_41 = arith.constant 0.000000e+00 : f32
    %92 = vector.broadcast %cst_41 : f32 to vector<20x676xf32>
    %93 = arith.maximumf %91, %92 : vector<20x676xf32>
    %94 = vector.extract_strided_slice %93 {offsets = [0, 0], sizes = [20, 169], strides = [1, 1]} : vector<20x676xf32> to vector<20x169xf32>
    %95 = vector.extract_strided_slice %93 {offsets = [0, 169], sizes = [20, 169], strides = [1, 1]} : vector<20x676xf32> to vector<20x169xf32>
    %96 = arith.maximumf %94, %95 : vector<20x169xf32>
    %97 = vector.extract_strided_slice %93 {offsets = [0, 338], sizes = [20, 169], strides = [1, 1]} : vector<20x676xf32> to vector<20x169xf32>
    %98 = vector.extract_strided_slice %93 {offsets = [0, 507], sizes = [20, 169], strides = [1, 1]} : vector<20x676xf32> to vector<20x169xf32>
    %99 = arith.maximumf %97, %98 : vector<20x169xf32>
    %100 = arith.maximumf %96, %99 : vector<20x169xf32>
    %c5_42 = arith.constant 5 : index
    %c0_43 = arith.constant 0 : index
    %c0_44 = arith.constant 0 : index
    %101 = vector.load %arg4[%c5_42, %c0_43, %c0_44] : memref<8x20x169xf32, #tpu.memory_space<vmem>>, vector<1x20x169xf32>
    %102 = vector.shape_cast %101 : vector<1x20x169xf32> to vector<20x169xf32>
    %103 = vector.shape_cast %100 : vector<20x169xf32> to vector<1x20x169xf32>
    tpu.vector_store %arg4[%c5_42, %c0_43, %c0_44], %103 {strides = array<i32>} : memref<8x20x169xf32, #tpu.memory_space<vmem>>, vector<1x20x169xf32>,
    %c6 = arith.constant 6 : index
    %c0_45 = arith.constant 0 : index
    %c0_46 = arith.constant 0 : index
    %104 = vector.load %arg1[%c6, %c0_45, %c0_46] : memref<8x25x676xf32, #tpu.memory_space<vmem>>, vector<1x25x676xf32>
    %105 = vector.shape_cast %104 : vector<1x25x676xf32> to vector<25x676xf32>
    %cst_47 = arith.constant dense<0.000000e+00> : vector<20x676xf32>
    %106 = tpu.matmul %0, %105, %cst_47 {dimension_numbers = #tpu.dot_dimension_numbers<[1], [0], [0], [1], [0, 0, 1, 1], [], []>} : vector<20x25xf32>, vector<25x676xf32>, vector<20x676xf32> -> vector<20x676xf32>
    %107 = vector.broadcast %1 : vector<20x1xf32> to vector<20x676xf32>
    %108 = arith.addf %106, %107 : vector<20x676xf32>
    %cst_48 = arith.constant 0.000000e+00 : f32
    %109 = vector.broadcast %cst_48 : f32 to vector<20x676xf32>
    %110 = arith.maximumf %108, %109 : vector<20x676xf32>
    %111 = vector.extract_strided_slice %110 {offsets = [0, 0], sizes = [20, 169], strides = [1, 1]} : vector<20x676xf32> to vector<20x169xf32>
    %112 = vector.extract_strided_slice %110 {offsets = [0, 169], sizes = [20, 169], strides = [1, 1]} : vector<20x676xf32> to vector<20x169xf32>
    %113 = arith.maximumf %111, %112 : vector<20x169xf32>
    %114 = vector.extract_strided_slice %110 {offsets = [0, 338], sizes = [20, 169], strides = [1, 1]} : vector<20x676xf32> to vector<20x169xf32>
    %115 = vector.extract_strided_slice %110 {offsets = [0, 507], sizes = [20, 169], strides = [1, 1]} : vector<20x676xf32> to vector<20x169xf32>
    %116 = arith.maximumf %114, %115 : vector<20x169xf32>
    %117 = arith.maximumf %113, %116 : vector<20x169xf32>
    %c6_49 = arith.constant 6 : index
    %c0_50 = arith.constant 0 : index
    %c0_51 = arith.constant 0 : index
    %118 = vector.load %arg4[%c6_49, %c0_50, %c0_51] : memref<8x20x169xf32, #tpu.memory_space<vmem>>, vector<1x20x169xf32>
    %119 = vector.shape_cast %118 : vector<1x20x169xf32> to vector<20x169xf32>
    %120 = vector.shape_cast %117 : vector<20x169xf32> to vector<1x20x169xf32>
    tpu.vector_store %arg4[%c6_49, %c0_50, %c0_51], %120 {strides = array<i32>} : memref<8x20x169xf32, #tpu.memory_space<vmem>>, vector<1x20x169xf32>,
    %c7 = arith.constant 7 : index
    %c0_52 = arith.constant 0 : index
    %c0_53 = arith.constant 0 : index
    %121 = vector.load %arg1[%c7, %c0_52, %c0_53] : memref<8x25x676xf32, #tpu.memory_space<vmem>>, vector<1x25x676xf32>
    %122 = vector.shape_cast %121 : vector<1x25x676xf32> to vector<25x676xf32>
    %cst_54 = arith.constant dense<0.000000e+00> : vector<20x676xf32>
    %123 = tpu.matmul %0, %122, %cst_54 {dimension_numbers = #tpu.dot_dimension_numbers<[1], [0], [0], [1], [0, 0, 1, 1], [], []>} : vector<20x25xf32>, vector<25x676xf32>, vector<20x676xf32> -> vector<20x676xf32>
    %124 = vector.broadcast %1 : vector<20x1xf32> to vector<20x676xf32>
    %125 = arith.addf %123, %124 : vector<20x676xf32>
    %cst_55 = arith.constant 0.000000e+00 : f32
    %126 = vector.broadcast %cst_55 : f32 to vector<20x676xf32>
    %127 = arith.maximumf %125, %126 : vector<20x676xf32>
    %128 = vector.extract_strided_slice %127 {offsets = [0, 0], sizes = [20, 169], strides = [1, 1]} : vector<20x676xf32> to vector<20x169xf32>
    %129 = vector.extract_strided_slice %127 {offsets = [0, 169], sizes = [20, 169], strides = [1, 1]} : vector<20x676xf32> to vector<20x169xf32>
    %130 = arith.maximumf %128, %129 : vector<20x169xf32>
    %131 = vector.extract_strided_slice %127 {offsets = [0, 338], sizes = [20, 169], strides = [1, 1]} : vector<20x676xf32> to vector<20x169xf32>
    %132 = vector.extract_strided_slice %127 {offsets = [0, 507], sizes = [20, 169], strides = [1, 1]} : vector<20x676xf32> to vector<20x169xf32>
    %133 = arith.maximumf %131, %132 : vector<20x169xf32>
    %134 = arith.maximumf %130, %133 : vector<20x169xf32>
    %c7_56 = arith.constant 7 : index
    %c0_57 = arith.constant 0 : index
    %c0_58 = arith.constant 0 : index
    %135 = vector.load %arg4[%c7_56, %c0_57, %c0_58] : memref<8x20x169xf32, #tpu.memory_space<vmem>>, vector<1x20x169xf32>
    %136 = vector.shape_cast %135 : vector<1x20x169xf32> to vector<20x169xf32>
    %137 = vector.shape_cast %134 : vector<20x169xf32> to vector<1x20x169xf32>
    tpu.vector_store %arg4[%c7_56, %c0_57, %c0_58], %137 {strides = array<i32>} : memref<8x20x169xf32, #tpu.memory_space<vmem>>, vector<1x20x169xf32>,
    return
  }
  func.func @transform_0(%arg0: i32) -> (i32, i32, i32) {
    %c0_i32 = arith.constant 0 : i32
    %c0_i32_0 = arith.constant 0 : i32
    %c0_i32_1 = arith.constant 0 : i32
    return %arg0, %c0_i32, %c0_i32_0 : i32, i32, i32
  }
  func.func @transform_1(%arg0: i32) -> (i32, i32) {
    %c0_i32 = arith.constant 0 : i32
    %c0_i32_0 = arith.constant 0 : i32
    %c0_i32_1 = arith.constant 0 : i32
    return %c0_i32, %c0_i32_0 : i32, i32
  }
  func.func @transform_2(%arg0: i32) -> (i32, i32) {
    %c0_i32 = arith.constant 0 : i32
    %c0_i32_0 = arith.constant 0 : i32
    %c0_i32_1 = arith.constant 0 : i32
    return %c0_i32, %c0_i32_0 : i32, i32
  }
  func.func @transform_3(%arg0: i32) -> (i32, i32, i32) {
    %c0_i32 = arith.constant 0 : i32
    %c0_i32_0 = arith.constant 0 : i32
    %c0_i32_1 = arith.constant 0 : i32
    return %arg0, %c0_i32, %c0_i32_0 : i32, i32, i32
  }
}

module attributes {stable_mosaic.version = 11 : i64} {
  func.func @mlp_kernel(%arg0: i32, %arg1: memref<8x3380xf32, #tpu.memory_space<vmem>>, %arg2: memref<3380x100xf32, #tpu.memory_space<vmem>>, %arg3: memref<1x100xf32, #tpu.memory_space<vmem>>, %arg4: memref<100x10xf32, #tpu.memory_space<vmem>>, %arg5: memref<1x10xf32, #tpu.memory_space<vmem>>, %arg6: memref<8x10xf32, #tpu.memory_space<vmem>>) attributes {dimension_semantics = [#tpu.dimension_semantics<parallel>], iteration_bounds = array<i64: 1>, scalar_prefetch = 0 : i64, scratch_operands = 0 : i64, tpu.core_type = #tpu.core_type<tc>, window_params = [{transform_indices = @transform_0, window_bounds = array<i64: 8, 3380>}, {pipeline_mode = #tpu.pipeline_mode<synchronous>, transform_indices = @transform_1, window_bounds = array<i64: 3380, 100>}, {pipeline_mode = #tpu.pipeline_mode<synchronous>, transform_indices = @transform_2, window_bounds = array<i64: 1, 100>}, {pipeline_mode = #tpu.pipeline_mode<synchronous>, transform_indices = @transform_3, window_bounds = array<i64: 100, 10>}, {pipeline_mode = #tpu.pipeline_mode<synchronous>, transform_indices = @transform_4, window_bounds = array<i64: 1, 10>}, {transform_indices = @transform_5, window_bounds = array<i64: 8, 10>}]} {
    %c0 = arith.constant 0 : index
    %c0_0 = arith.constant 0 : index
    %0 = vector.load %arg1[%c0, %c0_0] : memref<8x3380xf32, #tpu.memory_space<vmem>>, vector<8x3380xf32>
    %c0_1 = arith.constant 0 : index
    %c0_2 = arith.constant 0 : index
    %1 = vector.load %arg2[%c0_1, %c0_2] : memref<3380x100xf32, #tpu.memory_space<vmem>>, vector<3380x100xf32>
    %cst = arith.constant dense<0.000000e+00> : vector<8x100xf32>
    %2 = tpu.matmul %0, %1, %cst {dimension_numbers = #tpu.dot_dimension_numbers<[1], [0], [0], [1], [0, 0, 1, 1], [], []>} : vector<8x3380xf32>, vector<3380x100xf32>, vector<8x100xf32> -> vector<8x100xf32>
    %c0_3 = arith.constant 0 : index
    %c0_4 = arith.constant 0 : index
    %3 = vector.load %arg3[%c0_3, %c0_4] : memref<1x100xf32, #tpu.memory_space<vmem>>, vector<1x100xf32>
    %4 = vector.broadcast %3 : vector<1x100xf32> to vector<8x100xf32>
    %5 = arith.addf %2, %4 : vector<8x100xf32>
    %cst_5 = arith.constant 0.000000e+00 : f32
    %6 = vector.broadcast %cst_5 : f32 to vector<8x100xf32>
    %7 = arith.maximumf %5, %6 : vector<8x100xf32>
    %c0_6 = arith.constant 0 : index
    %c0_7 = arith.constant 0 : index
    %8 = vector.load %arg4[%c0_6, %c0_7] : memref<100x10xf32, #tpu.memory_space<vmem>>, vector<100x10xf32>
    %cst_8 = arith.constant dense<0.000000e+00> : vector<8x10xf32>
    %9 = tpu.matmul %7, %8, %cst_8 {dimension_numbers = #tpu.dot_dimension_numbers<[1], [0], [0], [1], [0, 0, 1, 1], [], []>} : vector<8x100xf32>, vector<100x10xf32>, vector<8x10xf32> -> vector<8x10xf32>
    %c0_9 = arith.constant 0 : index
    %c0_10 = arith.constant 0 : index
    %10 = vector.load %arg5[%c0_9, %c0_10] : memref<1x10xf32, #tpu.memory_space<vmem>>, vector<1x10xf32>
    %11 = vector.broadcast %10 : vector<1x10xf32> to vector<8x10xf32>
    %12 = arith.addf %9, %11 : vector<8x10xf32>
    %c0_11 = arith.constant 0 : index
    %c0_12 = arith.constant 0 : index
    %13 = vector.load %arg6[%c0_11, %c0_12] : memref<8x10xf32, #tpu.memory_space<vmem>>, vector<8x10xf32>
    tpu.vector_store %arg6[%c0_11, %c0_12], %12 {strides = array<i32>} : memref<8x10xf32, #tpu.memory_space<vmem>>, vector<8x10xf32>,
    return
  }
  func.func @transform_0(%arg0: i32) -> (i32, i32) {
    %c0_i32 = arith.constant 0 : i32
    %c0_i32_0 = arith.constant 0 : i32
    return %arg0, %c0_i32 : i32, i32
  }
  func.func @transform_1(%arg0: i32) -> (i32, i32) {
    %c0_i32 = arith.constant 0 : i32
    %c0_i32_0 = arith.constant 0 : i32
    %c0_i32_1 = arith.constant 0 : i32
    return %c0_i32, %c0_i32_0 : i32, i32
  }
  func.func @transform_2(%arg0: i32) -> (i32, i32) {
    %c0_i32 = arith.constant 0 : i32
    %c0_i32_0 = arith.constant 0 : i32
    %c0_i32_1 = arith.constant 0 : i32
    return %c0_i32, %c0_i32_0 : i32, i32
  }
  func.func @transform_3(%arg0: i32) -> (i32, i32) {
    %c0_i32 = arith.constant 0 : i32
    %c0_i32_0 = arith.constant 0 : i32
    %c0_i32_1 = arith.constant 0 : i32
    return %c0_i32, %c0_i32_0 : i32, i32
  }
  func.func @transform_4(%arg0: i32) -> (i32, i32) {
    %c0_i32 = arith.constant 0 : i32
    %c0_i32_0 = arith.constant 0 : i32
    %c0_i32_1 = arith.constant 0 : i32
    return %c0_i32, %c0_i32_0 : i32, i32
  }
  func.func @transform_5(%arg0: i32) -> (i32, i32) {
    %c0_i32 = arith.constant 0 : i32
    %c0_i32_0 = arith.constant 0 : i32
    return %arg0, %c0_i32 : i32, i32
  }
}

</mosaic_0001>

<bundles_post_ra>
// kernel: cnn1_forward.3
= control target key start
LH: loop header
LB: loop body
LE: loop exit
PB: predicated region body
PF: predicated region fallthrough
CT: control target
= control target key end

     0   :  { %vm478_vm0 = vcmask 1043456   ;;  %vm474_vm1 = vcmask 424960   ;;  %vm1040_vm2 = vcmask 818176   ;;  %vm1067_vm3 = vcmask 80896   ;;  %s2509_s1 = inlined_call_operand.vmem [shape: f32[3380,100], index: 1, kind: input, shape index: {}]   ;;  %s2510_s0 = inlined_call_operand.vmem [shape: f32[8,3380], index: 0, kind: input, shape index: {}]   ;;  %s2511_s2 = inlined_call_operand.vmem [shape: f32[1,100], index: 2, kind: input, shape index: {}]   ;;  %s2512_s4 = inlined_call_operand.vmem [shape: f32[1,10], index: 4, kind: input, shape index: {}]   ;;  %s2513_s3 = inlined_call_operand.vmem [shape: f32[100,10], index: 3, kind: input, shape index: {}]   ;;  %s2514_s5 = inlined_call_operand.vmem [shape: f32[8,10], index: 5, kind: output, shape index: {}]  }
   0x1   :  { %v62_v0 = vld [vmem:[%s2509_s1 + $0x78] sm:$0xff]  ;;  %v61_v2 = vld [vmem:[%s2509_s1 + $0x70] sm:$0xff]  ;;  %v60_v6 = vld [vmem:[%s2509_s1 + $0x68] sm:$0xff] }
   0x2   :  { %v94_v1 = vld [vmem:[%s2509_s1 + $0x178] sm:$0xff]  ;;  %482 = vmatpush.msra.mxu0 %v62_v0  ;;  %v93_v4 = vld [vmem:[%s2509_s1 + $0x170] sm:$0xff]  ;;  %v92_v8 = vld [vmem:[%s2509_s1 + $0x168] sm:$0xff] }
   0x3   :  { %522 = vmatpush.msra.mxu2 %v94_v1  ;;  %v78_v3 = vld [vmem:[%s2509_s1 + $0xf8] sm:$0xff]  ;;  %v77_v7 = vld [vmem:[%s2509_s1 + $0xf0] sm:$0xff]  ;;  %v76_v10 = vld [vmem:[%s2509_s1 + $0xe8] sm:$0xff] }
   0x4   :  { %v110_v5 = vld [vmem:[%s2509_s1 + $0x1f8] sm:$0xff]  ;;  %502 = vmatpush.msra.mxu1 %v78_v3  ;;  %483 = vmatpush.msra.mxu0 %v61_v2  ;;  %v109_v9 = vld [vmem:[%s2509_s1 + $0x1f0] sm:$0xff]  ;;  %v59_v11 = vld [vmem:[%s2509_s1 + $0x60] sm:$0xff] }
   0x5   :  { %542 = vmatpush.msra.mxu3 %v110_v5  ;;  %523 = vmatpush.msra.mxu2 %v93_v4  ;;  %v91_v12 = vld [vmem:[%s2509_s1 + $0x160] sm:$0xff]  ;;  %v108_v13 = vld [vmem:[%s2509_s1 + $0x1e8] sm:$0xff]  ;;  %v58_v16 = vld [vmem:[%s2509_s1 + $0x58] sm:$0xff] }
   0x6   :  { %503 = vmatpush.msra.mxu1 %v77_v7  ;;  %484 = vmatpush.msra.mxu0 %v60_v6  ;;  %v75_v14 = vld [vmem:[%s2509_s1 + $0xe0] sm:$0xff]  ;;  %v90_v17 = vld [vmem:[%s2509_s1 + $0x158] sm:$0xff]  ;;  %v57_v20 = vld [vmem:[%s2509_s1 + $0x50] sm:$0xff] }
   0x7   :  { %543 = vmatpush.msra.mxu3 %v109_v9  ;;  %524 = vmatpush.msra.mxu2 %v92_v8  ;;  %v107_v15 = vld [vmem:[%s2509_s1 + $0x1e0] sm:$0xff]  ;;  %v74_v18 = vld [vmem:[%s2509_s1 + $0xd8] sm:$0xff]  ;;  %v89_v21 = vld [vmem:[%s2509_s1 + $0x150] sm:$0xff] }
   0x8   :  { %504 = vmatpush.msra.mxu1 %v76_v10  ;;  %485 = vmatpush.msra.mxu0 %v59_v11  ;;  %v106_v19 = vld [vmem:[%s2509_s1 + $0x1d8] sm:$0xff]  ;;  %v73_v22 = vld [vmem:[%s2509_s1 + $0xd0] sm:$0xff]  ;;  %v56_v24 = vld [vmem:[%s2509_s1 + $0x48] sm:$0xff] }
   0x9   :  { %544 = vmatpush.msra.mxu3 %v108_v13  ;;  %525 = vmatpush.msra.mxu2 %v91_v12  ;;  %v105_v23 = vld [vmem:[%s2509_s1 + $0x1d0] sm:$0xff]  ;;  %v88_v25 = vld [vmem:[%s2509_s1 + $0x148] sm:$0xff]  ;;  %v55_v28 = vld [vmem:[%s2509_s1 + $0x40] sm:$0xff] }
   0xa   :  { %505 = vmatpush.msra.mxu1 %v75_v14  ;;  %486 = vmatpush.msra.mxu0 %v58_v16  ;;  %v72_v26 = vld [vmem:[%s2509_s1 + $0xc8] sm:$0xff]  ;;  %v87_v29 = vld [vmem:[%s2509_s1 + $0x140] sm:$0xff]  ;;  %v54_v32 = vld [vmem:[%s2509_s1 + $0x38] sm:$0xff] }
   0xb   :  { %545 = vmatpush.msra.mxu3 %v107_v15  ;;  %526 = vmatpush.msra.mxu2 %v90_v17  ;;  %v104_v27 = vld [vmem:[%s2509_s1 + $0x1c8] sm:$0xff]  ;;  %v71_v30 = vld [vmem:[%s2509_s1 + $0xc0] sm:$0xff]  ;;  %v86_v33 = vld [vmem:[%s2509_s1 + $0x138] sm:$0xff] }
   0xc   :  { %506 = vmatpush.msra.mxu1 %v74_v18  ;;  %487 = vmatpush.msra.mxu0 %v57_v20  ;;  %v103_v31 = vld [vmem:[%s2509_s1 + $0x1c0] sm:$0xff]  ;;  %v70_v34 = vld [vmem:[%s2509_s1 + $0xb8] sm:$0xff]  ;;  %v53_v36 = vld [vmem:[%s2509_s1 + $0x30] sm:$0xff] }
   0xd   :  { %546 = vmatpush.msra.mxu3 %v106_v19  ;;  %527 = vmatpush.msra.mxu2 %v89_v21  ;;  %v102_v35 = vld [vmem:[%s2509_s1 + $0x1b8] sm:$0xff]  ;;  %v85_v37 = vld [vmem:[%s2509_s1 + $0x130] sm:$0xff]  ;;  %v52_v40 = vld [vmem:[%s2509_s1 + $0x28] sm:$0xff] }
   0xe   :  { %507 = vmatpush.msra.mxu1 %v73_v22  ;;  %488 = vmatpush.msra.mxu0 %v56_v24  ;;  %v69_v38 = vld [vmem:[%s2509_s1 + $0xb0] sm:$0xff]  ;;  %v84_v41 = vld [vmem:[%s2509_s1 + $0x128] sm:$0xff]  ;;  %v51_v44 = vld [vmem:[%s2509_s1 + $0x20] sm:$0xff] }
   0xf   :  { %547 = vmatpush.msra.mxu3 %v105_v23  ;;  %528 = vmatpush.msra.mxu2 %v88_v25  ;;  %v101_v39 = vld [vmem:[%s2509_s1 + $0x1b0] sm:$0xff]  ;;  %v68_v42 = vld [vmem:[%s2509_s1 + $0xa8] sm:$0xff]  ;;  %v83_v45 = vld [vmem:[%s2509_s1 + $0x120] sm:$0xff] }
  0x10   :  { %508 = vmatpush.msra.mxu1 %v72_v26  ;;  %489 = vmatpush.msra.mxu0 %v55_v28  ;;  %v100_v43 = vld [vmem:[%s2509_s1 + $0x1a8] sm:$0xff]  ;;  %v67_v46 = vld [vmem:[%s2509_s1 + $0xa0] sm:$0xff]  ;;  %v50_v48 = vld [vmem:[%s2509_s1 + $0x18] sm:$0xff] }
  0x11   :  { %548 = vmatpush.msra.mxu3 %v104_v27  ;;  %529 = vmatpush.msra.mxu2 %v87_v29  ;;  %v99_v47 = vld [vmem:[%s2509_s1 + $0x1a0] sm:$0xff]  ;;  %v82_v49 = vld [vmem:[%s2509_s1 + $0x118] sm:$0xff]  ;;  %v49_v52 = vld [vmem:[%s2509_s1 + $0x10] sm:$0xff] }
  0x12   :  { %509 = vmatpush.msra.mxu1 %v71_v30  ;;  %490 = vmatpush.msra.mxu0 %v54_v32  ;;  %v66_v50 = vld [vmem:[%s2509_s1 + $0x98] sm:$0xff]  ;;  %v81_v53 = vld [vmem:[%s2509_s1 + $0x110] sm:$0xff]  ;;  %v48_v56 = vld [vmem:[%s2509_s1 + $0x8] sm:$0xff] }
  0x13   :  { %549 = vmatpush.msra.mxu3 %v103_v31  ;;  %530 = vmatpush.msra.mxu2 %v86_v33  ;;  %v98_v51 = vld [vmem:[%s2509_s1 + $0x198] sm:$0xff]  ;;  %v65_v54 = vld [vmem:[%s2509_s1 + $0x90] sm:$0xff]  ;;  %v80_v57 = vld [vmem:[%s2509_s1 + $0x108] sm:$0xff] }
  0x14   :  { %510 = vmatpush.msra.mxu1 %v70_v34  ;;  %491 = vmatpush.msra.mxu0 %v53_v36  ;;  %v97_v55 = vld [vmem:[%s2509_s1 + $0x190] sm:$0xff]  ;;  %v64_v58 = vld [vmem:[%s2509_s1 + $0x88] sm:$0xff]  ;;  %v47_v60 = vld [vmem:[%s2509_s1] sm:$0xff] }
  0x15   :  { %550 = vmatpush.msra.mxu3 %v102_v35  ;;  %531 = vmatpush.msra.mxu2 %v85_v37  ;;  %v96_v59 = vld [vmem:[%s2509_s1 + $0x188] sm:$0xff]  ;;  %v79_v61 = vld [vmem:[%s2509_s1 + $0x100] sm:$0xff]  ;;  %v126_v62 = vld [vmem:[%s2509_s1 + $0x278] sm:$0xff] }
  0x16   :  { %511 = vmatpush.msra.mxu1 %v69_v38  ;;  %492 = vmatpush.msra.mxu0 %v52_v40  ;;  %v158_v63 = vld [vmem:[%s2509_s1 + $0x378] sm:$0xff]  ;;  %v63_v0 = vld [vmem:[%s2509_s1 + $0x80] sm:$0xff]  ;;  %v125_v2 = vld [vmem:[%s2509_s1 + $0x270] sm:$0xff] }
  0x17   :  { %551 = vmatpush.msra.mxu3 %v101_v39  ;;  %532 = vmatpush.msra.mxu2 %v84_v41  ;;  %v95_v1 = vld [vmem:[%s2509_s1 + $0x180] sm:$0xff]  ;;  %v142_v3 = vld [vmem:[%s2509_s1 + $0x2f8] sm:$0xff]  ;;  %v157_v4 = vld [vmem:[%s2509_s1 + $0x370] sm:$0xff] }
  0x18   :  { %512 = vmatpush.msra.mxu1 %v68_v42  ;;  %493 = vmatpush.msra.mxu0 %v51_v44  ;;  %v174_v5 = vld [vmem:[%s2509_s1 + $0x3f8] sm:$0xff]  ;;  %v124_v6 = vld [vmem:[%s2509_s1 + $0x268] sm:$0xff]  ;;  %v141_v7 = vld [vmem:[%s2509_s1 + $0x2f0] sm:$0xff] }
  0x19   :  { %552 = vmatpush.msra.mxu3 %v100_v43  ;;  %533 = vmatpush.msra.mxu2 %v83_v45  ;;  %v156_v8 = vld [vmem:[%s2509_s1 + $0x368] sm:$0xff]  ;;  %v173_v9 = vld [vmem:[%s2509_s1 + $0x3f0] sm:$0xff]  ;;  %v123_v10 = vld [vmem:[%s2509_s1 + $0x260] sm:$0xff] }
  0x1a   :  { %513 = vmatpush.msra.mxu1 %v67_v46  ;;  %494 = vmatpush.msra.mxu0 %v50_v48  ;;  %v140_v11 = vld [vmem:[%s2509_s1 + $0x2e8] sm:$0xff]  ;;  %v155_v12 = vld [vmem:[%s2509_s1 + $0x360] sm:$0xff]  ;;  %v122_v14 = vld [vmem:[%s2509_s1 + $0x258] sm:$0xff] }
  0x1b   :  { %553 = vmatpush.msra.mxu3 %v99_v47  ;;  %534 = vmatpush.msra.mxu2 %v82_v49  ;;  %v172_v13 = vld [vmem:[%s2509_s1 + $0x3e8] sm:$0xff]  ;;  %v139_v15 = vld [vmem:[%s2509_s1 + $0x2e0] sm:$0xff]  ;;  %v154_v16 = vld [vmem:[%s2509_s1 + $0x358] sm:$0xff] }
  0x1c   :  { %514 = vmatpush.msra.mxu1 %v66_v50  ;;  %495 = vmatpush.msra.mxu0 %v49_v52  ;;  %v171_v17 = vld [vmem:[%s2509_s1 + $0x3e0] sm:$0xff]  ;;  %v121_v18 = vld [vmem:[%s2509_s1 + $0x250] sm:$0xff]  ;;  %v138_v19 = vld [vmem:[%s2509_s1 + $0x2d8] sm:$0xff] }
  0x1d   :  { %554 = vmatpush.msra.mxu3 %v98_v51  ;;  %535 = vmatpush.msra.mxu2 %v81_v53  ;;  %v153_v20 = vld [vmem:[%s2509_s1 + $0x350] sm:$0xff]  ;;  %v170_v21 = vld [vmem:[%s2509_s1 + $0x3d8] sm:$0xff]  ;;  %v120_v22 = vld [vmem:[%s2509_s1 + $0x248] sm:$0xff] }
  0x1e   :  { %515 = vmatpush.msra.mxu1 %v65_v54  ;;  %496 = vmatpush.msra.mxu0 %v48_v56  ;;  %v137_v23 = vld [vmem:[%s2509_s1 + $0x2d0] sm:$0xff]  ;;  %v152_v24 = vld [vmem:[%s2509_s1 + $0x348] sm:$0xff]  ;;  %v119_v26 = vld [vmem:[%s2509_s1 + $0x240] sm:$0xff] }
  0x1f   :  { %555 = vmatpush.msra.mxu3 %v97_v55  ;;  %536 = vmatpush.msra.mxu2 %v80_v57  ;;  %v169_v25 = vld [vmem:[%s2509_s1 + $0x3d0] sm:$0xff]  ;;  %v136_v27 = vld [vmem:[%s2509_s1 + $0x2c8] sm:$0xff]  ;;  %v151_v28 = vld [vmem:[%s2509_s1 + $0x340] sm:$0xff] }
  0x20   :  { %516 = vmatpush.msra.mxu1 %v64_v58  ;;  %497 = vmatpush.msra.mxu0 %v47_v60  ;;  %v168_v29 = vld [vmem:[%s2509_s1 + $0x3c8] sm:$0xff]  ;;  %v118_v30 = vld [vmem:[%s2509_s1 + $0x238] sm:$0xff]  ;;  %v135_v31 = vld [vmem:[%s2509_s1 + $0x2c0] sm:$0xff] }
  0x21   :  { %556 = vmatpush.msra.mxu3 %v96_v59  ;;  %537 = vmatpush.msra.mxu2 %v79_v61  ;;  %v150_v32 = vld [vmem:[%s2509_s1 + $0x338] sm:$0xff]  ;;  %v167_v33 = vld [vmem:[%s2509_s1 + $0x3c0] sm:$0xff]  ;;  %v117_v34 = vld [vmem:[%s2509_s1 + $0x230] sm:$0xff] }
  0x22   :  { %562 = vmatpush.msrb.mxu0 %v126_v62  ;;  %517 = vmatpush.msra.mxu1 %v63_v0  ;;  %v134_v35 = vld [vmem:[%s2509_s1 + $0x2b8] sm:$0xff]  ;;  %v149_v36 = vld [vmem:[%s2509_s1 + $0x330] sm:$0xff]  ;;  %v116_v38 = vld [vmem:[%s2509_s1 + $0x228] sm:$0xff] }
  0x23   :  { %602 = vmatpush.msrb.mxu2 %v158_v63  ;;  %557 = vmatpush.msra.mxu3 %v95_v1  ;;  %v166_v37 = vld [vmem:[%s2509_s1 + $0x3b8] sm:$0xff]  ;;  %v133_v39 = vld [vmem:[%s2509_s1 + $0x2b0] sm:$0xff]  ;;  %v148_v40 = vld [vmem:[%s2509_s1 + $0x328] sm:$0xff] }
  0x24   :  { %563 = vmatpush.msrb.mxu0 %v125_v2  ;;  %582 = vmatpush.msrb.mxu1 %v142_v3  ;;  %v165_v41 = vld [vmem:[%s2509_s1 + $0x3b0] sm:$0xff]  ;;  %v115_v42 = vld [vmem:[%s2509_s1 + $0x220] sm:$0xff]  ;;  %v132_v43 = vld [vmem:[%s2509_s1 + $0x2a8] sm:$0xff] }
  0x25   :  { %603 = vmatpush.msrb.mxu2 %v157_v4  ;;  %622 = vmatpush.msrb.mxu3 %v174_v5  ;;  %v147_v44 = vld [vmem:[%s2509_s1 + $0x320] sm:$0xff]  ;;  %v164_v45 = vld [vmem:[%s2509_s1 + $0x3a8] sm:$0xff]  ;;  %v114_v46 = vld [vmem:[%s2509_s1 + $0x218] sm:$0xff] }
  0x26   :  { %564 = vmatpush.msrb.mxu0 %v124_v6  ;;  %583 = vmatpush.msrb.mxu1 %v141_v7  ;;  %v131_v47 = vld [vmem:[%s2509_s1 + $0x2a0] sm:$0xff]  ;;  %v146_v48 = vld [vmem:[%s2509_s1 + $0x318] sm:$0xff]  ;;  %v113_v50 = vld [vmem:[%s2509_s1 + $0x210] sm:$0xff] }
  0x27   :  { %604 = vmatpush.msrb.mxu2 %v156_v8  ;;  %623 = vmatpush.msrb.mxu3 %v173_v9  ;;  %v163_v49 = vld [vmem:[%s2509_s1 + $0x3a0] sm:$0xff]  ;;  %v130_v51 = vld [vmem:[%s2509_s1 + $0x298] sm:$0xff]  ;;  %v145_v52 = vld [vmem:[%s2509_s1 + $0x310] sm:$0xff] }
  0x28   :  { %565 = vmatpush.msrb.mxu0 %v123_v10  ;;  %584 = vmatpush.msrb.mxu1 %v140_v11  ;;  %v162_v53 = vld [vmem:[%s2509_s1 + $0x398] sm:$0xff]  ;;  %v112_v54 = vld [vmem:[%s2509_s1 + $0x208] sm:$0xff]  ;;  %v129_v55 = vld [vmem:[%s2509_s1 + $0x290] sm:$0xff] }
  0x29   :  { %605 = vmatpush.msrb.mxu2 %v155_v12  ;;  %624 = vmatpush.msrb.mxu3 %v172_v13  ;;  %v144_v56 = vld [vmem:[%s2509_s1 + $0x308] sm:$0xff]  ;;  %v161_v57 = vld [vmem:[%s2509_s1 + $0x390] sm:$0xff]  ;;  %v111_v59 = vld [vmem:[%s2509_s1 + $0x200] sm:$0xff] }
  0x2a   :  { %566 = vmatpush.msrb.mxu0 %v122_v14  ;;  %585 = vmatpush.msrb.mxu1 %v139_v15  ;;  %v22_v58 = vld [vmem:[%s2510_s0 + $0x10] sm:$0xff]  ;;  %v128_v60 = vld [vmem:[%s2509_s1 + $0x288] sm:$0xff]  ;;  %v143_v61 = vld [vmem:[%s2509_s1 + $0x300] sm:$0xff] }
  0x2b   :  { %606 = vmatpush.msrb.mxu2 %v154_v16  ;;  %625 = vmatpush.msrb.mxu3 %v171_v17  ;;  %v160_v62 = vld [vmem:[%s2509_s1 + $0x388] sm:$0xff]  ;;  %v20_v63 = vld [vmem:[%s2510_s0] sm:$0xff]  ;;  %v23_v0 = vld [vmem:[%s2510_s0 + $0x18] sm:$0xff] }
  0x2c   :  { %567 = vmatpush.msrb.mxu0 %v121_v18  ;;  %586 = vmatpush.msrb.mxu1 %v138_v19  ;;  %v190_v1 = vld [vmem:[%s2509_s1 + $0x478] sm:$0xff]  ;;  %v127_v3 = vld [vmem:[%s2509_s1 + $0x280] sm:$0xff]  ;;  %v21_v5 = vld [vmem:[%s2510_s0 + $0x8] sm:$0xff] }
  0x2d   :  { %607 = vmatpush.msrb.mxu2 %v153_v20  ;;  %626 = vmatpush.msrb.mxu3 %v170_v21  ;;  %v222_v2 = vld [vmem:[%s2509_s1 + $0x578] sm:$0xff]  ;;  %v159_v4 = vld [vmem:[%s2509_s1 + $0x380] sm:$0xff]  ;;  %v189_v6 = vld [vmem:[%s2509_s1 + $0x470] sm:$0xff] }
  0x2e   :  { %568 = vmatpush.msrb.mxu0 %v120_v22  ;;  %587 = vmatpush.msrb.mxu1 %v137_v23  ;;  %v206_v7 = vld [vmem:[%s2509_s1 + $0x4f8] sm:$0xff]  ;;  %v221_v8 = vld [vmem:[%s2509_s1 + $0x570] sm:$0xff]  ;;  %v188_v10 = vld [vmem:[%s2509_s1 + $0x468] sm:$0xff] }
  0x2f   :  { %608 = vmatpush.msrb.mxu2 %v152_v24  ;;  %627 = vmatpush.msrb.mxu3 %v169_v25  ;;  %v238_v9 = vld [vmem:[%s2509_s1 + $0x5f8] sm:$0xff]  ;;  %v205_v11 = vld [vmem:[%s2509_s1 + $0x4f0] sm:$0xff]  ;;  %v220_v12 = vld [vmem:[%s2509_s1 + $0x568] sm:$0xff] }
  0x30   :  { %569 = vmatpush.msrb.mxu0 %v119_v26  ;;  %588 = vmatpush.msrb.mxu1 %v136_v27  ;;  %v237_v13 = vld [vmem:[%s2509_s1 + $0x5f0] sm:$0xff]  ;;  %v187_v15 = vld [vmem:[%s2509_s1 + $0x460] sm:$0xff]  ;;  %v204_v16 = vld [vmem:[%s2509_s1 + $0x4e8] sm:$0xff] }
  0x31   :  { %609 = vmatpush.msrb.mxu2 %v151_v28  ;;  %628 = vmatpush.msrb.mxu3 %v168_v29  ;;  %v26_v14 = vld [vmem:[%s2510_s0 + $0x30] sm:$0xff]  ;;  %v219_v17 = vld [vmem:[%s2509_s1 + $0x560] sm:$0xff]  ;;  %v236_v18 = vld [vmem:[%s2509_s1 + $0x5e8] sm:$0xff] }
  0x32   :  { %570 = vmatpush.msrb.mxu0 %v118_v30  ;;  %589 = vmatpush.msrb.mxu1 %v135_v31  ;;  %v24_v19 = vld [vmem:[%s2510_s0 + $0x20] sm:$0xff]  ;;  %v27_v20 = vld [vmem:[%s2510_s0 + $0x38] sm:$0xff]  ;;  %v25_v25 = vld [vmem:[%s2510_s0 + $0x28] sm:$0xff] }
  0x33   :  { %610 = vmatpush.msrb.mxu2 %v150_v32  ;;  %629 = vmatpush.msrb.mxu3 %v167_v33  ;;  %v186_v21 = vld [vmem:[%s2509_s1 + $0x458] sm:$0xff]  ;;  %v203_v22 = vld [vmem:[%s2509_s1 + $0x4e0] sm:$0xff]  ;;  %v185_v26 = vld [vmem:[%s2509_s1 + $0x450] sm:$0xff] }
  0x34   :  { %571 = vmatpush.msrb.mxu0 %v117_v34  ;;  %590 = vmatpush.msrb.mxu1 %v134_v35  ;;  %v218_v23 = vld [vmem:[%s2509_s1 + $0x558] sm:$0xff]  ;;  %v235_v24 = vld [vmem:[%s2509_s1 + $0x5e0] sm:$0xff]  ;;  %v217_v28 = vld [vmem:[%s2509_s1 + $0x550] sm:$0xff] }
  0x35   :  { %611 = vmatpush.msrb.mxu2 %v149_v36  ;;  %630 = vmatpush.msrb.mxu3 %v166_v37  ;;  %v202_v27 = vld [vmem:[%s2509_s1 + $0x4d8] sm:$0xff]  ;;  %v184_v30 = vld [vmem:[%s2509_s1 + $0x448] sm:$0xff]  ;;  %v201_v31 = vld [vmem:[%s2509_s1 + $0x4d0] sm:$0xff] }
  0x36   :  { %572 = vmatpush.msrb.mxu0 %v116_v38  ;;  %591 = vmatpush.msrb.mxu1 %v133_v39  ;;  %v234_v29 = vld [vmem:[%s2509_s1 + $0x5d8] sm:$0xff]  ;;  %v216_v32 = vld [vmem:[%s2509_s1 + $0x548] sm:$0xff]  ;;  %v233_v33 = vld [vmem:[%s2509_s1 + $0x5d0] sm:$0xff] }
  0x37   :  { %612 = vmatpush.msrb.mxu2 %v148_v40  ;;  %631 = vmatpush.msrb.mxu3 %v165_v41  ;;  %v183_v34 = vld [vmem:[%s2509_s1 + $0x440] sm:$0xff]  ;;  %v200_v35 = vld [vmem:[%s2509_s1 + $0x4c8] sm:$0xff]  ;;  %v182_v38 = vld [vmem:[%s2509_s1 + $0x438] sm:$0xff] }
  0x38   :  { %573 = vmatpush.msrb.mxu0 %v115_v42  ;;  %592 = vmatpush.msrb.mxu1 %v132_v43  ;;  %v215_v36 = vld [vmem:[%s2509_s1 + $0x540] sm:$0xff]  ;;  %v232_v37 = vld [vmem:[%s2509_s1 + $0x5c8] sm:$0xff]  ;;  %v214_v40 = vld [vmem:[%s2509_s1 + $0x538] sm:$0xff] }
  0x39   :  { %613 = vmatpush.msrb.mxu2 %v147_v44  ;;  %632 = vmatpush.msrb.mxu3 %v164_v45  ;;  %v199_v39 = vld [vmem:[%s2509_s1 + $0x4c0] sm:$0xff]  ;;  %v181_v42 = vld [vmem:[%s2509_s1 + $0x430] sm:$0xff]  ;;  %v198_v43 = vld [vmem:[%s2509_s1 + $0x4b8] sm:$0xff] }
  0x3a   :  { %574 = vmatpush.msrb.mxu0 %v114_v46  ;;  %593 = vmatpush.msrb.mxu1 %v131_v47  ;;  %v231_v41 = vld [vmem:[%s2509_s1 + $0x5c0] sm:$0xff]  ;;  %v213_v44 = vld [vmem:[%s2509_s1 + $0x530] sm:$0xff]  ;;  %v230_v45 = vld [vmem:[%s2509_s1 + $0x5b8] sm:$0xff] }
  0x3b   :  { %614 = vmatpush.msrb.mxu2 %v146_v48  ;;  %633 = vmatpush.msrb.mxu3 %v163_v49  ;;  %v180_v46 = vld [vmem:[%s2509_s1 + $0x428] sm:$0xff]  ;;  %v197_v47 = vld [vmem:[%s2509_s1 + $0x4b0] sm:$0xff] }
  0x3c   :  { %575 = vmatpush.msrb.mxu0 %v113_v50  ;;  %594 = vmatpush.msrb.mxu1 %v130_v51  ;;  %v212_v48 = vld [vmem:[%s2509_s1 + $0x528] sm:$0xff]  ;;  %v229_v49 = vld [vmem:[%s2509_s1 + $0x5b0] sm:$0xff]  ;;  %v179_v50 = vld [vmem:[%s2509_s1 + $0x420] sm:$0xff] }
  0x3d   :  { %615 = vmatpush.msrb.mxu2 %v145_v52  ;;  %634 = vmatpush.msrb.mxu3 %v162_v53  ;;  %v196_v51 = vld [vmem:[%s2509_s1 + $0x4a8] sm:$0xff]  ;;  %v211_v52 = vld [vmem:[%s2509_s1 + $0x520] sm:$0xff] }
  0x3e   :  { %576 = vmatpush.msrb.mxu0 %v112_v54  ;;  %595 = vmatpush.msrb.mxu1 %v129_v55  ;;  %v228_v53 = vld [vmem:[%s2509_s1 + $0x5a8] sm:$0xff]  ;;  %v178_v54 = vld [vmem:[%s2509_s1 + $0x418] sm:$0xff]  ;;  %v195_v55 = vld [vmem:[%s2509_s1 + $0x4a0] sm:$0xff] }
  0x3f   :  { %616 = vmatpush.msrb.mxu2 %v144_v56  ;;  %635 = vmatpush.msrb.mxu3 %v161_v57  ;;  %v210_v56 = vld [vmem:[%s2509_s1 + $0x518] sm:$0xff]  ;;  %v227_v57 = vld [vmem:[%s2509_s1 + $0x5a0] sm:$0xff] }
  0x40   :  { %538 = vmatmul.f32.vlgmr.msra.gmra.mxu2 %v22_v58  ;;  %577 = vmatpush.msrb.mxu0 %v111_v59  ;;  %v177_v58 = vld [vmem:[%s2509_s1 + $0x410] sm:$0xff]  ;;  %v194_v59 = vld [vmem:[%s2509_s1 + $0x498] sm:$0xff] }
  0x41   :  { %596 = vmatpush.msrb.mxu1 %v128_v60  ;;  %617 = vmatpush.msrb.mxu2 %v143_v61  ;;  %v209_v60 = vld [vmem:[%s2509_s1 + $0x510] sm:$0xff]  ;;  %v226_v61 = vld [vmem:[%s2509_s1 + $0x598] sm:$0xff] }
  0x42   :  { %636 = vmatpush.msrb.mxu3 %v160_v62  ;;  %498 = vmatmul.f32.vlgmr.msra.gmra.mxu0 %v20_v63  ;;  %v176_v62 = vld [vmem:[%s2509_s1 + $0x408] sm:$0xff]  ;;  %v193_v63 = vld [vmem:[%s2509_s1 + $0x490] sm:$0xff] }
  0x43   :  { %558 = vmatmul.f32.vlgmr.msra.gmra.mxu3 %v23_v0  ;;  %642 = vmatpush.msra.mxu0 %v190_v1  ;;  %v208_v0 = vld [vmem:[%s2509_s1 + $0x508] sm:$0xff]  ;;  %v225_v1 = vld [vmem:[%s2509_s1 + $0x590] sm:$0xff] }
  0x44   :  { %682 = vmatpush.msra.mxu2 %v222_v2  ;;  %597 = vmatpush.msrb.mxu1 %v127_v3  ;;  %v175_v2 = vld [vmem:[%s2509_s1 + $0x400] sm:$0xff]  ;;  %v192_v3 = vld [vmem:[%s2509_s1 + $0x488] sm:$0xff] }
  0x45   :  { %637 = vmatpush.msrb.mxu3 %v159_v4  ;;  %518 = vmatmul.f32.vlgmr.msra.gmra.mxu1 %v21_v5  ;;  %v207_v4 = vld [vmem:[%s2509_s1 + $0x500] sm:$0xff]  ;;  %v224_v5 = vld [vmem:[%s2509_s1 + $0x588] sm:$0xff] }
  0x46   :  { %643 = vmatpush.msra.mxu0 %v189_v6  ;;  %662 = vmatpush.msra.mxu1 %v206_v7  ;;  %v28_v6 = vld [vmem:[%s2510_s0 + $0x40] sm:$0xff]  ;;  %v30_v7 = vld [vmem:[%s2510_s0 + $0x50] sm:$0xff] }
  0x47   :  { %683 = vmatpush.msra.mxu2 %v221_v8  ;;  %702 = vmatpush.msra.mxu3 %v238_v9  ;;  %v254_v8 = vld [vmem:[%s2509_s1 + $0x678] sm:$0xff] }
  0x48   :  { %644 = vmatpush.msra.mxu0 %v188_v10  ;;  %663 = vmatpush.msra.mxu1 %v205_v11  ;;  %v286_v9 = vld [vmem:[%s2509_s1 + $0x778] sm:$0xff]  ;;  %v191_v10 = vld [vmem:[%s2509_s1 + $0x480] sm:$0xff] }
  0x49   :  { %684 = vmatpush.msra.mxu2 %v220_v12  ;;  %703 = vmatpush.msra.mxu3 %v237_v13  ;;  %v223_v11 = vld [vmem:[%s2509_s1 + $0x580] sm:$0xff]  ;;  %v29_v12 = vld [vmem:[%s2510_s0 + $0x48] sm:$0xff]  ;;  %v31_v13 = vld [vmem:[%s2510_s0 + $0x58] sm:$0xff] }
  0x4a   :  { %618 = vmatmul.f32.vlgmr.msrb.gmra.mxu2 %v26_v14  ;;  %645 = vmatpush.msra.mxu0 %v187_v15  ;;  %v253_v14 = vld [vmem:[%s2509_s1 + $0x670] sm:$0xff]  ;;  %v270_v15 = vld [vmem:[%s2509_s1 + $0x6f8] sm:$0xff] }
  0x4b   :  { %664 = vmatpush.msra.mxu1 %v204_v16  ;;  %685 = vmatpush.msra.mxu2 %v219_v17  ;;  %v285_v16 = vld [vmem:[%s2509_s1 + $0x770] sm:$0xff]  ;;  %v302_v17 = vld [vmem:[%s2509_s1 + $0x7f8] sm:$0xff] }
  0x4c   :  { %704 = vmatpush.msra.mxu3 %v236_v18  ;;  %578 = vmatmul.f32.vlgmr.msrb.gmra.mxu0 %v24_v19  ;;  %v252_v18 = vld [vmem:[%s2509_s1 + $0x668] sm:$0xff]  ;;  %v269_v19 = vld [vmem:[%s2509_s1 + $0x6f0] sm:$0xff] }
  0x4d   :  { %638 = vmatmul.f32.vlgmr.msrb.gmra.mxu3 %v27_v20  ;;  %646 = vmatpush.msra.mxu0 %v186_v21  ;;  %v284_v20 = vld [vmem:[%s2509_s1 + $0x768] sm:$0xff]  ;;  %v301_v21 = vld [vmem:[%s2509_s1 + $0x7f0] sm:$0xff] }
  0x4e   :  { %665 = vmatpush.msra.mxu1 %v203_v22  ;;  %686 = vmatpush.msra.mxu2 %v218_v23  ;;  %v251_v22 = vld [vmem:[%s2509_s1 + $0x660] sm:$0xff]  ;;  %v268_v23 = vld [vmem:[%s2509_s1 + $0x6e8] sm:$0xff] }
  0x4f   :  { %705 = vmatpush.msra.mxu3 %v235_v24  ;;  %598 = vmatmul.f32.vlgmr.msrb.gmra.mxu1 %v25_v25  ;;  %v283_v24 = vld [vmem:[%s2509_s1 + $0x760] sm:$0xff]  ;;  %v300_v25 = vld [vmem:[%s2509_s1 + $0x7e8] sm:$0xff] }
  0x50   :  { %647 = vmatpush.msra.mxu0 %v185_v26  ;;  %666 = vmatpush.msra.mxu1 %v202_v27  ;;  %v250_v26 = vld [vmem:[%s2509_s1 + $0x658] sm:$0xff]  ;;  %v267_v27 = vld [vmem:[%s2509_s1 + $0x6e0] sm:$0xff] }
  0x51   :  { %687 = vmatpush.msra.mxu2 %v217_v28  ;;  %706 = vmatpush.msra.mxu3 %v234_v29  ;;  %v282_v28 = vld [vmem:[%s2509_s1 + $0x758] sm:$0xff]  ;;  %v299_v29 = vld [vmem:[%s2509_s1 + $0x7e0] sm:$0xff] }
  0x52   :  { %648 = vmatpush.msra.mxu0 %v184_v30  ;;  %667 = vmatpush.msra.mxu1 %v201_v31  ;;  %v249_v30 = vld [vmem:[%s2509_s1 + $0x650] sm:$0xff]  ;;  %v266_v31 = vld [vmem:[%s2509_s1 + $0x6d8] sm:$0xff] }
  0x53   :  { %688 = vmatpush.msra.mxu2 %v216_v32  ;;  %707 = vmatpush.msra.mxu3 %v233_v33  ;;  %v281_v32 = vld [vmem:[%s2509_s1 + $0x750] sm:$0xff]  ;;  %v298_v33 = vld [vmem:[%s2509_s1 + $0x7d8] sm:$0xff] }
  0x54   :  { %649 = vmatpush.msra.mxu0 %v183_v34  ;;  %668 = vmatpush.msra.mxu1 %v200_v35  ;;  %v248_v34 = vld [vmem:[%s2509_s1 + $0x648] sm:$0xff]  ;;  %v265_v35 = vld [vmem:[%s2509_s1 + $0x6d0] sm:$0xff] }
  0x55   :  { %689 = vmatpush.msra.mxu2 %v215_v36  ;;  %708 = vmatpush.msra.mxu3 %v232_v37  ;;  %v280_v36 = vld [vmem:[%s2509_s1 + $0x748] sm:$0xff]  ;;  %v297_v37 = vld [vmem:[%s2509_s1 + $0x7d0] sm:$0xff] }
  0x56   :  { %650 = vmatpush.msra.mxu0 %v182_v38  ;;  %669 = vmatpush.msra.mxu1 %v199_v39  ;;  %v247_v38 = vld [vmem:[%s2509_s1 + $0x640] sm:$0xff]  ;;  %v264_v39 = vld [vmem:[%s2509_s1 + $0x6c8] sm:$0xff] }
  0x57   :  { %690 = vmatpush.msra.mxu2 %v214_v40  ;;  %709 = vmatpush.msra.mxu3 %v231_v41  ;;  %v279_v40 = vld [vmem:[%s2509_s1 + $0x740] sm:$0xff]  ;;  %v296_v41 = vld [vmem:[%s2509_s1 + $0x7c8] sm:$0xff] }
  0x58   :  { %651 = vmatpush.msra.mxu0 %v181_v42  ;;  %670 = vmatpush.msra.mxu1 %v198_v43  ;;  %v246_v42 = vld [vmem:[%s2509_s1 + $0x638] sm:$0xff]  ;;  %v263_v43 = vld [vmem:[%s2509_s1 + $0x6c0] sm:$0xff] }
  0x59   :  { %691 = vmatpush.msra.mxu2 %v213_v44  ;;  %710 = vmatpush.msra.mxu3 %v230_v45  ;;  %v278_v44 = vld [vmem:[%s2509_s1 + $0x738] sm:$0xff]  ;;  %v295_v45 = vld [vmem:[%s2509_s1 + $0x7c0] sm:$0xff] }
  0x5a   :  { %652 = vmatpush.msra.mxu0 %v180_v46  ;;  %671 = vmatpush.msra.mxu1 %v197_v47  ;;  %v245_v46 = vld [vmem:[%s2509_s1 + $0x630] sm:$0xff]  ;;  %v262_v47 = vld [vmem:[%s2509_s1 + $0x6b8] sm:$0xff] }
  0x5b   :  { %692 = vmatpush.msra.mxu2 %v212_v48  ;;  %711 = vmatpush.msra.mxu3 %v229_v49  ;;  %v277_v48 = vld [vmem:[%s2509_s1 + $0x730] sm:$0xff]  ;;  %v294_v49 = vld [vmem:[%s2509_s1 + $0x7b8] sm:$0xff] }
  0x5c   :  { %653 = vmatpush.msra.mxu0 %v179_v50  ;;  %672 = vmatpush.msra.mxu1 %v196_v51  ;;  %v244_v50 = vld [vmem:[%s2509_s1 + $0x628] sm:$0xff]  ;;  %v261_v51 = vld [vmem:[%s2509_s1 + $0x6b0] sm:$0xff] }
  0x5d   :  { %693 = vmatpush.msra.mxu2 %v211_v52  ;;  %712 = vmatpush.msra.mxu3 %v228_v53  ;;  %v276_v52 = vld [vmem:[%s2509_s1 + $0x728] sm:$0xff]  ;;  %v293_v53 = vld [vmem:[%s2509_s1 + $0x7b0] sm:$0xff] }
  0x5e   :  { %654 = vmatpush.msra.mxu0 %v178_v54  ;;  %673 = vmatpush.msra.mxu1 %v195_v55  ;;  %v243_v54 = vld [vmem:[%s2509_s1 + $0x620] sm:$0xff]  ;;  %v260_v55 = vld [vmem:[%s2509_s1 + $0x6a8] sm:$0xff] }
  0x5f   :  { %694 = vmatpush.msra.mxu2 %v210_v56  ;;  %713 = vmatpush.msra.mxu3 %v227_v57  ;;  %v275_v56 = vld [vmem:[%s2509_s1 + $0x720] sm:$0xff]  ;;  %v292_v57 = vld [vmem:[%s2509_s1 + $0x7a8] sm:$0xff] }
  0x60   :  { %655 = vmatpush.msra.mxu0 %v177_v58  ;;  %674 = vmatpush.msra.mxu1 %v194_v59  ;;  %v242_v58 = vld [vmem:[%s2509_s1 + $0x618] sm:$0xff]  ;;  %v259_v59 = vld [vmem:[%s2509_s1 + $0x6a0] sm:$0xff] }
  0x61   :  { %695 = vmatpush.msra.mxu2 %v209_v60  ;;  %714 = vmatpush.msra.mxu3 %v226_v61  ;;  %v274_v60 = vld [vmem:[%s2509_s1 + $0x718] sm:$0xff]  ;;  %v291_v61 = vld [vmem:[%s2509_s1 + $0x7a0] sm:$0xff] }
  0x62   :  { %656 = vmatpush.msra.mxu0 %v176_v62  ;;  %675 = vmatpush.msra.mxu1 %v193_v63  ;;  %v241_v62 = vld [vmem:[%s2509_s1 + $0x610] sm:$0xff]  ;;  %v258_v63 = vld [vmem:[%s2509_s1 + $0x698] sm:$0xff] }
  0x63   :  { %696 = vmatpush.msra.mxu2 %v208_v0  ;;  %715 = vmatpush.msra.mxu3 %v225_v1  ;;  %v273_v0 = vld [vmem:[%s2509_s1 + $0x710] sm:$0xff]  ;;  %v290_v1 = vld [vmem:[%s2509_s1 + $0x798] sm:$0xff] }
  0x64   :  { %657 = vmatpush.msra.mxu0 %v175_v2  ;;  %676 = vmatpush.msra.mxu1 %v192_v3  ;;  %v240_v2 = vld [vmem:[%s2509_s1 + $0x608] sm:$0xff]  ;;  %v257_v3 = vld [vmem:[%s2509_s1 + $0x690] sm:$0xff] }
  0x65   :  { %697 = vmatpush.msra.mxu2 %v207_v4  ;;  %716 = vmatpush.msra.mxu3 %v224_v5  ;;  %v272_v4 = vld [vmem:[%s2509_s1 + $0x708] sm:$0xff]  ;;  %v289_v5 = vld [vmem:[%s2509_s1 + $0x790] sm:$0xff] }
  0x66   :  { %658 = vmatmul.f32.vlgmr.msra.gmra.mxu0 %v28_v6  ;;  %698 = vmatmul.f32.vlgmr.msra.gmra.mxu2 %v30_v7  ;;  %v239_v6 = vld [vmem:[%s2509_s1 + $0x600] sm:$0xff]  ;;  %v256_v7 = vld [vmem:[%s2509_s1 + $0x688] sm:$0xff] }
  0x67   :  { %722 = vmatpush.msrb.mxu0 %v254_v8  ;;  %762 = vmatpush.msrb.mxu2 %v286_v9  ;;  %v271_v8 = vld [vmem:[%s2509_s1 + $0x700] sm:$0xff]  ;;  %v288_v9 = vld [vmem:[%s2509_s1 + $0x788] sm:$0xff] }
  0x68   :  { %677 = vmatpush.msra.mxu1 %v191_v10  ;;  %717 = vmatpush.msra.mxu3 %v223_v11  ;;  %v32_v10 = vld [vmem:[%s2510_s0 + $0x60] sm:$0xff]  ;;  %v34_v11 = vld [vmem:[%s2510_s0 + $0x70] sm:$0xff] }
  0x69   :  { %678 = vmatmul.f32.vlgmr.msra.gmra.mxu1 %v29_v12  ;;  %718 = vmatmul.f32.vlgmr.msra.gmra.mxu3 %v31_v13  ;;  %v318_v12 = vld [vmem:[%s2509_s1 + $0x878] sm:$0xff] }
  0x6a   :  { %723 = vmatpush.msrb.mxu0 %v253_v14  ;;  %742 = vmatpush.msrb.mxu1 %v270_v15  ;;  %v350_v13 = vld [vmem:[%s2509_s1 + $0x978] sm:$0xff]  ;;  %v255_v14 = vld [vmem:[%s2509_s1 + $0x680] sm:$0xff] }
  0x6b   :  { %763 = vmatpush.msrb.mxu2 %v285_v16  ;;  %782 = vmatpush.msrb.mxu3 %v302_v17  ;;  %v287_v15 = vld [vmem:[%s2509_s1 + $0x780] sm:$0xff]  ;;  %v33_v16 = vld [vmem:[%s2510_s0 + $0x68] sm:$0xff]  ;;  %v35_v17 = vld [vmem:[%s2510_s0 + $0x78] sm:$0xff] }
  0x6c   :  { %724 = vmatpush.msrb.mxu0 %v252_v18  ;;  %743 = vmatpush.msrb.mxu1 %v269_v19  ;;  %v317_v18 = vld [vmem:[%s2509_s1 + $0x870] sm:$0xff]  ;;  %v334_v19 = vld [vmem:[%s2509_s1 + $0x8f8] sm:$0xff] }
  0x6d   :  { %764 = vmatpush.msrb.mxu2 %v284_v20  ;;  %783 = vmatpush.msrb.mxu3 %v301_v21  ;;  %v349_v20 = vld [vmem:[%s2509_s1 + $0x970] sm:$0xff]  ;;  %v366_v21 = vld [vmem:[%s2509_s1 + $0x9f8] sm:$0xff] }
  0x6e   :  { %725 = vmatpush.msrb.mxu0 %v251_v22  ;;  %744 = vmatpush.msrb.mxu1 %v268_v23  ;;  %v316_v22 = vld [vmem:[%s2509_s1 + $0x868] sm:$0xff]  ;;  %v333_v23 = vld [vmem:[%s2509_s1 + $0x8f0] sm:$0xff] }
  0x6f   :  { %765 = vmatpush.msrb.mxu2 %v283_v24  ;;  %784 = vmatpush.msrb.mxu3 %v300_v25  ;;  %v348_v24 = vld [vmem:[%s2509_s1 + $0x968] sm:$0xff]  ;;  %v365_v25 = vld [vmem:[%s2509_s1 + $0x9f0] sm:$0xff] }
  0x70   :  { %726 = vmatpush.msrb.mxu0 %v250_v26  ;;  %745 = vmatpush.msrb.mxu1 %v267_v27  ;;  %v315_v26 = vld [vmem:[%s2509_s1 + $0x860] sm:$0xff]  ;;  %v332_v27 = vld [vmem:[%s2509_s1 + $0x8e8] sm:$0xff] }
  0x71   :  { %766 = vmatpush.msrb.mxu2 %v282_v28  ;;  %785 = vmatpush.msrb.mxu3 %v299_v29  ;;  %v347_v28 = vld [vmem:[%s2509_s1 + $0x960] sm:$0xff]  ;;  %v364_v29 = vld [vmem:[%s2509_s1 + $0x9e8] sm:$0xff] }
  0x72   :  { %727 = vmatpush.msrb.mxu0 %v249_v30  ;;  %746 = vmatpush.msrb.mxu1 %v266_v31  ;;  %v314_v30 = vld [vmem:[%s2509_s1 + $0x858] sm:$0xff]  ;;  %v331_v31 = vld [vmem:[%s2509_s1 + $0x8e0] sm:$0xff] }
  0x73   :  { %767 = vmatpush.msrb.mxu2 %v281_v32  ;;  %786 = vmatpush.msrb.mxu3 %v298_v33  ;;  %v346_v32 = vld [vmem:[%s2509_s1 + $0x958] sm:$0xff]  ;;  %v363_v33 = vld [vmem:[%s2509_s1 + $0x9e0] sm:$0xff] }
  0x74   :  { %728 = vmatpush.msrb.mxu0 %v248_v34  ;;  %747 = vmatpush.msrb.mxu1 %v265_v35  ;;  %v313_v34 = vld [vmem:[%s2509_s1 + $0x850] sm:$0xff]  ;;  %v330_v35 = vld [vmem:[%s2509_s1 + $0x8d8] sm:$0xff] }
  0x75   :  { %768 = vmatpush.msrb.mxu2 %v280_v36  ;;  %787 = vmatpush.msrb.mxu3 %v297_v37  ;;  %v345_v36 = vld [vmem:[%s2509_s1 + $0x950] sm:$0xff]  ;;  %v362_v37 = vld [vmem:[%s2509_s1 + $0x9d8] sm:$0xff] }
  0x76   :  { %729 = vmatpush.msrb.mxu0 %v247_v38  ;;  %748 = vmatpush.msrb.mxu1 %v264_v39  ;;  %v312_v38 = vld [vmem:[%s2509_s1 + $0x848] sm:$0xff]  ;;  %v329_v39 = vld [vmem:[%s2509_s1 + $0x8d0] sm:$0xff] }
  0x77   :  { %769 = vmatpush.msrb.mxu2 %v279_v40  ;;  %788 = vmatpush.msrb.mxu3 %v296_v41  ;;  %v344_v40 = vld [vmem:[%s2509_s1 + $0x948] sm:$0xff]  ;;  %v361_v41 = vld [vmem:[%s2509_s1 + $0x9d0] sm:$0xff] }
  0x78   :  { %730 = vmatpush.msrb.mxu0 %v246_v42  ;;  %749 = vmatpush.msrb.mxu1 %v263_v43  ;;  %v311_v42 = vld [vmem:[%s2509_s1 + $0x840] sm:$0xff]  ;;  %v328_v43 = vld [vmem:[%s2509_s1 + $0x8c8] sm:$0xff] }
  0x79   :  { %770 = vmatpush.msrb.mxu2 %v278_v44  ;;  %789 = vmatpush.msrb.mxu3 %v295_v45  ;;  %v343_v44 = vld [vmem:[%s2509_s1 + $0x940] sm:$0xff]  ;;  %v360_v45 = vld [vmem:[%s2509_s1 + $0x9c8] sm:$0xff] }
  0x7a   :  { %731 = vmatpush.msrb.mxu0 %v245_v46  ;;  %750 = vmatpush.msrb.mxu1 %v262_v47  ;;  %v310_v46 = vld [vmem:[%s2509_s1 + $0x838] sm:$0xff]  ;;  %v327_v47 = vld [vmem:[%s2509_s1 + $0x8c0] sm:$0xff] }
  0x7b   :  { %771 = vmatpush.msrb.mxu2 %v277_v48  ;;  %790 = vmatpush.msrb.mxu3 %v294_v49  ;;  %v342_v48 = vld [vmem:[%s2509_s1 + $0x938] sm:$0xff]  ;;  %v359_v49 = vld [vmem:[%s2509_s1 + $0x9c0] sm:$0xff] }
  0x7c   :  { %732 = vmatpush.msrb.mxu0 %v244_v50  ;;  %751 = vmatpush.msrb.mxu1 %v261_v51  ;;  %v309_v50 = vld [vmem:[%s2509_s1 + $0x830] sm:$0xff]  ;;  %v326_v51 = vld [vmem:[%s2509_s1 + $0x8b8] sm:$0xff] }
  0x7d   :  { %772 = vmatpush.msrb.mxu2 %v276_v52  ;;  %791 = vmatpush.msrb.mxu3 %v293_v53  ;;  %v341_v52 = vld [vmem:[%s2509_s1 + $0x930] sm:$0xff]  ;;  %v358_v53 = vld [vmem:[%s2509_s1 + $0x9b8] sm:$0xff] }
  0x7e   :  { %733 = vmatpush.msrb.mxu0 %v243_v54  ;;  %752 = vmatpush.msrb.mxu1 %v260_v55  ;;  %v308_v54 = vld [vmem:[%s2509_s1 + $0x828] sm:$0xff]  ;;  %v325_v55 = vld [vmem:[%s2509_s1 + $0x8b0] sm:$0xff] }
  0x7f   :  { %773 = vmatpush.msrb.mxu2 %v275_v56  ;;  %792 = vmatpush.msrb.mxu3 %v292_v57  ;;  %v340_v56 = vld [vmem:[%s2509_s1 + $0x928] sm:$0xff]  ;;  %v357_v57 = vld [vmem:[%s2509_s1 + $0x9b0] sm:$0xff] }
  0x80   :  { %734 = vmatpush.msrb.mxu0 %v242_v58  ;;  %753 = vmatpush.msrb.mxu1 %v259_v59  ;;  %v307_v58 = vld [vmem:[%s2509_s1 + $0x820] sm:$0xff]  ;;  %v324_v59 = vld [vmem:[%s2509_s1 + $0x8a8] sm:$0xff] }
  0x81   :  { %774 = vmatpush.msrb.mxu2 %v274_v60  ;;  %793 = vmatpush.msrb.mxu3 %v291_v61  ;;  %v339_v60 = vld [vmem:[%s2509_s1 + $0x920] sm:$0xff]  ;;  %v356_v61 = vld [vmem:[%s2509_s1 + $0x9a8] sm:$0xff] }
  0x82   :  { %735 = vmatpush.msrb.mxu0 %v241_v62  ;;  %754 = vmatpush.msrb.mxu1 %v258_v63  ;;  %v306_v62 = vld [vmem:[%s2509_s1 + $0x818] sm:$0xff]  ;;  %v323_v63 = vld [vmem:[%s2509_s1 + $0x8a0] sm:$0xff] }
  0x83   :  { %775 = vmatpush.msrb.mxu2 %v273_v0  ;;  %794 = vmatpush.msrb.mxu3 %v290_v1  ;;  %v338_v0 = vld [vmem:[%s2509_s1 + $0x918] sm:$0xff]  ;;  %v355_v1 = vld [vmem:[%s2509_s1 + $0x9a0] sm:$0xff] }
  0x84   :  { %736 = vmatpush.msrb.mxu0 %v240_v2  ;;  %755 = vmatpush.msrb.mxu1 %v257_v3  ;;  %v305_v2 = vld [vmem:[%s2509_s1 + $0x810] sm:$0xff]  ;;  %v322_v3 = vld [vmem:[%s2509_s1 + $0x898] sm:$0xff] }
  0x85   :  { %776 = vmatpush.msrb.mxu2 %v272_v4  ;;  %795 = vmatpush.msrb.mxu3 %v289_v5  ;;  %v337_v4 = vld [vmem:[%s2509_s1 + $0x910] sm:$0xff]  ;;  %v354_v5 = vld [vmem:[%s2509_s1 + $0x998] sm:$0xff] }
  0x86   :  { %737 = vmatpush.msrb.mxu0 %v239_v6  ;;  %756 = vmatpush.msrb.mxu1 %v256_v7  ;;  %v304_v6 = vld [vmem:[%s2509_s1 + $0x808] sm:$0xff]  ;;  %v321_v7 = vld [vmem:[%s2509_s1 + $0x890] sm:$0xff] }
  0x87   :  { %777 = vmatpush.msrb.mxu2 %v271_v8  ;;  %796 = vmatpush.msrb.mxu3 %v288_v9  ;;  %v336_v8 = vld [vmem:[%s2509_s1 + $0x908] sm:$0xff]  ;;  %v353_v9 = vld [vmem:[%s2509_s1 + $0x990] sm:$0xff] }
  0x88   :  { %738 = vmatmul.f32.vlgmr.msrb.gmra.mxu0 %v32_v10  ;;  %778 = vmatmul.f32.vlgmr.msrb.gmra.mxu2 %v34_v11  ;;  %v303_v10 = vld [vmem:[%s2509_s1 + $0x800] sm:$0xff]  ;;  %v320_v11 = vld [vmem:[%s2509_s1 + $0x888] sm:$0xff] }
  0x89   :  { %802 = vmatpush.msra.mxu0 %v318_v12  ;;  %842 = vmatpush.msra.mxu2 %v350_v13  ;;  %v335_v12 = vld [vmem:[%s2509_s1 + $0x900] sm:$0xff]  ;;  %v352_v13 = vld [vmem:[%s2509_s1 + $0x988] sm:$0xff] }
  0x8a   :  { %757 = vmatpush.msrb.mxu1 %v255_v14  ;;  %797 = vmatpush.msrb.mxu3 %v287_v15  ;;  %v36_v14 = vld [vmem:[%s2510_s0 + $0x80] sm:$0xff]  ;;  %v38_v15 = vld [vmem:[%s2510_s0 + $0x90] sm:$0xff] }
  0x8b   :  { %758 = vmatmul.f32.vlgmr.msrb.gmra.mxu1 %v33_v16  ;;  %798 = vmatmul.f32.vlgmr.msrb.gmra.mxu3 %v35_v17  ;;  %v382_v16 = vld [vmem:[%s2509_s1 + $0xa78] sm:$0xff] }
  0x8c   :  { %803 = vmatpush.msra.mxu0 %v317_v18  ;;  %822 = vmatpush.msra.mxu1 %v334_v19  ;;  %v414_v17 = vld [vmem:[%s2509_s1 + $0xb78] sm:$0xff]  ;;  %v319_v18 = vld [vmem:[%s2509_s1 + $0x880] sm:$0xff] }
  0x8d   :  { %843 = vmatpush.msra.mxu2 %v349_v20  ;;  %862 = vmatpush.msra.mxu3 %v366_v21  ;;  %v351_v19 = vld [vmem:[%s2509_s1 + $0x980] sm:$0xff]  ;;  %v37_v20 = vld [vmem:[%s2510_s0 + $0x88] sm:$0xff]  ;;  %v39_v21 = vld [vmem:[%s2510_s0 + $0x98] sm:$0xff] }
  0x8e   :  { %804 = vmatpush.msra.mxu0 %v316_v22  ;;  %823 = vmatpush.msra.mxu1 %v333_v23  ;;  %v381_v22 = vld [vmem:[%s2509_s1 + $0xa70] sm:$0xff]  ;;  %v398_v23 = vld [vmem:[%s2509_s1 + $0xaf8] sm:$0xff] }
  0x8f   :  { %844 = vmatpush.msra.mxu2 %v348_v24  ;;  %863 = vmatpush.msra.mxu3 %v365_v25  ;;  %v413_v24 = vld [vmem:[%s2509_s1 + $0xb70] sm:$0xff]  ;;  %v430_v25 = vld [vmem:[%s2509_s1 + $0xbf8] sm:$0xff] }
  0x90   :  { %805 = vmatpush.msra.mxu0 %v315_v26  ;;  %824 = vmatpush.msra.mxu1 %v332_v27  ;;  %v380_v26 = vld [vmem:[%s2509_s1 + $0xa68] sm:$0xff]  ;;  %v397_v27 = vld [vmem:[%s2509_s1 + $0xaf0] sm:$0xff] }
  0x91   :  { %845 = vmatpush.msra.mxu2 %v347_v28  ;;  %864 = vmatpush.msra.mxu3 %v364_v29  ;;  %v412_v28 = vld [vmem:[%s2509_s1 + $0xb68] sm:$0xff]  ;;  %v429_v29 = vld [vmem:[%s2509_s1 + $0xbf0] sm:$0xff] }
  0x92   :  { %806 = vmatpush.msra.mxu0 %v314_v30  ;;  %825 = vmatpush.msra.mxu1 %v331_v31  ;;  %v379_v30 = vld [vmem:[%s2509_s1 + $0xa60] sm:$0xff]  ;;  %v396_v31 = vld [vmem:[%s2509_s1 + $0xae8] sm:$0xff] }
  0x93   :  { %846 = vmatpush.msra.mxu2 %v346_v32  ;;  %865 = vmatpush.msra.mxu3 %v363_v33  ;;  %v411_v32 = vld [vmem:[%s2509_s1 + $0xb60] sm:$0xff]  ;;  %v428_v33 = vld [vmem:[%s2509_s1 + $0xbe8] sm:$0xff] }
  0x94   :  { %807 = vmatpush.msra.mxu0 %v313_v34  ;;  %826 = vmatpush.msra.mxu1 %v330_v35  ;;  %v378_v34 = vld [vmem:[%s2509_s1 + $0xa58] sm:$0xff]  ;;  %v395_v35 = vld [vmem:[%s2509_s1 + $0xae0] sm:$0xff] }
  0x95   :  { %847 = vmatpush.msra.mxu2 %v345_v36  ;;  %866 = vmatpush.msra.mxu3 %v362_v37  ;;  %v410_v36 = vld [vmem:[%s2509_s1 + $0xb58] sm:$0xff]  ;;  %v427_v37 = vld [vmem:[%s2509_s1 + $0xbe0] sm:$0xff] }
  0x96   :  { %808 = vmatpush.msra.mxu0 %v312_v38  ;;  %827 = vmatpush.msra.mxu1 %v329_v39  ;;  %v377_v38 = vld [vmem:[%s2509_s1 + $0xa50] sm:$0xff]  ;;  %v394_v39 = vld [vmem:[%s2509_s1 + $0xad8] sm:$0xff] }
  0x97   :  { %848 = vmatpush.msra.mxu2 %v344_v40  ;;  %867 = vmatpush.msra.mxu3 %v361_v41  ;;  %v409_v40 = vld [vmem:[%s2509_s1 + $0xb50] sm:$0xff]  ;;  %v426_v41 = vld [vmem:[%s2509_s1 + $0xbd8] sm:$0xff] }
  0x98   :  { %809 = vmatpush.msra.mxu0 %v311_v42  ;;  %828 = vmatpush.msra.mxu1 %v328_v43  ;;  %v376_v42 = vld [vmem:[%s2509_s1 + $0xa48] sm:$0xff]  ;;  %v393_v43 = vld [vmem:[%s2509_s1 + $0xad0] sm:$0xff] }
  0x99   :  { %849 = vmatpush.msra.mxu2 %v343_v44  ;;  %868 = vmatpush.msra.mxu3 %v360_v45  ;;  %v408_v44 = vld [vmem:[%s2509_s1 + $0xb48] sm:$0xff]  ;;  %v425_v45 = vld [vmem:[%s2509_s1 + $0xbd0] sm:$0xff] }
  0x9a   :  { %810 = vmatpush.msra.mxu0 %v310_v46  ;;  %829 = vmatpush.msra.mxu1 %v327_v47  ;;  %v375_v46 = vld [vmem:[%s2509_s1 + $0xa40] sm:$0xff]  ;;  %v392_v47 = vld [vmem:[%s2509_s1 + $0xac8] sm:$0xff] }
  0x9b   :  { %850 = vmatpush.msra.mxu2 %v342_v48  ;;  %869 = vmatpush.msra.mxu3 %v359_v49  ;;  %v407_v48 = vld [vmem:[%s2509_s1 + $0xb40] sm:$0xff]  ;;  %v424_v49 = vld [vmem:[%s2509_s1 + $0xbc8] sm:$0xff] }
  0x9c   :  { %811 = vmatpush.msra.mxu0 %v309_v50  ;;  %830 = vmatpush.msra.mxu1 %v326_v51  ;;  %v374_v50 = vld [vmem:[%s2509_s1 + $0xa38] sm:$0xff]  ;;  %v391_v51 = vld [vmem:[%s2509_s1 + $0xac0] sm:$0xff] }
  0x9d   :  { %851 = vmatpush.msra.mxu2 %v341_v52  ;;  %870 = vmatpush.msra.mxu3 %v358_v53  ;;  %v406_v52 = vld [vmem:[%s2509_s1 + $0xb38] sm:$0xff]  ;;  %v423_v53 = vld [vmem:[%s2509_s1 + $0xbc0] sm:$0xff] }
  0x9e   :  { %812 = vmatpush.msra.mxu0 %v308_v54  ;;  %831 = vmatpush.msra.mxu1 %v325_v55  ;;  %v373_v54 = vld [vmem:[%s2509_s1 + $0xa30] sm:$0xff]  ;;  %v390_v55 = vld [vmem:[%s2509_s1 + $0xab8] sm:$0xff] }
  0x9f   :  { %852 = vmatpush.msra.mxu2 %v340_v56  ;;  %871 = vmatpush.msra.mxu3 %v357_v57  ;;  %v405_v56 = vld [vmem:[%s2509_s1 + $0xb30] sm:$0xff]  ;;  %v422_v57 = vld [vmem:[%s2509_s1 + $0xbb8] sm:$0xff] }
  0xa0   :  { %813 = vmatpush.msra.mxu0 %v307_v58  ;;  %832 = vmatpush.msra.mxu1 %v324_v59  ;;  %v372_v58 = vld [vmem:[%s2509_s1 + $0xa28] sm:$0xff]  ;;  %v389_v59 = vld [vmem:[%s2509_s1 + $0xab0] sm:$0xff] }
  0xa1   :  { %853 = vmatpush.msra.mxu2 %v339_v60  ;;  %872 = vmatpush.msra.mxu3 %v356_v61  ;;  %v404_v60 = vld [vmem:[%s2509_s1 + $0xb28] sm:$0xff]  ;;  %v421_v61 = vld [vmem:[%s2509_s1 + $0xbb0] sm:$0xff] }
  0xa2   :  { %814 = vmatpush.msra.mxu0 %v306_v62  ;;  %833 = vmatpush.msra.mxu1 %v323_v63  ;;  %v371_v62 = vld [vmem:[%s2509_s1 + $0xa20] sm:$0xff]  ;;  %v388_v63 = vld [vmem:[%s2509_s1 + $0xaa8] sm:$0xff] }
  0xa3   :  { %854 = vmatpush.msra.mxu2 %v338_v0  ;;  %873 = vmatpush.msra.mxu3 %v355_v1  ;;  %v403_v0 = vld [vmem:[%s2509_s1 + $0xb20] sm:$0xff]  ;;  %v420_v1 = vld [vmem:[%s2509_s1 + $0xba8] sm:$0xff] }
  0xa4   :  { %815 = vmatpush.msra.mxu0 %v305_v2  ;;  %834 = vmatpush.msra.mxu1 %v322_v3  ;;  %v370_v2 = vld [vmem:[%s2509_s1 + $0xa18] sm:$0xff]  ;;  %v387_v3 = vld [vmem:[%s2509_s1 + $0xaa0] sm:$0xff] }
  0xa5   :  { %855 = vmatpush.msra.mxu2 %v337_v4  ;;  %874 = vmatpush.msra.mxu3 %v354_v5  ;;  %v402_v4 = vld [vmem:[%s2509_s1 + $0xb18] sm:$0xff]  ;;  %v419_v5 = vld [vmem:[%s2509_s1 + $0xba0] sm:$0xff] }
  0xa6   :  { %816 = vmatpush.msra.mxu0 %v304_v6  ;;  %835 = vmatpush.msra.mxu1 %v321_v7  ;;  %v369_v6 = vld [vmem:[%s2509_s1 + $0xa10] sm:$0xff]  ;;  %v386_v7 = vld [vmem:[%s2509_s1 + $0xa98] sm:$0xff] }
  0xa7   :  { %856 = vmatpush.msra.mxu2 %v336_v8  ;;  %875 = vmatpush.msra.mxu3 %v353_v9  ;;  %v401_v8 = vld [vmem:[%s2509_s1 + $0xb10] sm:$0xff]  ;;  %v418_v9 = vld [vmem:[%s2509_s1 + $0xb98] sm:$0xff] }
  0xa8   :  { %817 = vmatpush.msra.mxu0 %v303_v10  ;;  %836 = vmatpush.msra.mxu1 %v320_v11  ;;  %v368_v10 = vld [vmem:[%s2509_s1 + $0xa08] sm:$0xff]  ;;  %v385_v11 = vld [vmem:[%s2509_s1 + $0xa90] sm:$0xff] }
  0xa9   :  { %857 = vmatpush.msra.mxu2 %v335_v12  ;;  %876 = vmatpush.msra.mxu3 %v352_v13  ;;  %v400_v12 = vld [vmem:[%s2509_s1 + $0xb08] sm:$0xff]  ;;  %v417_v13 = vld [vmem:[%s2509_s1 + $0xb90] sm:$0xff] }
  0xaa   :  { %818 = vmatmul.f32.vlgmr.msra.gmra.mxu0 %v36_v14  ;;  %858 = vmatmul.f32.vlgmr.msra.gmra.mxu2 %v38_v15  ;;  %v367_v14 = vld [vmem:[%s2509_s1 + $0xa00] sm:$0xff]  ;;  %v384_v15 = vld [vmem:[%s2509_s1 + $0xa88] sm:$0xff] }
  0xab   :  { %882 = vmatpush.msrb.mxu0 %v382_v16  ;;  %922 = vmatpush.msrb.mxu2 %v414_v17  ;;  %v399_v16 = vld [vmem:[%s2509_s1 + $0xb00] sm:$0xff]  ;;  %v416_v17 = vld [vmem:[%s2509_s1 + $0xb88] sm:$0xff] }
  0xac   :  { %837 = vmatpush.msra.mxu1 %v319_v18  ;;  %877 = vmatpush.msra.mxu3 %v351_v19  ;;  %v40_v18 = vld [vmem:[%s2510_s0 + $0xa0] sm:$0xff]  ;;  %v42_v19 = vld [vmem:[%s2510_s0 + $0xb0] sm:$0xff] }
  0xad   :  { %838 = vmatmul.f32.vlgmr.msra.gmra.mxu1 %v37_v20  ;;  %878 = vmatmul.f32.vlgmr.msra.gmra.mxu3 %v39_v21  ;;  %v446_v20 = vld [vmem:[%s2509_s1 + $0xc78] sm:$0xff]  ;;  %v383_v21 = vld [vmem:[%s2509_s1 + $0xa80] sm:$0xff] }
  0xae   :  { %883 = vmatpush.msrb.mxu0 %v381_v22  ;;  %902 = vmatpush.msrb.mxu1 %v398_v23  ;;  %v415_v22 = vld [vmem:[%s2509_s1 + $0xb80] sm:$0xff]  ;;  %v41_v23 = vld [vmem:[%s2510_s0 + $0xa8] sm:$0xff] }
  0xaf   :  { %923 = vmatpush.msrb.mxu2 %v413_v24  ;;  %942 = vmatpush.msrb.mxu3 %v430_v25  ;;  %v43_v24 = vld [vmem:[%s2510_s0 + $0xb8] sm:$0xff]  ;;  %v445_v25 = vld [vmem:[%s2509_s1 + $0xc70] sm:$0xff] }
  0xb0   :  { %884 = vmatpush.msrb.mxu0 %v380_v26  ;;  %903 = vmatpush.msrb.mxu1 %v397_v27  ;;  %v462_v26 = vld [vmem:[%s2509_s1 + $0xcf8] sm:$0xff]  ;;  %v469_v27 = vld [vmem:[%s2509_s1 + $0xd30] sm:$0xf] }
  0xb1   :  { %924 = vmatpush.msrb.mxu2 %v412_v28  ;;  %943 = vmatpush.msrb.mxu3 %v429_v29  ;;  %v444_v28 = vld [vmem:[%s2509_s1 + $0xc68] sm:$0xff]  ;;  %v461_v29 = vld [vmem:[%s2509_s1 + $0xcf0] sm:$0xff] }
  0xb2   :  { %885 = vmatpush.msrb.mxu0 %v379_v30  ;;  %904 = vmatpush.msrb.mxu1 %v396_v31  ;;  %v468_v30 = vld [vmem:[%s2509_s1 + $0xd28] sm:$0xff]  ;;  %v443_v31 = vld [vmem:[%s2509_s1 + $0xc60] sm:$0xff] }
  0xb3   :  { %925 = vmatpush.msrb.mxu2 %v411_v32  ;;  %944 = vmatpush.msrb.mxu3 %v428_v33  ;;  %v460_v32 = vld [vmem:[%s2509_s1 + $0xce8] sm:$0xff]  ;;  %v467_v33 = vld [vmem:[%s2509_s1 + $0xd20] sm:$0xff] }
  0xb4   :  { %886 = vmatpush.msrb.mxu0 %v378_v34  ;;  %905 = vmatpush.msrb.mxu1 %v395_v35  ;;  %v442_v34 = vld [vmem:[%s2509_s1 + $0xc58] sm:$0xff]  ;;  %v459_v35 = vld [vmem:[%s2509_s1 + $0xce0] sm:$0xff] }
  0xb5   :  { %926 = vmatpush.msrb.mxu2 %v410_v36  ;;  %945 = vmatpush.msrb.mxu3 %v427_v37  ;;  %v466_v36 = vld [vmem:[%s2509_s1 + $0xd18] sm:$0xff]  ;;  %v441_v37 = vld [vmem:[%s2509_s1 + $0xc50] sm:$0xff] }
  0xb6   :  { %887 = vmatpush.msrb.mxu0 %v377_v38  ;;  %906 = vmatpush.msrb.mxu1 %v394_v39  ;;  %v458_v38 = vld [vmem:[%s2509_s1 + $0xcd8] sm:$0xff]  ;;  %v465_v39 = vld [vmem:[%s2509_s1 + $0xd10] sm:$0xff] }
  0xb7   :  { %927 = vmatpush.msrb.mxu2 %v409_v40  ;;  %946 = vmatpush.msrb.mxu3 %v426_v41  ;;  %v440_v40 = vld [vmem:[%s2509_s1 + $0xc48] sm:$0xff]  ;;  %v457_v41 = vld [vmem:[%s2509_s1 + $0xcd0] sm:$0xff] }
  0xb8   :  { %888 = vmatpush.msrb.mxu0 %v376_v42  ;;  %907 = vmatpush.msrb.mxu1 %v393_v43  ;;  %v464_v42 = vld [vmem:[%s2509_s1 + $0xd08] sm:$0xff]  ;;  %v439_v43 = vld [vmem:[%s2509_s1 + $0xc40] sm:$0xff] }
  0xb9   :  { %928 = vmatpush.msrb.mxu2 %v408_v44  ;;  %947 = vmatpush.msrb.mxu3 %v425_v45  ;;  %v456_v44 = vld [vmem:[%s2509_s1 + $0xcc8] sm:$0xff]  ;;  %v463_v45 = vld [vmem:[%s2509_s1 + $0xd00] sm:$0xff] }
  0xba   :  { %889 = vmatpush.msrb.mxu0 %v375_v46  ;;  %908 = vmatpush.msrb.mxu1 %v392_v47  ;;  %v438_v46 = vld [vmem:[%s2509_s1 + $0xc38] sm:$0xff]  ;;  %v46_v47 = vld [vmem:[%s2510_s0 + $0xd0] sm:$0xff] }
  0xbb   :  { %929 = vmatpush.msrb.mxu2 %v407_v48  ;;  %948 = vmatpush.msrb.mxu3 %v424_v49  ;;  %v455_v48 = vld [vmem:[%s2509_s1 + $0xcc0] sm:$0xff]  ;;  %v437_v49 = vld [vmem:[%s2509_s1 + $0xc30] sm:$0xff] }
  0xbc   :  { %890 = vmatpush.msrb.mxu0 %v374_v50  ;;  %909 = vmatpush.msrb.mxu1 %v391_v51  ;;  %v454_v50 = vld [vmem:[%s2509_s1 + $0xcb8] sm:$0xff]  ;;  %v436_v51 = vld [vmem:[%s2509_s1 + $0xc28] sm:$0xff] }
  0xbd   :  { %930 = vmatpush.msrb.mxu2 %v406_v52  ;;  %949 = vmatpush.msrb.mxu3 %v423_v53  ;;  %v453_v52 = vld [vmem:[%s2509_s1 + $0xcb0] sm:$0xff]  ;;  %v435_v53 = vld [vmem:[%s2509_s1 + $0xc20] sm:$0xff] }
  0xbe   :  { %891 = vmatpush.msrb.mxu0 %v373_v54  ;;  %910 = vmatpush.msrb.mxu1 %v390_v55  ;;  %v452_v54 = vld [vmem:[%s2509_s1 + $0xca8] sm:$0xff]  ;;  %v434_v55 = vld [vmem:[%s2509_s1 + $0xc18] sm:$0xff] }
  0xbf   :  { %931 = vmatpush.msrb.mxu2 %v405_v56  ;;  %950 = vmatpush.msrb.mxu3 %v422_v57  ;;  %v451_v56 = vld [vmem:[%s2509_s1 + $0xca0] sm:$0xff]  ;;  %v433_v57 = vld [vmem:[%s2509_s1 + $0xc10] sm:$0xff] }
  0xc0   :  { %892 = vmatpush.msrb.mxu0 %v372_v58  ;;  %911 = vmatpush.msrb.mxu1 %v389_v59  ;;  %v450_v58 = vld [vmem:[%s2509_s1 + $0xc98] sm:$0xff]  ;;  %v432_v59 = vld [vmem:[%s2509_s1 + $0xc08] sm:$0xff] }
  0xc1   :  { %932 = vmatpush.msrb.mxu2 %v404_v60  ;;  %951 = vmatpush.msrb.mxu3 %v421_v61  ;;  %v449_v60 = vld [vmem:[%s2509_s1 + $0xc90] sm:$0xff]  ;;  %v431_v61 = vld [vmem:[%s2509_s1 + $0xc00] sm:$0xff] }
  0xc2   :  { %893 = vmatpush.msrb.mxu0 %v371_v62  ;;  %912 = vmatpush.msrb.mxu1 %v388_v63  ;;  %v448_v62 = vld [vmem:[%s2509_s1 + $0xc88] sm:$0xff]  ;;  %v44_v63 = vld [vmem:[%s2510_s0 + $0xc0] sm:$0xff] }
  0xc3   :  { %933 = vmatpush.msrb.mxu2 %v403_v0  ;;  %952 = vmatpush.msrb.mxu3 %v420_v1  ;;  %v447_v0 = vld [vmem:[%s2509_s1 + $0xc80] sm:$0xff]  ;;  %v45_v1 = vld [vmem:[%s2510_s0 + $0xc8] sm:$0xff] }
  0xc4   :  { %894 = vmatpush.msrb.mxu0 %v370_v2  ;;  %913 = vmatpush.msrb.mxu1 %v387_v3  ;;  %v1077_v2 = vld [vmem:[%s2511_s2] ss:$0 sm:$0xff]  ;;  %v499_v3 = vpop.f32.mrf.mxu0 }
  0xc5   :  { %934 = vmatpush.msrb.mxu2 %v402_v4  ;;  %953 = vmatpush.msrb.mxu3 %v419_v5  ;;  %v500_v4 = vadd.f32 %v1077_v2, %v499_v3  ;;  %v519_v5 = vpop.f32.mrf.mxu1 }
  0xc6   :  { %895 = vmatpush.msrb.mxu0 %v369_v6  ;;  %914 = vmatpush.msrb.mxu1 %v386_v7  ;;  %v539_v7 = vpop.f32.mrf.mxu2 }
  0xc7   :  { %935 = vmatpush.msrb.mxu2 %v401_v8  ;;  %954 = vmatpush.msrb.mxu3 %v418_v9  ;;  %v520_v6 = vadd.f32 %v519_v5, %v500_v4  ;;  %v559_v9 = vpop.f32.mrf.mxu3 }
  0xc8   :  { %896 = vmatpush.msrb.mxu0 %v368_v10  ;;  %915 = vmatpush.msrb.mxu1 %v385_v11 }
  0xc9   :  { %936 = vmatpush.msrb.mxu2 %v400_v12  ;;  %955 = vmatpush.msrb.mxu3 %v417_v13  ;;  %v540_v8 = vadd.f32 %v539_v7, %v520_v6  ;;  %v1078_v7 = vld [vmem:[%s2512_s4] ss:$0 sm:$0xff] }
  0xca   :  { %897 = vmatpush.msrb.mxu0 %v367_v14  ;;  %916 = vmatpush.msrb.mxu1 %v384_v15 }
  0xcb   :  { %937 = vmatpush.msrb.mxu2 %v399_v16  ;;  %956 = vmatpush.msrb.mxu3 %v416_v17  ;;  %v560_v10 = vadd.f32 %v559_v9, %v540_v8  ;;  %v1035_v16 = vld [vmem:[%s2513_s3 + $0x60] sm:$0xf]  ;;  %v1034_v17 = vld [vmem:[%s2513_s3 + $0x58] sm:$0xff] }
  0xcc   :  { %898 = vmatmul.f32.vlgmr.msrb.gmra.mxu0 %v40_v18  ;;  %938 = vmatmul.f32.vlgmr.msrb.gmra.mxu2 %v42_v19  ;;  %v579_v11 = vpop.f32.mrf.mxu0 }
  0xcd   :  { %962 = vmatpush.msra.mxu0 %v446_v20  ;;  %917 = vmatpush.msrb.mxu1 %v383_v21  ;;  %v580_v12 = vadd.f32 %v579_v11, %v560_v10  ;;  %v599_v13 = vpop.f32.mrf.mxu1  ;;  %v1033_v20 = vld [vmem:[%s2513_s3 + $0x50] sm:$0xff] }
  0xce   :  { %957 = vmatpush.msrb.mxu3 %v415_v22  ;;  %918 = vmatmul.f32.vlgmr.msrb.gmra.mxu1 %v41_v23  ;;  %v619_v15 = vpop.f32.mrf.mxu2  ;;  %v1032_v22 = vld [vmem:[%s2513_s3 + $0x48] sm:$0xff] }
  0xcf   :  { %958 = vmatmul.f32.vlgmr.msrb.gmra.mxu3 %v43_v24  ;;  %963 = vmatpush.msra.mxu0 %v445_v25  ;;  %v600_v14 = vadd.f32 %v599_v13, %v580_v12  ;;  %v1031_v24 = vld [vmem:[%s2513_s3 + $0x40] sm:$0xff] }
  0xd0   :  { %982 = vmatpush.msra.mxu1 %v462_v26  ;;  %1073 = vmatpush.msk.msra.mxu2 %vm478_vm0, %v469_v27  ;;  %v639_v19 = vpop.f32.mrf.mxu3  ;;  %v1030_v27 = vld [vmem:[%s2513_s3 + $0x38] sm:$0xff] }
  0xd1   :  { %964 = vmatpush.msra.mxu0 %v444_v28  ;;  %v620_v18 = vadd.f32 %v619_v15, %v600_v14  ;;  %1075 = vmatpush.msk.msra.mxu3 %vm478_vm0, %v1035_v16 }
  0xd2   :  { %983 = vmatpush.msra.mxu1 %v461_v29  ;;  %1012 = vmatpush.msra.mxu2 %v468_v30  ;;  %v1029_v29 = vld [vmem:[%s2513_s3 + $0x30] sm:$0xff] }
  0xd3   :  { %965 = vmatpush.msra.mxu0 %v443_v31  ;;  %1051 = vmatpush.msra.mxu3 %v1034_v17  ;;  %v640_v23 = vadd.f32 %v639_v19, %v620_v18  ;;  %v1028_v31 = vld [vmem:[%s2513_s3 + $0x28] sm:$0xff] }
  0xd4   :  { %984 = vmatpush.msra.mxu1 %v460_v32  ;;  %1013 = vmatpush.msra.mxu2 %v467_v33 }
  0xd5   :  { %966 = vmatpush.msra.mxu0 %v442_v34  ;;  %1052 = vmatpush.msra.mxu3 %v1033_v20 }
  0xd6   :  { %985 = vmatpush.msra.mxu1 %v459_v35  ;;  %1014 = vmatpush.msra.mxu2 %v466_v36 }
  0xd7   :  { %967 = vmatpush.msra.mxu0 %v441_v37  ;;  %1053 = vmatpush.msra.mxu3 %v1032_v22 }
  0xd8   :  { %986 = vmatpush.msra.mxu1 %v458_v38  ;;  %1015 = vmatpush.msra.mxu2 %v465_v39  ;;  %v1027_v39 = vld [vmem:[%s2513_s3 + $0x20] sm:$0xff] }
  0xd9   :  { %968 = vmatpush.msra.mxu0 %v440_v40  ;;  %1054 = vmatpush.msra.mxu3 %v1031_v24 }
  0xda   :  { %987 = vmatpush.msra.mxu1 %v457_v41  ;;  %1016 = vmatpush.msra.mxu2 %v464_v42  ;;  %v1026_v41 = vld [vmem:[%s2513_s3 + $0x18] sm:$0xff] }
  0xdb   :  { %969 = vmatpush.msra.mxu0 %v439_v43  ;;  %1055 = vmatpush.msra.mxu3 %v1030_v27 }
  0xdc   :  { %988 = vmatpush.msra.mxu1 %v456_v44  ;;  %1017 = vmatpush.msra.mxu2 %v463_v45  ;;  %v1025_v44 = vld [vmem:[%s2513_s3 + $0x10] sm:$0xff] }
  0xdd   :  { %970 = vmatpush.msra.mxu0 %v438_v46  ;;  %1074 = vmatmul.msk.f32.vlgmr.msra.gmra.mxu2 %vm474_vm1, %v46_v47  ;;  %v1024_v46 = vld [vmem:[%s2513_s3 + $0x8] sm:$0xff] }
  0xde   :  { %989 = vmatpush.msra.mxu1 %v455_v48  ;;  %1056 = vmatpush.msra.mxu3 %v1029_v29  ;;  %v1023_v48 = vld [vmem:[%s2513_s3] sm:$0xff] }
  0xdf   :  { %971 = vmatpush.msra.mxu0 %v437_v49 }
  0xe0   :  { %990 = vmatpush.msra.mxu1 %v454_v50  ;;  %1057 = vmatpush.msra.mxu3 %v1028_v31 }
  0xe1   :  { %972 = vmatpush.msra.mxu0 %v436_v51 }
  0xe2   :  { %991 = vmatpush.msra.mxu1 %v453_v52  ;;  %1058 = vmatpush.msra.mxu3 %v1027_v39 }
  0xe3   :  { %973 = vmatpush.msra.mxu0 %v435_v53  ;;  %v659_v21 = vpop.f32.mrf.mxu0 }
  0xe4   :  { %992 = vmatpush.msra.mxu1 %v452_v54  ;;  %v660_v25 = vadd.f32 %v659_v21, %v640_v23  ;;  %1059 = vmatpush.msra.mxu3 %v1026_v41 }
  0xe5   :  { %974 = vmatpush.msra.mxu0 %v434_v55 }
  0xe6   :  { %993 = vmatpush.msra.mxu1 %v451_v56  ;;  %v679_v26 = vpop.f32.mrf.mxu1  ;;  %1060 = vmatpush.msra.mxu3 %v1025_v44 }
  0xe7   :  { %975 = vmatpush.msra.mxu0 %v433_v57  ;;  %v680_v30 = vadd.f32 %v679_v26, %v660_v25 }
  0xe8   :  { %994 = vmatpush.msra.mxu1 %v450_v58  ;;  %1061 = vmatpush.msra.mxu3 %v1024_v46 }
  0xe9   :  { %976 = vmatpush.msra.mxu0 %v432_v59  ;;  %v699_v28 = vpop.f32.mrf.mxu2 }
  0xea   :  { %995 = vmatpush.msra.mxu1 %v449_v60  ;;  %v700_v32 = vadd.f32 %v699_v28, %v680_v30  ;;  %1062 = vmatpush.msra.mxu3 %v1023_v48 }
  0xeb   :  { %977 = vmatpush.msra.mxu0 %v431_v61 }
  0xec   :  { %996 = vmatpush.msra.mxu1 %v448_v62  ;;  %978 = vmatmul.f32.vlgmr.msra.gmra.mxu0 %v44_v63  ;;  %v719_v33 = vpop.f32.mrf.mxu3 }
  0xed   :  { %v720_v35 = vadd.f32 %v719_v33, %v700_v32 }
  0xee   :  { %997 = vmatpush.msra.mxu1 %v447_v0 }
  0xef   :  { %998 = vmatmul.f32.vlgmr.msra.gmra.mxu1 %v45_v1 }
 0x105   :  { %v739_v34 = vpop.f32.mrf.mxu0 }
 0x106   :  { %v740_v36 = vadd.f32 %v739_v34, %v720_v35 }
 0x108   :  { %v759_v37 = vpop.f32.mrf.mxu1 }
 0x109   :  { %v760_v40 = vadd.f32 %v759_v37, %v740_v36 }
 0x10b   :  { %v779_v38 = vpop.f32.mrf.mxu2 }
 0x10c   :  { %v780_v42 = vadd.f32 %v779_v38, %v760_v40 }
 0x10e   :  { %v799_v43 = vpop.f32.mrf.mxu3 }
 0x10f   :  { %v800_v47 = vadd.f32 %v799_v43, %v780_v42 }
 0x127   :  { %v819_v45 = vpop.f32.mrf.mxu0 }
 0x128   :  { %v820_v49 = vadd.f32 %v819_v45, %v800_v47 }
 0x12a   :  { %v839_v50 = vpop.f32.mrf.mxu1 }
 0x12b   :  { %v840_v52 = vadd.f32 %v839_v50, %v820_v49 }
 0x12d   :  { %v859_v51 = vpop.f32.mrf.mxu2 }
 0x12e   :  { %v860_v53 = vadd.f32 %v859_v51, %v840_v52 }
 0x130   :  { %v879_v54 = vpop.f32.mrf.mxu3 }
 0x131   :  { %v880_v56 = vadd.f32 %v879_v54, %v860_v53 }
 0x149   :  { %v899_v55 = vpop.f32.mrf.mxu0 }
 0x14a   :  { %v900_v57 = vadd.f32 %v899_v55, %v880_v56 }
 0x14b   :  { %v919_v58 = vpop.f32.mrf.mxu1 }
 0x14c   :  { %v920_v60 = vadd.f32 %v919_v58, %v900_v57 }
 0x14f   :  { %v939_v59 = vpop.f32.mrf.mxu2 }
 0x150   :  { %v940_v61 = vadd.f32 %v939_v59, %v920_v60 }
 0x152   :  { %v959_v62 = vpop.f32.mrf.mxu3 }
 0x153   :  { %v960_v63 = vadd.f32 %v959_v62, %v940_v61 }
 0x160   :  { %v1019_v3 = vpop.f32.mrf.mxu2 }
 0x169   :  { %v979_v0 = vpop.f32.mrf.mxu0 }
 0x16a   :  { %v980_v1 = vadd.f32 %v979_v0, %v960_v63 }
 0x16c   :  { %v999_v2 = vpop.f32.mrf.mxu1 }
 0x16d   :  { %v1000_v4 = vadd.f32 %v999_v2, %v980_v1 }
 0x16f   :  { %v1020_v5 = vadd.f32 %v1019_v3, %v1000_v4 }
 0x171   :  { %v1022_v6 = vmax.f32 %v1020_v5, 0.0 }
 0x173   :  { %1076 = vmatmul.msk.f32.vlgmr.msra.gmra.mxu3 %vm1040_vm2, %v1022_v6 }
 0x1f6   :  { %v1064_v8 = vpop.f32.mrf.mxu3 }
 0x1f7   :  { %v1065_v9 = vadd.f32 %v1078_v7, %v1064_v8 }
 0x1f9   :  { %1068 = vst.msk [vmem:[%s2514_s5] sm:$0xff] %vm1067_vm3, %v1065_v9 }

// kernel: cnn1_forward.2
= control target key start
LH: loop header
LB: loop body
LE: loop exit
PB: predicated region body
PF: predicated region fallthrough
CT: control target
= control target key end

     0   :  { %vm69_vm0 = vcmask 1040384   ;;  %v3142_v3 = vmov 0   ;;  %vm59_vm1 = vcmask 203776   ;;  %s3143_s26 = smov 87   ;;  %vm280_vm2 = vcmask 711680   ;;  %s5627_s0 = inlined_call_operand.vmem [shape: f32[8,25,676], index: 0, kind: input, shape index: {}]   ;;  %s5628_s1 = inlined_call_operand.vmem [shape: f32[20,25], index: 1, kind: input, shape index: {}]   ;;  %s5629_s2 = inlined_call_operand.vmem [shape: f32[20,1], index: 2, kind: input, shape index: {}]   ;;  %s5630_s3 = inlined_call_operand.vmem [shape: f32[8,20,169], index: 3, kind: output, shape index: {}]  }
   0x1   :  { %v38_v0 = vld [vmem:[%s5627_s0 + $0x90] sm:$0x1]  ;;  %v39_v1 = vld [vmem:[%s5627_s0 + $0x98] sm:$0x1]  ;;  %v40_v2 = vld [vmem:[%s5627_s0 + $0xa0] sm:$0x1]  ;;  %3137 = vset.pattern.permute.xlu0 %v3142_v3  ;;  %3138 = vset.pattern.permute.xlu1 %v3142_v3 }
   0x2   :  { %2732 = vmatpush.msk.msra.mxu0 %vm69_vm0, %v38_v0  ;;  %2736 = vmatpush.msk.msra.mxu1 %vm69_vm0, %v39_v1  ;;  %v41_v4 = vld [vmem:[%s5627_s0 + $0xa8] sm:$0x1]  ;;  %v32_v5 = vld [vmem:[%s5627_s0 + $0x60] sm:$0xff]  ;;  %v34_v7 = vld [vmem:[%s5627_s0 + $0x70] sm:$0xff]  ;;  %vm359_vm3 = vcmask 375808   ;;  %vm376_vm4 = vcmask 334848  }
   0x3   :  { %v33_v6 = vld [vmem:[%s5627_s0 + $0x68] sm:$0xff]  ;;  %2740 = vmatpush.msk.msra.mxu2 %vm69_vm0, %v40_v2  ;;  %2744 = vmatpush.msk.msra.mxu3 %vm69_vm0, %v41_v4  ;;  %v35_v8 = vld [vmem:[%s5627_s0 + $0x78] sm:$0xff]  ;;  %v26_v9 = vld [vmem:[%s5627_s0 + $0x30] sm:$0xff]  ;;  %vm381_vm5 = vcmask 330752  }
   0x4   :  { %101 = vmatpush.msra.mxu0 %v32_v5  ;;  %127 = vmatpush.msra.mxu1 %v33_v6  ;;  %v27_v10 = vld [vmem:[%s5627_s0 + $0x38] sm:$0xff]  ;;  %v28_v11 = vld [vmem:[%s5627_s0 + $0x40] sm:$0xff]  ;;  %v29_v12 = vld [vmem:[%s5627_s0 + $0x48] sm:$0xff] }
   0x5   :  { %153 = vmatpush.msra.mxu2 %v34_v7  ;;  %179 = vmatpush.msra.mxu3 %v35_v8  ;;  %v20_v13 = vld [vmem:[%s5627_s0] sm:$0xff]  ;;  %v21_v14 = vld [vmem:[%s5627_s0 + $0x8] sm:$0xff]  ;;  %v22_v15 = vld [vmem:[%s5627_s0 + $0x10] sm:$0xff] }
   0x6   :  { %102 = vmatpush.msra.mxu0 %v26_v9  ;;  %128 = vmatpush.msra.mxu1 %v27_v10  ;;  %v23_v16 = vld [vmem:[%s5627_s0 + $0x18] sm:$0xff]  ;;  %v3220_v17 = vld [vmem:[%s5628_s1] sm:$0xff]  ;;  %v42_v18 = vld [vmem:[%s5627_s0 + $0xb0] sm:$0x1] }
   0x7   :  { %154 = vmatpush.msra.mxu2 %v28_v11  ;;  %180 = vmatpush.msra.mxu3 %v29_v12  ;;  %v2775_v19 = vld [vmem:[%s5627_s0 + $0x158] sm:$0x1]  ;;  %v2774_v21 = vld [vmem:[%s5627_s0 + $0x150] sm:$0x1]  ;;  %v36_v22 = vld [vmem:[%s5627_s0 + $0x80] sm:$0xff] }
   0x8   :  { %103 = vmatpush.msra.mxu0 %v20_v13  ;;  %129 = vmatpush.msra.mxu1 %v21_v14  ;;  %v43_v20 = vld [vmem:[%s5627_s0 + $0xb8] sm:$0x1]  ;;  %v2769_v23 = vld [vmem:[%s5627_s0 + $0x128] sm:$0xff]  ;;  %v17_v24 = vld [vmem:[%s5629_s2] sm:$0xff] }
   0x9   :  { %155 = vmatpush.msra.mxu2 %v22_v15  ;;  %181 = vmatpush.msra.mxu3 %v23_v16  ;;  %v37_v25 = vld [vmem:[%s5627_s0 + $0x88] sm:$0xff]  ;;  %v30_v26 = vld [vmem:[%s5627_s0 + $0x50] sm:$0xff]  ;;  %v2763_v27 = vld [vmem:[%s5627_s0 + $0xf8] sm:$0xff] }
   0xa   :  { %2733 = vmatmul.msk.f32.vlgmr.msra.gmra.mxu0 %vm59_vm1, %v3220_v17  ;;  %2737 = vmatmul.msk.f32.vlgmr.msra.gmra.mxu1 %vm59_vm1, %v3220_v17  ;;  %v2768_v28 = vld [vmem:[%s5627_s0 + $0x120] sm:$0xff]  ;;  %v31_v29 = vld [vmem:[%s5627_s0 + $0x58] sm:$0xff]  ;;  %v3273_v30 = vld [vmem:[%s5628_s1 + $0x8] sm:$0xff] }
   0xb   :  { %2741 = vmatmul.msk.f32.vlgmr.msra.gmra.mxu2 %vm59_vm1, %v3220_v17  ;;  %2745 = vmatmul.msk.f32.vlgmr.msra.gmra.mxu3 %vm59_vm1, %v3220_v17  ;;  %v24_v31 = vld [vmem:[%s5627_s0 + $0x20] sm:$0xff]  ;;  %v2757_v32 = vld [vmem:[%s5627_s0 + $0xc8] sm:$0xff]  ;;  %v2762_v33 = vld [vmem:[%s5627_s0 + $0xf0] sm:$0xff] }
   0xc   :  { %2748 = vmatpush.msk.msrb.mxu0 %vm69_vm0, %v42_v18  ;;  %2784 = vmatpush.msk.msrb.mxu3 %vm69_vm0, %v2775_v19  ;;  %v25_v34 = vld [vmem:[%s5627_s0 + $0x28] sm:$0xff]  ;;  %v19_v35 = vld [vmem:[%s5629_s2 + $0x10] sm:$0xf]  ;;  %v2776_v36 = vld [vmem:[%s5627_s0 + $0x160] sm:$0x1] }
   0xd   :  { %2752 = vmatpush.msk.msrb.mxu1 %vm69_vm0, %v43_v20  ;;  %2780 = vmatpush.msk.msrb.mxu2 %vm69_vm0, %v2774_v21  ;;  %v18_v37 = vld [vmem:[%s5629_s2 + $0x8] sm:$0xff]  ;;  %v2756_v38 = vld [vmem:[%s5627_s0 + $0xc0] sm:$0xff]  ;;  %v2778_v40 = vld [vmem:[%s5627_s0 + $0x170] sm:$0x1] }
   0xe   :  { %205 = vmatpush.msrb.mxu0 %v36_v22  ;;  %465 = vmatpush.msrb.mxu3 %v2769_v23  ;;  %v2777_v39 = vld [vmem:[%s5627_s0 + $0x168] sm:$0x1]  ;;  %v2779_v41 = vld [vmem:[%s5627_s0 + $0x178] sm:$0x1]  ;;  %v2770_v42 = vld [vmem:[%s5627_s0 + $0x130] sm:$0xff] }
   0xf   :  { %46 = vperm.xlu0 %3137, %v17_v24   ;;  %231 = vmatpush.msrb.mxu1 %v37_v25  ;;  %v3323_v43 = vld [vmem:[%s5628_s1 + $0x10] sm:$0xf]  ;;  %v2771_v44 = vld [vmem:[%s5627_s0 + $0x138] sm:$0xff]  ;;  %v2772_v45 = vld [vmem:[%s5627_s0 + $0x140] sm:$0xff] }
  0x10   :  { %206 = vmatpush.msrb.mxu0 %v30_v26  ;;  %466 = vmatpush.msrb.mxu3 %v2763_v27  ;;  %v2773_v46 = vld [vmem:[%s5627_s0 + $0x148] sm:$0xff]  ;;  %v2764_v47 = vld [vmem:[%s5627_s0 + $0x100] sm:$0xff]  ;;  %v2766_v49 = vld [vmem:[%s5627_s0 + $0x110] sm:$0xff] }
  0x11   :  { %439 = vmatpush.msrb.mxu2 %v2768_v28  ;;  %232 = vmatpush.msrb.mxu1 %v31_v29  ;;  %v2765_v48 = vld [vmem:[%s5627_s0 + $0x108] sm:$0xff]  ;;  %v2767_v50 = vld [vmem:[%s5627_s0 + $0x118] sm:$0xff]  ;;  %v2758_v51 = vld [vmem:[%s5627_s0 + $0xd0] sm:$0xff] }
  0x12   :  { %2734 = vmatmul.msk.f32.gmra.mxu0 %vm59_vm1, %v3273_v30  ;;  %2738 = vmatmul.msk.f32.gmra.mxu1 %vm59_vm1, %v3273_v30  ;;  %v2759_v52 = vld [vmem:[%s5627_s0 + $0xd8] sm:$0xff]  ;;  %v2760_v53 = vld [vmem:[%s5627_s0 + $0xe0] sm:$0xff]  ;;  %v2761_v54 = vld [vmem:[%s5627_s0 + $0xe8] sm:$0xff] }
  0x13   :  { %2742 = vmatmul.msk.f32.gmra.mxu2 %vm59_vm1, %v3273_v30  ;;  %2746 = vmatmul.msk.f32.gmra.mxu3 %vm59_vm1, %v3273_v30  ;;  %v2828_v55 = vld [vmem:[%s5627_s0 + $0x210] sm:$0x1]  ;;  %v2829_v56 = vld [vmem:[%s5627_s0 + $0x218] sm:$0x1]  ;;  %v2830_v57 = vld [vmem:[%s5627_s0 + $0x220] sm:$0x1] }
  0x14   :  { %207 = vmatpush.msrb.mxu0 %v24_v31  ;;  %467 = vmatpush.msrb.mxu3 %v2757_v32  ;;  %v2831_v58 = vld [vmem:[%s5627_s0 + $0x228] sm:$0x1]  ;;  %v2822_v59 = vld [vmem:[%s5627_s0 + $0x1e0] sm:$0xff]  ;;  %v2824_v61 = vld [vmem:[%s5627_s0 + $0x1f0] sm:$0xff] }
  0x15   :  { %440 = vmatpush.msrb.mxu2 %v2762_v33  ;;  %233 = vmatpush.msrb.mxu1 %v25_v34  ;;  %v2823_v60 = vld [vmem:[%s5627_s0 + $0x1e8] sm:$0xff]  ;;  %v2825_v62 = vld [vmem:[%s5627_s0 + $0x1f8] sm:$0xff]  ;;  %v2816_v63 = vld [vmem:[%s5627_s0 + $0x1b0] sm:$0xff] }
  0x16   :  { %56 = vperm.xlu1 %3138, %v19_v35   ;;  %2788 = vmatpush.msk.msra.mxu0 %vm69_vm0, %v2776_v36  ;;  %v2817_v0 = vld [vmem:[%s5627_s0 + $0x1b8] sm:$0xff]  ;;  %v2818_v1 = vld [vmem:[%s5627_s0 + $0x1c0] sm:$0xff]  ;;  %v2819_v2 = vld [vmem:[%s5627_s0 + $0x1c8] sm:$0xff] }
  0x17   :  { %51 = vperm.xlu0 %3137, %v18_v37   ;;  %441 = vmatpush.msrb.mxu2 %v2756_v38  ;;  %v2810_v3 = vld [vmem:[%s5627_s0 + $0x180] sm:$0xff]  ;;  %v2811_v4 = vld [vmem:[%s5627_s0 + $0x188] sm:$0xff]  ;;  %v2812_v5 = vld [vmem:[%s5627_s0 + $0x190] sm:$0xff] }
  0x18   :  { %2792 = vmatpush.msk.msra.mxu1 %vm69_vm0, %v2777_v39  ;;  %2800 = vmatpush.msk.msra.mxu3 %vm69_vm0, %v2779_v41  ;;  %v2813_v6 = vld [vmem:[%s5627_s0 + $0x198] sm:$0xff]  ;;  %v2832_v7 = vld [vmem:[%s5627_s0 + $0x230] sm:$0x1]  ;;  %v2826_v9 = vld [vmem:[%s5627_s0 + $0x200] sm:$0xff] }
  0x19   :  { %2796 = vmatpush.msk.msra.mxu2 %vm69_vm0, %v2778_v40  ;;  %491 = vmatpush.msra.mxu0 %v2770_v42  ;;  %v2883_v8 = vld [vmem:[%s5627_s0 + $0x2d8] sm:$0x1]  ;;  %v2877_v10 = vld [vmem:[%s5627_s0 + $0x2a8] sm:$0xff]  ;;  %v2882_v12 = vld [vmem:[%s5627_s0 + $0x2d0] sm:$0x1] }
  0x1a   :  { %2735 = vmatmul.msk.f32.gmra.mxu0 %vm59_vm1, %v3323_v43  ;;  %2739 = vmatmul.msk.f32.gmra.mxu1 %vm59_vm1, %v3323_v43  ;;  %v2833_v11 = vld [vmem:[%s5627_s0 + $0x238] sm:$0x1]  ;;  %v2827_v13 = vld [vmem:[%s5627_s0 + $0x208] sm:$0xff]  ;;  %v2876_v14 = vld [vmem:[%s5627_s0 + $0x2a0] sm:$0xff] }
  0x1b   :  { %2743 = vmatmul.msk.f32.gmra.mxu2 %vm59_vm1, %v3323_v43  ;;  %2747 = vmatmul.msk.f32.gmra.mxu3 %vm59_vm1, %v3323_v43  ;;  %v2820_v15 = vld [vmem:[%s5627_s0 + $0x1d0] sm:$0xff]  ;;  %v2821_v16 = vld [vmem:[%s5627_s0 + $0x1d8] sm:$0xff]  ;;  %v2814_v20 = vld [vmem:[%s5627_s0 + $0x1a0] sm:$0xff] }
  0x1c   :  { %517 = vmatpush.msra.mxu1 %v2771_v44  ;;  %543 = vmatpush.msra.mxu2 %v2772_v45  ;;  %v2871_v18 = vld [vmem:[%s5627_s0 + $0x278] sm:$0xff]  ;;  %v2870_v19 = vld [vmem:[%s5627_s0 + $0x270] sm:$0xff]  ;;  %v2865_v21 = vld [vmem:[%s5627_s0 + $0x248] sm:$0xff] }
  0x1d   :  { %569 = vmatpush.msra.mxu3 %v2773_v46  ;;  %492 = vmatpush.msra.mxu0 %v2764_v47  ;;  %v2815_v22 = vld [vmem:[%s5627_s0 + $0x1a8] sm:$0xff]  ;;  %v2864_v23 = vld [vmem:[%s5627_s0 + $0x240] sm:$0xff]  ;;  %v2886_v26 = vld [vmem:[%s5627_s0 + $0x2f0] sm:$0x1] }
  0x1e   :  { %518 = vmatpush.msra.mxu1 %v2765_v48  ;;  %544 = vmatpush.msra.mxu2 %v2766_v49  ;;  %v2884_v24 = vld [vmem:[%s5627_s0 + $0x2e0] sm:$0x1]  ;;  %v2885_v25 = vld [vmem:[%s5627_s0 + $0x2e8] sm:$0x1]  ;;  %v2887_v27 = vld [vmem:[%s5627_s0 + $0x2f8] sm:$0x1] }
  0x1f   :  { %570 = vmatpush.msra.mxu3 %v2767_v50  ;;  %493 = vmatpush.msra.mxu0 %v2758_v51  ;;  %v2878_v28 = vld [vmem:[%s5627_s0 + $0x2b0] sm:$0xff]  ;;  %v2879_v29 = vld [vmem:[%s5627_s0 + $0x2b8] sm:$0xff]  ;;  %v2880_v31 = vld [vmem:[%s5627_s0 + $0x2c0] sm:$0xff] }
  0x20   :  { %519 = vmatpush.msra.mxu1 %v2759_v52  ;;  %545 = vmatpush.msra.mxu2 %v2760_v53  ;;  %v2881_v32 = vld [vmem:[%s5627_s0 + $0x2c8] sm:$0xff]  ;;  %v2872_v33 = vld [vmem:[%s5627_s0 + $0x280] sm:$0xff]  ;;  %v2874_v35 = vld [vmem:[%s5627_s0 + $0x290] sm:$0xff] }
  0x21   :  { %571 = vmatpush.msra.mxu3 %v2761_v54  ;;  %v2873_v34 = vld [vmem:[%s5627_s0 + $0x288] sm:$0xff]  ;;  %v2875_v36 = vld [vmem:[%s5627_s0 + $0x298] sm:$0xff]  ;;  %v2866_v37 = vld [vmem:[%s5627_s0 + $0x250] sm:$0xff] }
  0x22   :  { %2749 = vmatmul.msk.f32.vlgmr.msrb.gmra.mxu0 %vm59_vm1, %v3220_v17  ;;  %2753 = vmatmul.msk.f32.vlgmr.msrb.gmra.mxu1 %vm59_vm1, %v3220_v17  ;;  %v2867_v38 = vld [vmem:[%s5627_s0 + $0x258] sm:$0xff]  ;;  %v2868_v39 = vld [vmem:[%s5627_s0 + $0x260] sm:$0xff]  ;;  %v2869_v40 = vld [vmem:[%s5627_s0 + $0x268] sm:$0xff] }
  0x23   :  { %2781 = vmatmul.msk.f32.vlgmr.msrb.gmra.mxu2 %vm59_vm1, %v3220_v17  ;;  %2785 = vmatmul.msk.f32.vlgmr.msrb.gmra.mxu3 %vm59_vm1, %v3220_v17  ;;  %v2936_v41 = vld [vmem:[%s5627_s0 + $0x390] sm:$0x1]  ;;  %v2937_v42 = vld [vmem:[%s5627_s0 + $0x398] sm:$0x1]  ;;  %v2938_v44 = vld [vmem:[%s5627_s0 + $0x3a0] sm:$0x1] }
  0x24   :  { %2834 = vmatpush.msk.msrb.mxu0 %vm69_vm0, %v2828_v55  ;;  %2838 = vmatpush.msk.msrb.mxu1 %vm69_vm0, %v2829_v56  ;;  %v2939_v45 = vld [vmem:[%s5627_s0 + $0x3a8] sm:$0x1]  ;;  %v2930_v46 = vld [vmem:[%s5627_s0 + $0x360] sm:$0xff]  ;;  %v2932_v48 = vld [vmem:[%s5627_s0 + $0x370] sm:$0xff] }
  0x25   :  { %2842 = vmatpush.msk.msrb.mxu2 %vm69_vm0, %v2830_v57  ;;  %2846 = vmatpush.msk.msrb.mxu3 %vm69_vm0, %v2831_v58  ;;  %v2931_v47 = vld [vmem:[%s5627_s0 + $0x368] sm:$0xff]  ;;  %v2933_v49 = vld [vmem:[%s5627_s0 + $0x378] sm:$0xff]  ;;  %v2924_v50 = vld [vmem:[%s5627_s0 + $0x330] sm:$0xff] }
  0x26   :  { %774 = vmatpush.msrb.mxu0 %v2822_v59  ;;  %800 = vmatpush.msrb.mxu1 %v2823_v60  ;;  %v2925_v51 = vld [vmem:[%s5627_s0 + $0x338] sm:$0xff]  ;;  %v2926_v52 = vld [vmem:[%s5627_s0 + $0x340] sm:$0xff]  ;;  %v2927_v53 = vld [vmem:[%s5627_s0 + $0x348] sm:$0xff] }
  0x27   :  { %826 = vmatpush.msrb.mxu2 %v2824_v61  ;;  %852 = vmatpush.msrb.mxu3 %v2825_v62  ;;  %v2918_v54 = vld [vmem:[%s5627_s0 + $0x300] sm:$0xff]  ;;  %v2919_v55 = vld [vmem:[%s5627_s0 + $0x308] sm:$0xff]  ;;  %v2920_v56 = vld [vmem:[%s5627_s0 + $0x310] sm:$0xff] }
  0x28   :  { %775 = vmatpush.msrb.mxu0 %v2816_v63  ;;  %801 = vmatpush.msrb.mxu1 %v2817_v0  ;;  %v2921_v57 = vld [vmem:[%s5627_s0 + $0x318] sm:$0xff]  ;;  %v2940_v63 = vld [vmem:[%s5627_s0 + $0x3b0] sm:$0x1] }
  0x29   :  { %827 = vmatpush.msrb.mxu2 %v2818_v1  ;;  %853 = vmatpush.msrb.mxu3 %v2819_v2  ;;  %v2941_v0 = vld [vmem:[%s5627_s0 + $0x3b8] sm:$0x1]  ;;  %v2990_v1 = vld [vmem:[%s5627_s0 + $0x450] sm:$0x1] }
  0x2a   :  { %2750 = vmatmul.msk.f32.gmra.mxu0 %vm59_vm1, %v3273_v30  ;;  %2754 = vmatmul.msk.f32.gmra.mxu1 %vm59_vm1, %v3273_v30  ;;  %v2991_v2 = vld [vmem:[%s5627_s0 + $0x458] sm:$0x1] }
  0x2b   :  { %2782 = vmatmul.msk.f32.gmra.mxu2 %vm59_vm1, %v3273_v30  ;;  %2786 = vmatmul.msk.f32.gmra.mxu3 %vm59_vm1, %v3273_v30 }
  0x2c   :  { %776 = vmatpush.msrb.mxu0 %v2810_v3  ;;  %802 = vmatpush.msrb.mxu1 %v2811_v4 }
  0x2d   :  { %828 = vmatpush.msrb.mxu2 %v2812_v5  ;;  %854 = vmatpush.msrb.mxu3 %v2813_v6  ;;  %v2934_v5 = vld [vmem:[%s5627_s0 + $0x380] sm:$0xff]  ;;  %v2935_v6 = vld [vmem:[%s5627_s0 + $0x388] sm:$0xff] }
  0x32   :  { %2751 = vmatmul.msk.f32.gmra.mxu0 %vm59_vm1, %v3323_v43  ;;  %2755 = vmatmul.msk.f32.gmra.mxu1 %vm59_vm1, %v3323_v43 }
  0x33   :  { %2783 = vmatmul.msk.f32.gmra.mxu2 %vm59_vm1, %v3323_v43  ;;  %2787 = vmatmul.msk.f32.gmra.mxu3 %vm59_vm1, %v3323_v43 }
  0x3a   :  { %2789 = vmatmul.msk.f32.vlgmr.msra.gmra.mxu0 %vm59_vm1, %v3220_v17  ;;  %2793 = vmatmul.msk.f32.vlgmr.msra.gmra.mxu1 %vm59_vm1, %v3220_v17 }
  0x3b   :  { %2797 = vmatmul.msk.f32.vlgmr.msra.gmra.mxu2 %vm59_vm1, %v3220_v17  ;;  %2801 = vmatmul.msk.f32.vlgmr.msra.gmra.mxu3 %vm59_vm1, %v3220_v17 }
  0x3c   :  { %2850 = vmatpush.msk.msra.mxu0 %vm69_vm0, %v2832_v7  ;;  %2892 = vmatpush.msk.msra.mxu3 %vm69_vm0, %v2883_v8  ;;  %v2984_v7 = vld [vmem:[%s5627_s0 + $0x420] sm:$0xff] }
  0x3d   :  { %2854 = vmatpush.msk.msra.mxu1 %vm69_vm0, %v2833_v11  ;;  %2888 = vmatpush.msk.msra.mxu2 %vm69_vm0, %v2882_v12  ;;  %v2985_v12 = vld [vmem:[%s5627_s0 + $0x428] sm:$0xff] }
  0x3e   :  { %878 = vmatpush.msra.mxu0 %v2826_v9  ;;  %1135 = vmatpush.msra.mxu3 %v2877_v10 }
  0x3f   :  { %904 = vmatpush.msra.mxu1 %v2827_v13  ;;  %1109 = vmatpush.msra.mxu2 %v2876_v14  ;;  %v2928_v13 = vld [vmem:[%s5627_s0 + $0x350] sm:$0xff]  ;;  %v2929_v14 = vld [vmem:[%s5627_s0 + $0x358] sm:$0xff] }
  0x40   :  { %879 = vmatpush.msra.mxu0 %v2820_v15  ;;  %1136 = vmatpush.msra.mxu3 %v2871_v18  ;;  %v2978_v18 = vld [vmem:[%s5627_s0 + $0x3f0] sm:$0xff] }
  0x41   :  { %905 = vmatpush.msra.mxu1 %v2821_v16  ;;  %1110 = vmatpush.msra.mxu2 %v2870_v19  ;;  %v2979_v19 = vld [vmem:[%s5627_s0 + $0x3f8] sm:$0xff] }
  0x42   :  { %2790 = vmatmul.msk.f32.gmra.mxu0 %vm59_vm1, %v3273_v30  ;;  %2794 = vmatmul.msk.f32.gmra.mxu1 %vm59_vm1, %v3273_v30 }
  0x43   :  { %2798 = vmatmul.msk.f32.gmra.mxu2 %vm59_vm1, %v3273_v30  ;;  %2802 = vmatmul.msk.f32.gmra.mxu3 %vm59_vm1, %v3273_v30 }
  0x44   :  { %880 = vmatpush.msra.mxu0 %v2814_v20  ;;  %1137 = vmatpush.msra.mxu3 %v2865_v21  ;;  %v2922_v21 = vld [vmem:[%s5627_s0 + $0x320] sm:$0xff] }
  0x45   :  { %906 = vmatpush.msra.mxu1 %v2815_v22  ;;  %1111 = vmatpush.msra.mxu2 %v2864_v23  ;;  %v2923_v22 = vld [vmem:[%s5627_s0 + $0x328] sm:$0xff]  ;;  %v2972_v23 = vld [vmem:[%s5627_s0 + $0x3c0] sm:$0xff] }
  0x4a   :  { %2791 = vmatmul.msk.f32.gmra.mxu0 %vm59_vm1, %v3323_v43  ;;  %2795 = vmatmul.msk.f32.gmra.mxu1 %vm59_vm1, %v3323_v43 }
  0x4b   :  { %2799 = vmatmul.msk.f32.gmra.mxu2 %vm59_vm1, %v3323_v43  ;;  %2803 = vmatmul.msk.f32.gmra.mxu3 %vm59_vm1, %v3323_v43 }
  0x52   :  { %2835 = vmatmul.msk.f32.vlgmr.msrb.gmra.mxu0 %vm59_vm1, %v3220_v17  ;;  %2839 = vmatmul.msk.f32.vlgmr.msrb.gmra.mxu1 %vm59_vm1, %v3220_v17 }
  0x53   :  { %2843 = vmatmul.msk.f32.vlgmr.msrb.gmra.mxu2 %vm59_vm1, %v3220_v17  ;;  %2847 = vmatmul.msk.f32.vlgmr.msrb.gmra.mxu3 %vm59_vm1, %v3220_v17 }
  0x54   :  { %2896 = vmatpush.msk.msrb.mxu0 %vm69_vm0, %v2884_v24  ;;  %2900 = vmatpush.msk.msrb.mxu1 %vm69_vm0, %v2885_v25  ;;  %v2973_v24 = vld [vmem:[%s5627_s0 + $0x3c8] sm:$0xff] }
  0x55   :  { %2904 = vmatpush.msk.msrb.mxu2 %vm69_vm0, %v2886_v26  ;;  %2908 = vmatpush.msk.msrb.mxu3 %vm69_vm0, %v2887_v27 }
  0x56   :  { %1161 = vmatpush.msrb.mxu0 %v2878_v28  ;;  %1187 = vmatpush.msrb.mxu1 %v2879_v29 }
  0x57   :  { %1213 = vmatpush.msrb.mxu2 %v2880_v31  ;;  %1239 = vmatpush.msrb.mxu3 %v2881_v32 }
  0x58   :  { %1162 = vmatpush.msrb.mxu0 %v2872_v33  ;;  %1188 = vmatpush.msrb.mxu1 %v2873_v34 }
  0x59   :  { %1214 = vmatpush.msrb.mxu2 %v2874_v35  ;;  %1240 = vmatpush.msrb.mxu3 %v2875_v36 }
  0x5a   :  { %2836 = vmatmul.msk.f32.gmra.mxu0 %vm59_vm1, %v3273_v30  ;;  %2840 = vmatmul.msk.f32.gmra.mxu1 %vm59_vm1, %v3273_v30 }
  0x5b   :  { %2844 = vmatmul.msk.f32.gmra.mxu2 %vm59_vm1, %v3273_v30  ;;  %2848 = vmatmul.msk.f32.gmra.mxu3 %vm59_vm1, %v3273_v30 }
  0x5c   :  { %1163 = vmatpush.msrb.mxu0 %v2866_v37  ;;  %1189 = vmatpush.msrb.mxu1 %v2867_v38 }
  0x5d   :  { %1215 = vmatpush.msrb.mxu2 %v2868_v39  ;;  %1241 = vmatpush.msrb.mxu3 %v2869_v40 }
  0x62   :  { %2837 = vmatmul.msk.f32.gmra.mxu0 %vm59_vm1, %v3323_v43  ;;  %2841 = vmatmul.msk.f32.gmra.mxu1 %vm59_vm1, %v3323_v43 }
  0x63   :  { %2845 = vmatmul.msk.f32.gmra.mxu2 %vm59_vm1, %v3323_v43  ;;  %2849 = vmatmul.msk.f32.gmra.mxu3 %vm59_vm1, %v3323_v43 }
  0x6a   :  { %2851 = vmatmul.msk.f32.vlgmr.msra.gmra.mxu0 %vm59_vm1, %v3220_v17  ;;  %2855 = vmatmul.msk.f32.vlgmr.msra.gmra.mxu1 %vm59_vm1, %v3220_v17 }
  0x6b   :  { %2889 = vmatmul.msk.f32.vlgmr.msra.gmra.mxu2 %vm59_vm1, %v3220_v17  ;;  %2893 = vmatmul.msk.f32.vlgmr.msra.gmra.mxu3 %vm59_vm1, %v3220_v17 }
  0x6c   :  { %2942 = vmatpush.msk.msra.mxu0 %vm69_vm0, %v2936_v41  ;;  %2946 = vmatpush.msk.msra.mxu1 %vm69_vm0, %v2937_v42 }
  0x6d   :  { %2950 = vmatpush.msk.msra.mxu2 %vm69_vm0, %v2938_v44  ;;  %2954 = vmatpush.msk.msra.mxu3 %vm69_vm0, %v2939_v45 }
  0x6e   :  { %1444 = vmatpush.msra.mxu0 %v2930_v46  ;;  %1470 = vmatpush.msra.mxu1 %v2931_v47 }
  0x6f   :  { %1496 = vmatpush.msra.mxu2 %v2932_v48  ;;  %1522 = vmatpush.msra.mxu3 %v2933_v49  ;;  %v2992_v48 = vld [vmem:[%s5627_s0 + $0x460] sm:$0x1]  ;;  %v2993_v49 = vld [vmem:[%s5627_s0 + $0x468] sm:$0x1] }
  0x70   :  { %1445 = vmatpush.msra.mxu0 %v2924_v50  ;;  %1471 = vmatpush.msra.mxu1 %v2925_v51  ;;  %v2994_v50 = vld [vmem:[%s5627_s0 + $0x470] sm:$0x1] }
  0x71   :  { %1497 = vmatpush.msra.mxu2 %v2926_v52  ;;  %1523 = vmatpush.msra.mxu3 %v2927_v53  ;;  %v2995_v52 = vld [vmem:[%s5627_s0 + $0x478] sm:$0x1] }
  0x72   :  { %2852 = vmatmul.msk.f32.gmra.mxu0 %vm59_vm1, %v3273_v30  ;;  %2856 = vmatmul.msk.f32.gmra.mxu1 %vm59_vm1, %v3273_v30 }
  0x73   :  { %2890 = vmatmul.msk.f32.gmra.mxu2 %vm59_vm1, %v3273_v30  ;;  %2894 = vmatmul.msk.f32.gmra.mxu3 %vm59_vm1, %v3273_v30 }
  0x74   :  { %1446 = vmatpush.msra.mxu0 %v2918_v54  ;;  %1472 = vmatpush.msra.mxu1 %v2919_v55 }
  0x75   :  { %1498 = vmatpush.msra.mxu2 %v2920_v56  ;;  %1524 = vmatpush.msra.mxu3 %v2921_v57  ;;  %v2986_v56 = vld [vmem:[%s5627_s0 + $0x430] sm:$0xff]  ;;  %v2987_v57 = vld [vmem:[%s5627_s0 + $0x438] sm:$0xff] }
  0x7a   :  { %2853 = vmatmul.msk.f32.gmra.mxu0 %vm59_vm1, %v3323_v43  ;;  %2857 = vmatmul.msk.f32.gmra.mxu1 %vm59_vm1, %v3323_v43 }
  0x7b   :  { %2891 = vmatmul.msk.f32.gmra.mxu2 %vm59_vm1, %v3323_v43  ;;  %2895 = vmatmul.msk.f32.gmra.mxu3 %vm59_vm1, %v3323_v43 }
  0x81   :  { %v3681_v58 = vpop.permute.xlu0 %46 }
  0x82   :  { %2897 = vmatmul.msk.f32.vlgmr.msrb.gmra.mxu0 %vm59_vm1, %v3220_v17  ;;  %2901 = vmatmul.msk.f32.vlgmr.msrb.gmra.mxu1 %vm59_vm1, %v3220_v17 }
  0x83   :  { %2905 = vmatmul.msk.f32.vlgmr.msrb.gmra.mxu2 %vm59_vm1, %v3220_v17  ;;  %2909 = vmatmul.msk.f32.vlgmr.msrb.gmra.mxu3 %vm59_vm1, %v3220_v17 }
  0x84   :  { %2958 = vmatpush.msk.msrb.mxu0 %vm69_vm0, %v2940_v63  ;;  %2962 = vmatpush.msk.msrb.mxu1 %vm69_vm0, %v2941_v0 }
  0x85   :  { %2996 = vmatpush.msk.msrb.mxu2 %vm69_vm0, %v2990_v1  ;;  %3000 = vmatpush.msk.msrb.mxu3 %vm69_vm0, %v2991_v2  ;;  %v2989_v1 = vld [vmem:[%s5627_s0 + $0x448] sm:$0xff] }
  0x86   :  { %1548 = vmatpush.msrb.mxu0 %v2934_v5  ;;  %1574 = vmatpush.msrb.mxu1 %v2935_v6 }
  0x87   :  { %v3683_v59 = vpop.f32.mrf.mxu0  ;;  %v131_v60 = vpop.f32.mrf.mxu1  ;;  %1779 = vmatpush.msrb.mxu2 %v2984_v7  ;;  %1805 = vmatpush.msrb.mxu3 %v2985_v12  ;;  %v2981_v7 = vld [vmem:[%s5627_s0 + $0x408] sm:$0xff]  ;;  %v2983_v12 = vld [vmem:[%s5627_s0 + $0x418] sm:$0xff] }
  0x88   :  { %v3686_v61 = vadd.f32 %v131_v60, %v3681_v58  ;;  %1549 = vmatpush.msrb.mxu0 %v2928_v13  ;;  %1575 = vmatpush.msrb.mxu1 %v2929_v14  ;;  %v3778_v25 = vpop.permute.xlu1 %56  ;;  %v2988_v60 = vld [vmem:[%s5627_s0 + $0x440] sm:$0xff]  ;;  %v2974_v13 = vld [vmem:[%s5627_s0 + $0x3d0] sm:$0xff]  ;;  %v2975_v14 = vld [vmem:[%s5627_s0 + $0x3d8] sm:$0xff] }
  0x89   :  { %v3754_v20 = vpop.permute.xlu0 %51  ;;  %1780 = vmatpush.msrb.mxu2 %v2978_v18  ;;  %1806 = vmatpush.msrb.mxu3 %v2979_v19  ;;  %v2976_v19 = vld [vmem:[%s5627_s0 + $0x3e0] sm:$0xff] }
  0x8a   :  { %v5638_v62 = vmax.f32 %v3686_v61, 0.0  ;;  %2898 = vmatmul.msk.f32.gmra.mxu0 %vm59_vm1, %v3273_v30  ;;  %2902 = vmatmul.msk.f32.gmra.mxu1 %vm59_vm1, %v3273_v30 }
  0x8b   :  { %2906 = vmatmul.msk.f32.gmra.mxu2 %vm59_vm1, %v3273_v30  ;;  %2910 = vmatmul.msk.f32.gmra.mxu3 %vm59_vm1, %v3273_v30 }
  0x8c   :  { %268 = vrot.lane.b32.xlu1 %v5638_v62, %s3143_s26  ;;  %1550 = vmatpush.msrb.mxu0 %v2922_v21  ;;  %v2977_v21 = vld [vmem:[%s5627_s0 + $0x3e8] sm:$0xff] }
  0x8d   :  { %1576 = vmatpush.msrb.mxu1 %v2923_v22  ;;  %1781 = vmatpush.msrb.mxu2 %v2972_v23 }
  0x8e   :  { %v157_v3 = vpop.f32.mrf.mxu2  ;;  %v183_v4 = vpop.f32.mrf.mxu3  ;;  %1807 = vmatpush.msrb.mxu3 %v2973_v24 }
  0x8f   :  { %v3726_v8 = vadd.f32 %v157_v3, %v3681_v58  ;;  %v3729_v9 = vadd.f32 %v183_v4, %v3681_v58  ;;  %v3731_v10 = vpop.f32.mrf.mxu0  ;;  %v134_v11 = vpop.f32.mrf.mxu1  ;;  %v2980_v3 = vld [vmem:[%s5627_s0 + $0x400] sm:$0xff] }
  0x90   :  { %v3781_v26 = vadd.f32 %v134_v11, %v3754_v20  ;;  %v2982_v11 = vld [vmem:[%s5627_s0 + $0x410] sm:$0xff] }
  0x91   :  { %v5658_v15 = vmax.f32 %v3729_v9, 0.0  ;;  %v5656_v16 = vmax.f32 %v3726_v8, 0.0 }
  0x92   :  { %2899 = vmatmul.msk.f32.gmra.mxu0 %vm59_vm1, %v3323_v43  ;;  %2903 = vmatmul.msk.f32.gmra.mxu1 %vm59_vm1, %v3323_v43  ;;  %v5635_v35 = vmax.f32 %v3781_v26, 0.0 }
  0x93   :  { %2911 = vmatmul.msk.f32.gmra.mxu3 %vm59_vm1, %v3323_v43  ;;  %305 = vrot.lane.b32.xlu0 %v5658_v15, %s3143_s26 }
  0x94   :  { %2907 = vmatmul.msk.f32.gmra.mxu2 %vm59_vm1, %v3323_v43  ;;  %270 = vrot.lane.b32.xlu2 %v5656_v16, %s3143_s26 }
  0x96   :  { %v160_v27 = vpop.f32.mrf.mxu2  ;;  %v186_v28 = vpop.f32.mrf.mxu3 }
  0x97   :  { %v3784_v29 = vadd.f32 %v160_v27, %v3754_v20  ;;  %v3786_v31 = vpop.f32.mrf.mxu0  ;;  %v137_v32 = vpop.f32.mrf.mxu1  ;;  %v3809_v37 = vadd.f32 %v186_v28, %v3754_v20 }
  0x98   :  { %v3789_v33 = vadd.f32 %v137_v32, %v3778_v25 }
  0x99   :  { %v5655_v34 = vmax.f32 %v3784_v29, 0.0  ;;  %v5653_v45 = vmax.f32 %v3809_v37, 0.0 }
  0x9a   :  { %v5636_v36 = vmax.f32 %v3789_v33, 0.0  ;;  %2947 = vmatmul.msk.f32.vlgmr.msra.gmra.mxu1 %vm59_vm1, %v3220_v17  ;;  %2943 = vmatmul.msk.f32.vlgmr.msra.gmra.mxu0 %vm59_vm1, %v3220_v17 }
  0x9b   :  { %2955 = vmatmul.msk.f32.vlgmr.msra.gmra.mxu3 %vm59_vm1, %v3220_v17  ;;  %274 = vrot.lane.b32.xlu0 %v5655_v34, %s3143_s26 }
  0x9c   :  { %2951 = vmatmul.msk.f32.vlgmr.msra.gmra.mxu2 %vm59_vm1, %v3220_v17  ;;  %272 = vrot.lane.b32.xlu2 %v5635_v35, %s3143_s26  ;;  %v3101_v35 = vld [vmem:[%s5627_s0 + $0x5e8] sm:$0x1] }
  0x9d   :  { %276 = vrot.lane.b32.xlu1 %v5636_v36, %s3143_s26  ;;  %3004 = vmatpush.msk.msra.mxu0 %vm69_vm0, %v2992_v48  ;;  %v3102_v36 = vld [vmem:[%s5627_s0 + $0x5f0] sm:$0x1] }
  0x9e   :  { %v163_v38 = vpop.f32.mrf.mxu2  ;;  %v189_v39 = vpop.f32.mrf.mxu3  ;;  %3008 = vmatpush.msk.msra.mxu1 %vm69_vm0, %v2993_v49  ;;  %3012 = vmatpush.msk.msra.mxu2 %vm69_vm0, %v2994_v50 }
  0x9f   :  { %v3815_v40 = vadd.f32 %v163_v38, %v3778_v25  ;;  %v209_v41 = vpop.f32.mrf.mxu0  ;;  %v235_v42 = vpop.f32.mrf.mxu1  ;;  %v3844_v51 = vadd.f32 %v189_v39, %v3778_v25  ;;  %3016 = vmatpush.msk.msra.mxu3 %vm69_vm0, %v2995_v52  ;;  %1831 = vmatpush.msra.mxu0 %v2986_v56 }
  0xa0   :  { %v210_v44 = vadd.f32 %v209_v41, %v3681_v58  ;;  %v236_v53 = vadd.f32 %v235_v42, %v3681_v58  ;;  %1857 = vmatpush.msra.mxu1 %v2987_v57  ;;  %1883 = vmatpush.msra.mxu2 %v2988_v60  ;;  %v3044_v57 = vld [vmem:[%s5627_s0 + $0x510] sm:$0x1]  ;;  %v3045_v60 = vld [vmem:[%s5627_s0 + $0x518] sm:$0x1] }
  0xa1   :  { %v5652_v46 = vmax.f32 %v3815_v40, 0.0  ;;  %v5651_v4 = vmax.f32 %v3844_v51, 0.0  ;;  %1909 = vmatpush.msra.mxu3 %v2989_v1  ;;  %1832 = vmatpush.msra.mxu0 %v2980_v3 }
  0xa2   :  { %v248_v47 = vmax.f32 %v210_v44, 0.0  ;;  %2948 = vmatmul.msk.f32.gmra.mxu1 %vm59_vm1, %v3273_v30  ;;  %2944 = vmatmul.msk.f32.gmra.mxu0 %vm59_vm1, %v3273_v30  ;;  %v249_v5 = vmax.f32 %v236_v53, 0.0 }
  0xa3   :  { %2956 = vmatmul.msk.f32.gmra.mxu3 %vm59_vm1, %v3273_v30  ;;  %311 = vrot.lane.b32.xlu0 %v5653_v45, %s3143_s26 }
  0xa4   :  { %2952 = vmatmul.msk.f32.gmra.mxu2 %vm59_vm1, %v3273_v30  ;;  %278 = vrot.lane.b32.xlu2 %v5652_v46, %s3143_s26 }
  0xa5   :  { %307 = vrot.lane.b32.xlu1 %v248_v47, %s3143_s26  ;;  %1858 = vmatpush.msra.mxu1 %v2981_v7  ;;  %v3040_v7 = vld [vmem:[%s5627_s0 + $0x4f0] sm:$0xff] }
  0xa6   :  { %v3852_v54 = vpop.f32.mrf.mxu2  ;;  %v469_v55 = vpop.f32.mrf.mxu3  ;;  %1884 = vmatpush.msra.mxu2 %v2982_v11  ;;  %1910 = vmatpush.msra.mxu3 %v2983_v12 }
  0xa7   :  { %v212_v63 = vpop.f32.mrf.mxu0  ;;  %v238_v0 = vpop.f32.mrf.mxu1  ;;  %v3902_v18 = vadd.f32 %v469_v55, %v3681_v58  ;;  %1833 = vmatpush.msra.mxu0 %v2974_v13  ;;  %1859 = vmatpush.msra.mxu1 %v2975_v14  ;;  %v3041_v14 = vld [vmem:[%s5627_s0 + $0x4f8] sm:$0xff] }
  0xa8   :  { %v213_v2 = vadd.f32 %v212_v63, %v3754_v20  ;;  %v239_v22 = vadd.f32 %v238_v0, %v3754_v20  ;;  %1885 = vmatpush.msra.mxu2 %v2976_v19  ;;  %1911 = vmatpush.msra.mxu3 %v2977_v21  ;;  %v3046_v63 = vld [vmem:[%s5627_s0 + $0x520] sm:$0x1]  ;;  %v3047_v0 = vld [vmem:[%s5627_s0 + $0x528] sm:$0x1]  ;;  %v3032_v21 = vld [vmem:[%s5627_s0 + $0x4b0] sm:$0xff] }
  0xa9   :  { %v5634_v38 = vmax.f32 %v3902_v18, 0.0 }
  0xaa   :  { %v254_v6 = vmax.f32 %v213_v2, 0.0  ;;  %2949 = vmatmul.msk.f32.gmra.mxu1 %vm59_vm1, %v3323_v43  ;;  %2945 = vmatmul.msk.f32.gmra.mxu0 %vm59_vm1, %v3323_v43  ;;  %v255_v39 = vmax.f32 %v239_v22, 0.0 }
  0xab   :  { %2957 = vmatmul.msk.f32.gmra.mxu3 %vm59_vm1, %v3323_v43  ;;  %317 = vrot.lane.b32.xlu0 %v5651_v4, %s3143_s26 }
  0xac   :  { %2953 = vmatmul.msk.f32.gmra.mxu2 %vm59_vm1, %v3323_v43  ;;  %309 = vrot.lane.b32.xlu2 %v249_v5, %s3143_s26  ;;  %v3038_v5 = vld [vmem:[%s5627_s0 + $0x4e0] sm:$0xff] }
  0xad   :  { %313 = vrot.lane.b32.xlu1 %v254_v6, %s3143_s26  ;;  %v3039_v6 = vld [vmem:[%s5627_s0 + $0x4e8] sm:$0xff] }
  0xae   :  { %v3912_v23 = vpop.f32.mrf.mxu2  ;;  %v472_v24 = vpop.f32.mrf.mxu3 }
  0xaf   :  { %v215_v27 = vpop.f32.mrf.mxu0  ;;  %v241_v28 = vpop.f32.mrf.mxu1  ;;  %v3930_v42 = vadd.f32 %v472_v24, %v3754_v20 }
  0xb0   :  { %v216_v32 = vadd.f32 %v215_v27, %v3778_v25  ;;  %v242_v1 = vadd.f32 %v241_v28, %v3778_v25  ;;  %v3033_v28 = vld [vmem:[%s5627_s0 + $0x4b8] sm:$0xff] }
  0xb1   :  { %5748 = vst [vmem:[#allocation2_spill] sm:$0xff] %v3930_v42  ;;  %v5632_v53 = vmax.f32 %v3930_v42, 0.0 }
  0xb2   :  { %v260_v41 = vmax.f32 %v216_v32, 0.0  ;;  %2963 = vmatmul.msk.f32.vlgmr.msrb.gmra.mxu1 %vm59_vm1, %v3220_v17  ;;  %2959 = vmatmul.msk.f32.vlgmr.msrb.gmra.mxu0 %vm59_vm1, %v3220_v17  ;;  %v261_v22 = vmax.f32 %v242_v1, 0.0  ;;  %v3034_v32 = vld [vmem:[%s5627_s0 + $0x4c0] sm:$0xff] }
  0xb3   :  { %3001 = vmatmul.msk.f32.vlgmr.msrb.gmra.mxu3 %vm59_vm1, %v3220_v17  ;;  %606 = vrot.lane.b32.xlu0 %v5634_v38, %s3143_s26  ;;  %v4200_v38 = vld [vmem:[%s5628_s1 + $0x8] sm:$0xff] }
  0xb4   :  { %2997 = vmatmul.msk.f32.vlgmr.msrb.gmra.mxu2 %vm59_vm1, %v3220_v17  ;;  %315 = vrot.lane.b32.xlu2 %v255_v39, %s3143_s26  ;;  %v3035_v39 = vld [vmem:[%s5627_s0 + $0x4c8] sm:$0xff] }
  0xb5   :  { %319 = vrot.lane.b32.xlu1 %v260_v41, %s3143_s26  ;;  %3050 = vmatpush.msk.msrb.mxu0 %vm69_vm0, %v3044_v57  ;;  %v3026_v41 = vld [vmem:[%s5627_s0 + $0x480] sm:$0xff] }
  0xb6   :  { %v3932_v44 = vpop.f32.mrf.mxu2  ;;  %v475_v47 = vpop.f32.mrf.mxu3  ;;  %3054 = vmatpush.msk.msrb.mxu1 %vm69_vm0, %v3045_v60  ;;  %3058 = vmatpush.msk.msrb.mxu2 %vm69_vm0, %v3046_v63  ;;  %v3029_v63 = vld [vmem:[%s5627_s0 + $0x498] sm:$0xff] }
  0xb7   :  { %v3935_v48 = vadd.f32 %v475_v47, %v3778_v25  ;;  %v495_v49 = vpop.f32.mrf.mxu0  ;;  %v521_v50 = vpop.f32.mrf.mxu1  ;;  %3062 = vmatpush.msk.msrb.mxu3 %vm69_vm0, %v3047_v0  ;;  %2114 = vmatpush.msrb.mxu0 %v3038_v5  ;;  %v3027_v47 = vld [vmem:[%s5627_s0 + $0x488] sm:$0xff] }
  0xb8   :  { %v3938_v52 = vadd.f32 %v521_v50, %v3681_v58  ;;  %v3985_v11 = vadd.f32 %v495_v49, %v3681_v58  ;;  %2140 = vmatpush.msrb.mxu1 %v3039_v6  ;;  %2166 = vmatpush.msrb.mxu2 %v3040_v7  ;;  %v3028_v49 = vld [vmem:[%s5627_s0 + $0x490] sm:$0xff] }
  0xb9   :  { %5749 = vst [vmem:[#allocation3_spill] sm:$0xff] %v3935_v48  ;;  %v5633_v56 = vmax.f32 %v3935_v48, 0.0  ;;  %2192 = vmatpush.msrb.mxu3 %v3041_v14  ;;  %2115 = vmatpush.msrb.mxu0 %v3032_v21 }
  0xba   :  { %v5649_v55 = vmax.f32 %v3938_v52, 0.0  ;;  %2964 = vmatmul.msk.f32.gmra.mxu1 %vm59_vm1, %v3273_v30  ;;  %2960 = vmatmul.msk.f32.gmra.mxu0 %vm59_vm1, %v3273_v30  ;;  %v5648_v27 = vmax.f32 %v3985_v11, 0.0 }
  0xbb   :  { %3002 = vmatmul.msk.f32.gmra.mxu3 %vm59_vm1, %v3273_v30  ;;  %2141 = vmatpush.msrb.mxu1 %v3033_v28 }
  0xbc   :  { %2998 = vmatmul.msk.f32.gmra.mxu2 %vm59_vm1, %v3273_v30  ;;  %610 = vrot.lane.b32.xlu2 %v5632_v53, %s3143_s26 }
  0xbd   :  { %642 = vrot.lane.b32.xlu0 %v5649_v55, %s3143_s26  ;;  %614 = vrot.lane.b32.xlu1 %v5633_v56, %s3143_s26 }
  0xbe   :  { %v547_v2 = vpop.f32.mrf.mxu2  ;;  %v573_v3 = vpop.f32.mrf.mxu3  ;;  %2167 = vmatpush.msrb.mxu2 %v3034_v32  ;;  %2193 = vmatpush.msrb.mxu3 %v3035_v39 }
  0xbf   :  { %v498_v12 = vpop.f32.mrf.mxu0  ;;  %v524_v13 = vpop.f32.mrf.mxu1  ;;  %v574_v50 = vadd.f32 %v573_v3, %v3681_v58  ;;  %v548_v0 = vadd.f32 %v547_v2, %v3681_v58  ;;  %2116 = vmatpush.msrb.mxu0 %v3026_v41  ;;  %2142 = vmatpush.msrb.mxu1 %v3027_v47  ;;  %v3048_v47 = vld [vmem:[%s5627_s0 + $0x530] sm:$0x1] }
  0xc0   :  { %v3993_v19 = vadd.f32 %v498_v12, %v3754_v20  ;;  %v4039_v1 = vadd.f32 %v524_v13, %v3754_v20  ;;  %2168 = vmatpush.msrb.mxu2 %v3028_v49  ;;  %2194 = vmatpush.msrb.mxu3 %v3029_v63  ;;  %v3049_v49 = vld [vmem:[%s5627_s0 + $0x538] sm:$0x1] }
  0xc1   :  { %v587_v3 = vmax.f32 %v574_v50, 0.0  ;;  %v586_v7 = vmax.f32 %v548_v0, 0.0  ;;  %v3098_v50 = vld [vmem:[%s5627_s0 + $0x5d0] sm:$0x1]  ;;  %v3042_v0 = vld [vmem:[%s5627_s0 + $0x500] sm:$0xff] }
  0xc2   :  { %v5646_v24 = vmax.f32 %v3993_v19, 0.0  ;;  %2965 = vmatmul.msk.f32.gmra.mxu1 %vm59_vm1, %v3323_v43  ;;  %2961 = vmatmul.msk.f32.gmra.mxu0 %vm59_vm1, %v3323_v43  ;;  %v5645_v2 = vmax.f32 %v4039_v1, 0.0 }
  0xc3   :  { %3003 = vmatmul.msk.f32.gmra.mxu3 %vm59_vm1, %v3323_v43 }
  0xc4   :  { %2999 = vmatmul.msk.f32.gmra.mxu2 %vm59_vm1, %v3323_v43  ;;  %321 = vrot.lane.b32.xlu2 %v261_v22, %s3143_s26 }
  0xc5   :  { %612 = vrot.lane.b32.xlu0 %v5646_v24, %s3143_s26  ;;  %608 = vrot.lane.b32.xlu1 %v5648_v27, %s3143_s26  ;;  %v3083_v24 = vld [vmem:[%s5627_s0 + $0x558] sm:$0xff] }
  0xc6   :  { %v550_v57 = vpop.f32.mrf.mxu2  ;;  %v576_v60 = vpop.f32.mrf.mxu3 }
  0xc7   :  { %v501_v5 = vpop.f32.mrf.mxu0  ;;  %v527_v6 = vpop.f32.mrf.mxu1  ;;  %v577_v12 = vadd.f32 %v576_v60, %v3754_v20  ;;  %v551_v21 = vadd.f32 %v550_v57, %v3754_v20 }
  0xc8   :  { %v4058_v22 = vadd.f32 %v527_v6, %v3778_v25  ;;  %v4089_v57 = vadd.f32 %v501_v5, %v3778_v25  ;;  %v3043_v6 = vld [vmem:[%s5627_s0 + $0x508] sm:$0xff] }
  0xc9   :  { %v593_v32 = vmax.f32 %v577_v12, 0.0  ;;  %v592_v39 = vmax.f32 %v551_v21, 0.0 }
  0xca   :  { %3009 = vmatmul.msk.f32.vlgmr.msra.gmra.mxu1 %vm59_vm1, %v3220_v17  ;;  %3005 = vmatmul.msk.f32.vlgmr.msra.gmra.mxu0 %vm59_vm1, %v3220_v17  ;;  %v5643_v41 = vmax.f32 %v4058_v22, 0.0 }
  0xcb   :  { %3017 = vmatmul.msk.f32.vlgmr.msra.gmra.mxu3 %vm59_vm1, %v3220_v17  ;;  %3066 = vmatpush.msk.msra.mxu0 %vm69_vm0, %v3048_v47 }
  0xcc   :  { %3013 = vmatmul.msk.f32.vlgmr.msra.gmra.mxu2 %vm59_vm1, %v3220_v17  ;;  %646 = vrot.lane.b32.xlu2 %v587_v3, %s3143_s26  ;;  %v3092_v3 = vld [vmem:[%s5627_s0 + $0x5a0] sm:$0xff] }
  0xcd   :  { %648 = vrot.lane.b32.xlu0 %v5645_v2, %s3143_s26  ;;  %644 = vrot.lane.b32.xlu1 %v586_v7, %s3143_s26 }
  0xce   :  { %v553_v13 = vpop.f32.mrf.mxu2  ;;  %v579_v14 = vpop.f32.mrf.mxu3  ;;  %3070 = vmatpush.msk.msra.mxu1 %vm69_vm0, %v3049_v49  ;;  %3104 = vmatpush.msk.msra.mxu2 %vm69_vm0, %v3098_v50  ;;  %v3037_v49 = vld [vmem:[%s5627_s0 + $0x4d8] sm:$0xff]  ;;  %v3086_v50 = vld [vmem:[%s5627_s0 + $0x570] sm:$0xff] }
  0xcf   :  { %v4060_v28 = vpop.f32.mrf.mxu0  ;;  %v804_v17 = vpop.f32.mrf.mxu1  ;;  %v554_v5 = vadd.f32 %v553_v13, %v3778_v25  ;;  %2218 = vmatpush.msra.mxu0 %v3042_v0  ;;  %v3036_v13 = vld [vmem:[%s5627_s0 + $0x4d0] sm:$0xff]  ;;  %v3030_v0 = vld [vmem:[%s5627_s0 + $0x4a0] sm:$0xff] }
  0xd0   :  { %5750 = vst [vmem:[#allocation4_spill] sm:$0xff] %v4060_v28  ;;  %v4104_v7 = vadd.f32 %v804_v17, %v3681_v58  ;;  %2244 = vmatpush.msra.mxu1 %v3043_v6  ;;  %2449 = vmatpush.msra.mxu2 %v3092_v3  ;;  %v5644_v17 = vmax.f32 %v4089_v57, 0.0  ;;  %v3080_v6 = vld [vmem:[%s5627_s0 + $0x540] sm:$0xff]  ;;  %v580_v3 = vadd.f32 %v579_v14, %v3778_v25 }
  0xd1   :  { %2219 = vmatpush.msra.mxu0 %v3036_v13 }
  0xd2   :  { %3010 = vmatmul.msk.f32.gmra.mxu1 %vm59_vm1, %v3273_v30  ;;  %3006 = vmatmul.msk.f32.gmra.mxu0 %vm59_vm1, %v3273_v30  ;;  %5751 = vst [vmem:[#allocation5_spill] sm:$0xff] %v4104_v7  ;;  %v5631_v47 = vmax.f32 %v4104_v7, 0.0  ;;  %v599_v14 = vmax.f32 %v580_v3, 0.0 }
  0xd3   :  { %3018 = vmatmul.msk.f32.gmra.mxu3 %vm59_vm1, %v3273_v30  ;;  %2245 = vmatpush.msra.mxu1 %v3037_v49  ;;  %v4166_v49 = vld [vmem:[%s5628_s1] sm:$0xff] }
  0xd4   :  { %3014 = vmatmul.msk.f32.gmra.mxu2 %vm59_vm1, %v3273_v30  ;;  %652 = vrot.lane.b32.xlu2 %v593_v32, %s3143_s26  ;;  %v3099_v30 = vld [vmem:[%s5627_s0 + $0x5d8] sm:$0x1]  ;;  %v3093_v32 = vld [vmem:[%s5627_s0 + $0x5a8] sm:$0xff] }
  0xd5   :  { %654 = vrot.lane.b32.xlu0 %v5643_v41, %s3143_s26  ;;  %650 = vrot.lane.b32.xlu1 %v592_v39, %s3143_s26  ;;  %v598_v39 = vmax.f32 %v554_v5, 0.0 }
  0xd6   :  { %v830_v60 = vpop.f32.mrf.mxu2  ;;  %v856_v63 = vpop.f32.mrf.mxu3  ;;  %3108 = vmatpush.msk.msra.mxu3 %vm69_vm0, %v3099_v30  ;;  %v3087_v30 = vld [vmem:[%s5627_s0 + $0x578] sm:$0xff]  ;;  %2450 = vmatpush.msra.mxu2 %v3086_v50 }
  0xd7   :  { %v4106_v12 = vpop.f32.mrf.mxu0  ;;  %v807_v21 = vpop.f32.mrf.mxu1  ;;  %v4156_v13 = vadd.f32 %v830_v60, %v3681_v58  ;;  %2220 = vmatpush.msra.mxu0 %v3030_v0 }
  0xd8   :  { %5752 = vst [vmem:[#allocation6_spill] sm:$0xff] %v4106_v12  ;;  %2475 = vmatpush.msra.mxu3 %v3093_v32  ;;  %v3081_v32 = vld [vmem:[%s5627_s0 + $0x548] sm:$0xff]  ;;  %2451 = vmatpush.msra.mxu2 %v3080_v6  ;;  %v4186_v50 = vadd.f32 %v807_v21, %v3754_v20  ;;  %v3100_v21 = vld [vmem:[%s5627_s0 + $0x5e0] sm:$0x1] }
  0xd9   :  { %v5642_v60 = vmax.f32 %v4156_v13, 0.0 }
  0xda   :  { %3007 = vmatmul.msk.f32.gmra.mxu0 %vm59_vm1, %v3323_v43  ;;  %3011 = vmatmul.msk.f32.gmra.mxu1 %vm59_vm1, %v3323_v43  ;;  %5754 = vst [vmem:[#allocation8_spill] sm:$0xff] %v4186_v50 }
  0xdb   :  { %3019 = vmatmul.msk.f32.gmra.mxu3 %vm59_vm1, %v3323_v43 }
  0xdc   :  { %3015 = vmatmul.msk.f32.gmra.mxu2 %vm59_vm1, %v3323_v43  ;;  %616 = vrot.lane.b32.xlu2 %v5644_v17, %s3143_s26  ;;  %v3031_v43 = vld [vmem:[%s5627_s0 + $0x4a8] sm:$0xff] }
  0xdd   :  { %941 = vrot.lane.b32.xlu0 %v5631_v47, %s3143_s26  ;;  %656 = vrot.lane.b32.xlu1 %v598_v39, %s3143_s26  ;;  %v4159_v39 = vadd.f32 %v856_v63, %v3681_v58 }
  0xde   :  { %v859_v5 = vpop.f32.mrf.mxu3  ;;  %2476 = vmatpush.msra.mxu3 %v3087_v30  ;;  %v833_v56 = vpop.f32.mrf.mxu2  ;;  %2246 = vmatpush.msra.mxu1 %v3031_v43 }
  0xdf   :  { %v4161_v47 = vpop.f32.mrf.mxu0  ;;  %v810_v53 = vpop.f32.mrf.mxu1  ;;  %v5639_v63 = vmax.f32 %v4159_v39, 0.0  ;;  %v4191_v0 = vadd.f32 %v833_v56, %v3754_v20 }
  0xe0   :  { %5753 = vst [vmem:[#allocation7_spill] sm:$0xff] %v4161_v47  ;;  %2477 = vmatpush.msra.mxu3 %v3081_v32  ;;  %v4194_v43 = vadd.f32 %v810_v53, %v3778_v25  ;;  %v5637_v32 = vmax.f32 %v4186_v50, 0.0 }
  0xe1   :  { %v5640_v56 = vmax.f32 %v4191_v0, 0.0 }
  0xe2   :  { %3051 = vmatmul.msk.f32.vlgmr.msrb.gmra.mxu0 %vm59_vm1, %v4166_v49  ;;  %3055 = vmatmul.msk.f32.vlgmr.msrb.gmra.mxu1 %vm59_vm1, %v4166_v49  ;;  %5755 = vst [vmem:[#allocation9_spill] sm:$0xff] %v4194_v43  ;;  %v5641_v53 = vmax.f32 %v4194_v43, 0.0 }
  0xe3   :  { %3063 = vmatmul.msk.f32.vlgmr.msrb.gmra.mxu3 %vm59_vm1, %v4166_v49  ;;  %3112 = vmatpush.msk.msrb.mxu0 %vm69_vm0, %v3100_v21 }
  0xe4   :  { %3059 = vmatmul.msk.f32.vlgmr.msrb.gmra.mxu2 %vm59_vm1, %v4166_v49  ;;  %658 = vrot.lane.b32.xlu2 %v599_v14, %s3143_s26 }
  0xe5   :  { %977 = vrot.lane.b32.xlu0 %v5639_v63, %s3143_s26  ;;  %943 = vrot.lane.b32.xlu1 %v5642_v60, %s3143_s26  ;;  %v3096_v60 = vld [vmem:[%s5627_s0 + $0x5c0] sm:$0xff] }
  0xe6   :  { %v4188_v30 = vpop.f32.mrf.mxu3  ;;  %v836_v14 = vpop.f32.mrf.mxu2  ;;  %3116 = vmatpush.msk.msrb.mxu1 %vm69_vm0, %v3101_v35  ;;  %3120 = vmatpush.msk.msrb.mxu2 %vm69_vm0, %v3102_v36  ;;  %v3097_v35 = vld [vmem:[%s5627_s0 + $0x5c8] sm:$0xff]  ;;  %v4265_v36 = vld [vmem:[%s5628_s1 + $0x10] sm:$0xf] }
  0xe7   :  { %v882_v6 = vpop.f32.mrf.mxu0  ;;  %v908_v3 = vpop.f32.mrf.mxu1  ;;  %v4234_v62 = vadd.f32 %v836_v14, %v3778_v25  ;;  %v4250_v14 = vadd.f32 %v859_v5, %v3754_v20  ;;  %v3088_v5 = vld [vmem:[%s5627_s0 + $0x580] sm:$0xff] }
  0xe8   :  { %v883_v41 = vadd.f32 %v882_v6, %v3681_v58  ;;  %2553 = vmatpush.msrb.mxu2 %v3096_v60  ;;  %v3089_v60 = vld [vmem:[%s5627_s0 + $0x588] sm:$0xff]  ;;  %v909_v27 = vadd.f32 %v908_v3, %v3681_v58 }
  0xe9   :  { %v5647_v6 = vmax.f32 %v4234_v62, 0.0 }
  0xea   :  { %3052 = vmatmul.msk.f32.gmra.mxu0 %vm59_vm1, %v4200_v38  ;;  %3056 = vmatmul.msk.f32.gmra.mxu1 %vm59_vm1, %v4200_v38  ;;  %v922_v3 = vmax.f32 %v909_v27, 0.0 }
  0xeb   :  { %3064 = vmatmul.msk.f32.gmra.mxu3 %vm59_vm1, %v4200_v38 }
  0xec   :  { %3060 = vmatmul.msk.f32.gmra.mxu2 %vm59_vm1, %v4200_v38  ;;  %945 = vrot.lane.b32.xlu2 %v5637_v32, %s3143_s26  ;;  %v3103_v32 = vld [vmem:[%s5627_s0 + $0x5f8] sm:$0x1] }
  0xed   :  { %947 = vrot.lane.b32.xlu0 %v5640_v56, %s3143_s26  ;;  %949 = vrot.lane.b32.xlu1 %v5641_v53, %s3143_s26  ;;  %v3094_v56 = vld [vmem:[%s5627_s0 + $0x5b0] sm:$0xff]  ;;  %v3095_v53 = vld [vmem:[%s5627_s0 + $0x5b8] sm:$0xff] }
  0xee   :  { %v4236_v63 = vpop.permute.xlu2 %270  ;;  %3124 = vmatpush.msk.msrb.mxu3 %vm69_vm0, %v3103_v32  ;;  %v1139_v17 = vpop.f32.mrf.mxu3  ;;  %2501 = vmatpush.msrb.mxu0 %v3094_v56  ;;  %v5650_v32 = vmax.f32 %v4250_v14, 0.0  ;;  %v921_v56 = vmax.f32 %v883_v41, 0.0  ;;  %v3091_v41 = vld [vmem:[%s5627_s0 + $0x598] sm:$0xff] }
  0xef   :  { %v885_v21 = vpop.f32.mrf.mxu0  ;;  %v911_v2 = vpop.f32.mrf.mxu1  ;;  %2527 = vmatpush.msrb.mxu1 %v3095_v53  ;;  %v3090_v53 = vld [vmem:[%s5627_s0 + $0x590] sm:$0xff] }
  0xf0   :  { %2579 = vmatpush.msrb.mxu3 %v3097_v35  ;;  %2502 = vmatpush.msrb.mxu0 %v3088_v5  ;;  %v4280_v35 = vpop.f32.mrf.mxu2  ;;  %v3082_v5 = vld [vmem:[%s5627_s0 + $0x550] sm:$0xff]  ;;  %v886_v4 = vadd.f32 %v885_v21, %v3754_v20 }
  0xf1   :  { %2528 = vmatpush.msrb.mxu1 %v3089_v60  ;;  %2554 = vmatpush.msrb.mxu2 %v3090_v53 }
  0xf2   :  { %3053 = vmatmul.msk.f32.gmra.mxu0 %vm59_vm1, %v4265_v36  ;;  %3057 = vmatmul.msk.f32.gmra.mxu1 %vm59_vm1, %v4265_v36  ;;  %v927_v53 = vmax.f32 %v886_v4, 0.0  ;;  %v4334_v4 = vadd.f32 %v1139_v17, %v3681_v58 }
  0xf3   :  { %3065 = vmatmul.msk.f32.gmra.mxu3 %vm59_vm1, %v4265_v36  ;;  %2503 = vmatpush.msrb.mxu0 %v3082_v5 }
  0xf4   :  { %3061 = vmatmul.msk.f32.gmra.mxu2 %vm59_vm1, %v4265_v36  ;;  %951 = vrot.lane.b32.xlu2 %v5647_v6, %s3143_s26  ;;  %v3084_v6 = vld [vmem:[%s5627_s0 + $0x560] sm:$0xff]  ;;  %5756 = vst [vmem:[#allocation10_spill] sm:$0xff] %v4334_v4  ;;  %v5657_v5 = vmax.f32 %v4334_v4, 0.0 }
  0xf5   :  { %983 = vrot.lane.b32.xlu0 %v5650_v32, %s3143_s26  ;;  %979 = vrot.lane.b32.xlu1 %v921_v56, %s3143_s26  ;;  %v3085_v32 = vld [vmem:[%s5627_s0 + $0x568] sm:$0xff]  ;;  %v4311_v56 = vadd.f32 %v4188_v30, %v3778_v25  ;;  %s3144_s0 = smov 46  }
  0xf6   :  { %v4304_v55 = vpop.permute.xlu2 %272  ;;  %2580 = vmatpush.msrb.mxu3 %v3091_v41  ;;  %2529 = vmatpush.msrb.mxu1 %v3083_v24  ;;  %v1142_v45 = vpop.f32.mrf.mxu3  ;;  %v912_v24 = vadd.f32 %v911_v2, %v3754_v20 }
  0xf7   :  { %v888_v46 = vpop.f32.mrf.mxu0  ;;  %2555 = vmatpush.msrb.mxu2 %v3084_v6  ;;  %v914_v60 = vpop.f32.mrf.mxu1  ;;  %v5654_v30 = vmax.f32 %v4311_v56, 0.0  ;;  %v4354_v17 = vadd.f32 %v1142_v45, %v3754_v20 }
  0xf8   :  { %2581 = vmatpush.msrb.mxu3 %v3085_v32  ;;  %v4329_v27 = vpop.f32.mrf.mxu2  ;;  %v889_v6 = vadd.f32 %v888_v46, %v3778_v25  ;;  %v928_v32 = vmax.f32 %v912_v24, 0.0 }
  0xf9   :  { %5757 = vst [vmem:[#allocation11_spill] sm:$0xff] %v4354_v17  ;;  %v5661_v16 = vmax.f32 %v4354_v17, 0.0 }
  0xfa   :  { %3067 = vmatmul.msk.f32.vlgmr.msra.gmra.mxu0 %vm59_vm1, %v4166_v49  ;;  %3071 = vmatmul.msk.f32.vlgmr.msra.gmra.mxu1 %vm59_vm1, %v4166_v49  ;;  %v933_v2 = vmax.f32 %v889_v6, 0.0 }
  0xfb   :  { %3109 = vmatmul.msk.f32.vlgmr.msra.gmra.mxu3 %vm59_vm1, %v4166_v49 }
  0xfc   :  { %3105 = vmatmul.msk.f32.vlgmr.msra.gmra.mxu2 %vm59_vm1, %v4166_v49  ;;  %981 = vrot.lane.b32.xlu2 %v922_v3, %s3143_s26 }
  0xfd   :  { %989 = vrot.lane.b32.xlu0 %v5654_v30, %s3143_s26  ;;  %985 = vrot.lane.b32.xlu1 %v927_v53, %s3143_s26 }
  0xfe   :  { %v4331_v21 = vpop.permute.xlu2 %278  ;;  %v1145_v3 = vpop.f32.mrf.mxu3 }
  0xff   :  { %v1165_v41 = vpop.f32.mrf.mxu0  ;;  %v1191_v53 = vpop.f32.mrf.mxu1  ;;  %v4359_v6 = vadd.f32 %v1145_v3, %v3778_v25 }
 0x100   :  { %v4361_v30 = vpop.permute.xlu1 %268  ;;  %v4366_v34 = vpop.f32.mrf.mxu2  ;;  %v4394_v4 = vadd.f32 %v1165_v41, %v3681_v58 }
 0x101   :  { %5758 = vst [vmem:[#allocation12_spill] sm:$0xff] %v4359_v6  ;;  %v5664_v45 = vmax.f32 %v4359_v6, 0.0 }
 0x102   :  { %3068 = vmatmul.msk.f32.gmra.mxu0 %vm59_vm1, %v4200_v38  ;;  %3072 = vmatmul.msk.f32.gmra.mxu1 %vm59_vm1, %v4200_v38  ;;  %5759 = vst [vmem:[#allocation13_spill] sm:$0xff] %v4394_v4 }
 0x103   :  { %3110 = vmatmul.msk.f32.gmra.mxu3 %vm59_vm1, %v4200_v38 }
 0x104   :  { %3106 = vmatmul.msk.f32.gmra.mxu2 %vm59_vm1, %v4200_v38  ;;  %987 = vrot.lane.b32.xlu2 %v928_v32, %s3143_s26  ;;  %v4364_v32 = vadd.f32 %v1191_v53, %v3681_v58 }
 0x105   :  { %v4347_v46 = vpop.permute.xlu0 %305  ;;  %1276 = vrot.lane.b32.xlu0 %v5657_v5, %s3143_s26  ;;  %991 = vrot.lane.b32.xlu1 %v933_v2, %s3143_s26  ;;  %v915_v5 = vadd.f32 %v914_v60, %v3778_v25  ;;  %v5668_v60 = vmax.f32 %v4394_v4, 0.0 }
 0x106   :  { %v4356_v24 = vpop.permute.xlu2 %309  ;;  %v5663_v2 = vmax.f32 %v4364_v32, 0.0  ;;  %v1243_v47 = vpop.f32.mrf.mxu3 }
 0x107   :  { %v1168_v3 = vpop.f32.mrf.mxu0  ;;  %v934_v50 = vmax.f32 %v915_v5, 0.0 }
 0x108   :  { %v4397_v17 = vadd.f32 %v1168_v3, %v3754_v20  ;;  %v1217_v12 = vpop.f32.mrf.mxu2  ;;  %v1244_v3 = vadd.f32 %v1243_v47, %v3681_v58 }
 0x109   :  { %v1218_v6 = vadd.f32 %v1217_v12, %v3681_v58 }
 0x10a   :  { %3069 = vmatmul.msk.f32.gmra.mxu0 %vm59_vm1, %v4265_v36  ;;  %3073 = vmatmul.msk.f32.gmra.mxu1 %vm59_vm1, %v4265_v36  ;;  %5760 = vst [vmem:[#allocation14_spill] sm:$0xff] %v4397_v17  ;;  %v5667_v41 = vmax.f32 %v4397_v17, 0.0  ;;  %v1257_v43 = vmax.f32 %v1244_v3, 0.0 }
 0x10b   :  { %3111 = vmatmul.msk.f32.gmra.mxu3 %vm59_vm1, %v4265_v36 }
 0x10c   :  { %3107 = vmatmul.msk.f32.gmra.mxu2 %vm59_vm1, %v4265_v36  ;;  %1280 = vrot.lane.b32.xlu2 %v5661_v16, %s3143_s26 }
 0x10d   :  { %v4382_v53 = vpop.permute.xlu0 %274  ;;  %1312 = vrot.lane.b32.xlu0 %v5663_v2, %s3143_s26  ;;  %1284 = vrot.lane.b32.xlu1 %v5664_v45, %s3143_s26  ;;  %v1194_v2 = vpop.f32.mrf.mxu1 }
 0x10e   :  { %v4391_v15 = vpop.permute.xlu2 %315  ;;  %v1246_v7 = vpop.f32.mrf.mxu3 }
 0x10f   :  { %v4399_v16 = vpop.permute.xlu1 %276 }
 0x110   :  { %v1220_v47 = vpop.f32.mrf.mxu2 }
 0x111   :  { %v1221_v28 = vadd.f32 %v1220_v47, %v3754_v20 }
 0x112   :  { %3113 = vmatmul.msk.f32.vlgmr.msrb.gmra.mxu0 %vm59_vm1, %v4166_v49  ;;  %3117 = vmatmul.msk.f32.vlgmr.msrb.gmra.mxu1 %vm59_vm1, %v4166_v49 }
 0x113   :  { %3125 = vmatmul.msk.f32.vlgmr.msrb.gmra.mxu3 %vm59_vm1, %v4166_v49 }
 0x114   :  { %3121 = vmatmul.msk.f32.vlgmr.msrb.gmra.mxu2 %vm59_vm1, %v4166_v49  ;;  %993 = vrot.lane.b32.xlu2 %v934_v50, %s3143_s26  ;;  %v4425_v49 = vadd.f32 %v1194_v2, %v3754_v20 }
 0x115   :  { %v4412_v5 = vpop.permute.xlu0 %311  ;;  %1282 = vrot.lane.b32.xlu0 %v5667_v41, %s3143_s26  ;;  %1278 = vrot.lane.b32.xlu1 %v5668_v60, %s3143_s26  ;;  %v1256_v41 = vmax.f32 %v1218_v6, 0.0  ;;  %v1197_v12 = vpop.f32.mrf.mxu1  ;;  %v1247_v6 = vadd.f32 %v1246_v7, %v3754_v20 }
 0x116   :  { %v4421_v45 = vpop.permute.xlu2 %610  ;;  %5761 = vst [vmem:[#allocation15_spill] sm:$0xff] %v4425_v49  ;;  %v5673_v60 = vmax.f32 %v4425_v49, 0.0  ;;  %v4448_v42 = vadd.f32 %v1197_v12, %v3778_v25  ;;  %v5766_v49 = vmax.f32 %v3726_v8, 0.0 }
 0x117   :  { %v308_v50 = vpop.permute.xlu1 %307  ;;  %v1263_v48 = vmax.f32 %v1247_v6, 0.0 }
 0x118   :  { %5762 = vst [vmem:[#allocation16_spill] sm:$0xff] %v4448_v42  ;;  %v5672_v7 = vmax.f32 %v4448_v42, 0.0  ;;  %v323_v12 = vsel %vm280_vm2, %v4347_v46, %v308_v50 }
 0x119   :  { %v335_v17 = vmax.f32 %v5766_v49, %v323_v12 }
 0x11a   :  { %3114 = vmatmul.msk.f32.gmra.mxu0 %vm59_vm1, %v4200_v38  ;;  %3118 = vmatmul.msk.f32.gmra.mxu1 %vm59_vm1, %v4200_v38 }
 0x11b   :  { %3126 = vmatmul.msk.f32.gmra.mxu3 %vm59_vm1, %v4200_v38 }
 0x11c   :  { %3122 = vmatmul.msk.f32.gmra.mxu2 %vm59_vm1, %v4200_v38  ;;  %1316 = vrot.lane.b32.xlu2 %v1257_v43, %s3143_s26  ;;  %v1262_v43 = vmax.f32 %v1221_v28, 0.0 }
 0x11d   :  { %1318 = vrot.lane.b32.xlu0 %v5673_v60, %s3143_s26  ;;  %1314 = vrot.lane.b32.xlu1 %v1256_v41, %s3143_s26  ;;  %v4442_v2 = vpop.permute.xlu0 %317  ;;  %v1171_v41 = vpop.f32.mrf.mxu0 }
 0x11e   :  { %v4444_v3 = vpop.permute.xlu2 %321  ;;  %v4465_v47 = vadd.f32 %v1171_v41, %v3778_v25  ;;  %v1223_v60 = vpop.f32.mrf.mxu2  ;;  %v5765_v41 = vmax.f32 %v3729_v9, 0.0 }
 0x11f   :  { %v314_v38 = vpop.permute.xlu1 %313  ;;  %v1474_v4 = vpop.f32.mrf.mxu1  ;;  %v1224_v9 = vadd.f32 %v1223_v60, %v3778_v25 }
 0x120   :  { %5763 = vst [vmem:[#allocation17_spill] sm:$0xff] %v4465_v47  ;;  %v4494_v8 = vadd.f32 %v1474_v4, %v3681_v58 }
 0x122   :  { %3115 = vmatmul.msk.f32.gmra.mxu0 %vm59_vm1, %v4265_v36  ;;  %3119 = vmatmul.msk.f32.gmra.mxu1 %vm59_vm1, %v4265_v36  ;;  %5767 = vst [vmem:[#allocation19_spill] sm:$0xff] %v4494_v8 }
 0x123   :  { %3127 = vmatmul.msk.f32.gmra.mxu3 %vm59_vm1, %v4265_v36 }
 0x124   :  { %3123 = vmatmul.msk.f32.gmra.mxu2 %vm59_vm1, %v4265_v36  ;;  %1322 = vrot.lane.b32.xlu2 %v1263_v48, %s3143_s26  ;;  %v324_v36 = vsel %vm280_vm2, %v308_v50, %v4356_v24 }
 0x125   :  { %1324 = vrot.lane.b32.xlu0 %v5672_v7, %s3143_s26  ;;  %1320 = vrot.lane.b32.xlu1 %v1262_v43, %s3143_s26  ;;  %v4473_v6 = vpop.permute.xlu0 %606  ;;  %v5678_v7 = vmax.f32 %v4465_v47, 0.0  ;;  %v1249_v43 = vpop.f32.mrf.mxu3  ;;  %v336_v42 = vmax.f32 %v5765_v41, %v324_v36  ;;  %v450_v36 = vadd.f32 %v3932_v44, %v3778_v25 }
 0x126   :  { %v4467_v28 = vpop.permute.xlu2 %646  ;;  %5764 = vst [vmem:[#allocation18_spill] sm:$0xff] %v4473_v6  ;;  %v4485_v46 = vpop.f32.mrf.mxu0  ;;  %v1250_v24 = vadd.f32 %v1249_v43, %v3778_v25  ;;  %v5772_v6 = vmax.f32 %v3784_v29, 0.0 }
 0x127   :  { %v4475_v48 = vpop.permute.xlu1 %319  ;;  %v1500_v43 = vpop.f32.mrf.mxu2  ;;  %v594_v4 = vmax.f32 %v450_v36, 0.0 }
 0x128   :  { %v1269_v41 = vmax.f32 %v1250_v24, 0.0  ;;  %v4511_v44 = vadd.f32 %v1500_v43, %v3681_v58  ;;  %v325_v24 = vsel %vm280_vm2, %v4412_v5, %v314_v38  ;;  %v1477_v5 = vpop.f32.mrf.mxu1 }
 0x12a   :  { %5768 = vst [vmem:[#allocation20_spill] sm:$0xff] %v4511_v44 }
 0x12c   :  { %1286 = vrot.lane.b32.xlu2 %v5678_v7, %s3143_s26  ;;  %v1268_v7 = vmax.f32 %v1224_v9, 0.0 }
 0x12d   :  { %349 = vrot.lane.b32.xlu1 %v336_v42, %s3144_s0  ;;  %347 = vrot.lane.b32.xlu0 %v335_v17, %s3144_s0  ;;  %v5680_v42 = vmax.f32 %v4494_v8, 0.0  ;;  %v447_v17 = vadd.f32 %v3912_v23, %v3754_v20 }
 0x12e   :  { %v4490_v50 = vpop.permute.xlu2 %652  ;;  %v4515_v9 = vpop.f32.mrf.mxu0 }
 0x12f   :  { %v4496_v49 = vpop.permute.xlu0 %642  ;;  %v615_v12 = vpop.permute.xlu1 %614 }
 0x134   :  { %1328 = vrot.lane.b32.xlu2 %v1269_v41, %s3143_s26  ;;  %v588_v41 = vmax.f32 %v447_v17, 0.0  ;;  %v5683_v17 = vmax.f32 %v4511_v44, 0.0 }
 0x135   :  { %1326 = vrot.lane.b32.xlu1 %v1268_v7, %s3143_s26  ;;  %1611 = vrot.lane.b32.xlu0 %v5680_v42, %s3143_s26  ;;  %v326_v7 = vsel %vm280_vm2, %v314_v38, %v4391_v15  ;;  %v5773_v15 = vmax.f32 %v3809_v37, 0.0  ;;  %v327_v37 = vsel %vm280_vm2, %v4442_v2, %v4475_v48 }
 0x136   :  { %v4508_v60 = vpop.permute.xlu2 %616 }
 0x137   :  { %v620_v23 = vsel %vm280_vm2, %v615_v12, %v4508_v60  ;;  %v4523_v36 = vpop.permute.xlu0 %612  ;;  %v4525_v42 = vpop.permute.xlu1 %608  ;;  %v337_v12 = vmax.f32 %v5772_v6, %v325_v24  ;;  %v338_v38 = vmax.f32 %v5773_v15, %v326_v7 }
 0x138   :  { %v4521_v8 = vmax.f32 %v594_v4, %v620_v23  ;;  %5770 = vst [vmem:[#allocation22_spill] sm:$0xff] %v4523_v36  ;;  %v619_v43 = vsel %vm280_vm2, %v4421_v45, %v4523_v36  ;;  %v1526_v4 = vpop.f32.mrf.mxu3  ;;  %v4543_v45 = vadd.f32 %v1477_v5, %v3754_v20 }
 0x139   :  { %v4530_v47 = vmax.f32 %v588_v41, %v619_v43  ;;  %v4548_v29 = vadd.f32 %v1526_v4, %v3681_v58  ;;  %v1503_v41 = vpop.f32.mrf.mxu2  ;;  %v4556_v43 = vpop.f32.mrf.mxu0 }
 0x13a   :  { %5769 = vst [vmem:[#allocation21_spill] sm:$0xff] %v4521_v8  ;;  %v5682_v7 = vmax.f32 %v4543_v45, 0.0  ;;  %v4569_v4 = vadd.f32 %v1503_v41, %v3754_v20 }
 0x13b   :  { %5771 = vst [vmem:[#allocation23_spill] sm:$0xff] %v4530_v47  ;;  %v5684_v5 = vmax.f32 %v4548_v29, 0.0  ;;  %v5786_v47 = vmax.f32 %v3938_v52, 0.0 }
 0x13c   :  { %351 = vrot.lane.b32.xlu2 %v337_v12, %s3144_s0  ;;  %5774 = vst [vmem:[#allocation24_spill] sm:$0xff] %v4543_v45  ;;  %v5776_v12 = vmax.f32 %v3815_v40, 0.0  ;;  %v328_v40 = vsel %vm280_vm2, %v4475_v48, %v4444_v3 }
 0x13d   :  { %1613 = vrot.lane.b32.xlu1 %v5683_v17, %s3143_s26  ;;  %353 = vrot.lane.b32.xlu0 %v338_v38, %s3144_s0  ;;  %5775 = vst [vmem:[#allocation25_spill] sm:$0xff] %v4548_v29  ;;  %v1480_v38 = vpop.f32.mrf.mxu1 }
 0x13e   :  { %v4545_v23 = vpop.permute.xlu2 %658  ;;  %v339_v15 = vmax.f32 %v5776_v12, %v327_v37  ;;  %5777 = vst [vmem:[#allocation26_spill] sm:$0xff] %v4569_v4  ;;  %v4575_v37 = vadd.f32 %v1480_v38, %v3778_v25 }
 0x13f   :  { %v4553_v6 = vpop.permute.xlu0 %648  ;;  %v645_v24 = vpop.permute.xlu1 %644 }
 0x140   :  { %5778 = vst [vmem:[#allocation27_spill] sm:$0xff] %v4575_v37  ;;  %v1529_v17 = vpop.f32.mrf.mxu3  ;;  %v5691_v41 = vmax.f32 %v4575_v37, 0.0 }
 0x141   :  { %v1506_v29 = vpop.f32.mrf.mxu2  ;;  %v1552_v44 = vpop.f32.mrf.mxu0  ;;  %v4598_v48 = vadd.f32 %v1529_v17, %v3754_v20 }
 0x142   :  { %v4593_v3 = vadd.f32 %v1506_v29, %v3778_v25 }
 0x143   :  { %5782 = vst [vmem:[#allocation30_spill] sm:$0xff] %v4598_v48 }
 0x144   :  { %1615 = vrot.lane.b32.xlu2 %v5682_v7, %s3143_s26  ;;  %5780 = vst [vmem:[#allocation28_spill] sm:$0xff] %v4593_v3 }
 0x145   :  { %1647 = vrot.lane.b32.xlu0 %v5684_v5, %s3143_s26  ;;  %355 = vrot.lane.b32.xlu1 %v339_v15, %s3144_s0  ;;  %v5779_v5 = vmax.f32 %v3844_v51, 0.0  ;;  %v5688_v15 = vmax.f32 %v4569_v4, 0.0  ;;  %v5694_v4 = vmax.f32 %v4598_v48, 0.0 }
 0x146   :  { %v946_v2 = vpop.permute.xlu2 %945 }
 0x147   :  { %v4577_v12 = vpop.permute.xlu0 %654  ;;  %v4579_v7 = vpop.permute.xlu1 %650  ;;  %v340_v45 = vmax.f32 %v5779_v5, %v328_v40  ;;  %v1553_v5 = vadd.f32 %v1552_v44, %v3681_v58 }
 0x148   :  { %v1578_v40 = vpop.f32.mrf.mxu1 }
 0x149   :  { %v1591_v37 = vmax.f32 %v1553_v5, 0.0  ;;  %v1579_v44 = vadd.f32 %v1578_v40, %v3681_v58  ;;  %v661_v5 = vsel %vm280_vm2, %v645_v24, %v4467_v28 }
 0x14c   :  { %357 = vrot.lane.b32.xlu2 %v340_v45, %s3144_s0 }
 0x14d   :  { %1617 = vrot.lane.b32.xlu0 %v5688_v15, %s3143_s26  ;;  %1619 = vrot.lane.b32.xlu1 %v5691_v41, %s3143_s26  ;;  %v5693_v15 = vmax.f32 %v4593_v3, 0.0  ;;  %v1532_v41 = vpop.f32.mrf.mxu3 }
 0x14e   :  { %v4595_v51 = vpop.permute.xlu2 %951  ;;  %v4616_v29 = vadd.f32 %v1532_v41, %v3778_v25  ;;  %v673_v41 = vmax.f32 %v5786_v47, %v661_v5 }
 0x14f   :  { %5781 = vst [vmem:[#allocation29_spill] sm:$0xff] %v4595_v51  ;;  %v942_v38 = vpop.permute.xlu0 %941  ;;  %v4601_v45 = vpop.permute.xlu1 %656 }
 0x150   :  { %5783 = vst [vmem:[#allocation31_spill] sm:$0xff] %v4616_v29  ;;  %v5697_v40 = vmax.f32 %v4616_v29, 0.0  ;;  %v1581_v48 = vpop.f32.mrf.mxu1 }
 0x151   :  { %v1582_v28 = vadd.f32 %v1581_v48, %v3754_v20 }
 0x153   :  { %v1598_v48 = vmax.f32 %v1582_v28, 0.0 }
 0x154   :  { %1621 = vrot.lane.b32.xlu2 %v5693_v15, %s3143_s26 }
 0x155   :  { %1653 = vrot.lane.b32.xlu0 %v5694_v4, %s3143_s26  ;;  %1649 = vrot.lane.b32.xlu1 %v1591_v37, %s3143_s26  ;;  %v1592_v4 = vmax.f32 %v1579_v44, 0.0  ;;  %v1555_v37 = vpop.f32.mrf.mxu0  ;;  %v1809_v44 = vpop.f32.mrf.mxu3 }
 0x156   :  { %v4613_v17 = vpop.permute.xlu2 %981 }
 0x157   :  { %v4620_v8 = vpop.permute.xlu0 %977  ;;  %v4622_v3 = vpop.permute.xlu1 %943 }
 0x158   :  { %5784 = vst [vmem:[#allocation32_spill] sm:$0xff] %v4622_v3  ;;  %v4626_v15 = vsel %vm280_vm2, %v942_v38, %v4622_v3  ;;  %v660_v3 = vsel %vm280_vm2, %v4496_v49, %v645_v24  ;;  %v4662_v24 = vadd.f32 %v1809_v44, %v3681_v58 }
 0x159   :  { %5785 = vst [vmem:[#allocation33_spill] sm:$0xff] %v4626_v15  ;;  %v1556_v15 = vadd.f32 %v1555_v37, %v3754_v20  ;;  %v5790_v37 = vmax.f32 %v3985_v11, 0.0 }
 0x15a   :  { %5791 = vst [vmem:[#allocation37_spill] sm:$0xff] %v4662_v24 }
 0x15b   :  { %v672_v29 = vmax.f32 %v5790_v37, %v660_v3 }
 0x15c   :  { %1651 = vrot.lane.b32.xlu2 %v1592_v4, %s3143_s26 }
 0x15d   :  { %1659 = vrot.lane.b32.xlu0 %v5697_v40, %s3143_s26  ;;  %686 = vrot.lane.b32.xlu1 %v673_v41, %s3144_s0  ;;  %v4652_v41 = vpop.f32.mrf.mxu2  ;;  %v1597_v40 = vmax.f32 %v1556_v15, 0.0  ;;  %v1558_v36 = vpop.f32.mrf.mxu0  ;;  %v662_v15 = vsel %vm280_vm2, %v4553_v6, %v4579_v7 }
 0x15e   :  { %v4637_v38 = vpop.permute.xlu2 %987  ;;  %v1812_v28 = vpop.f32.mrf.mxu3 }
 0x15f   :  { %v4642_v52 = vpop.permute.xlu0 %947  ;;  %v950_v47 = vpop.permute.xlu1 %949 }
 0x160   :  { %5787 = vst [vmem:[#allocation34_spill] sm:$0xff] %v4642_v52  ;;  %v4646_v4 = vsel %vm280_vm2, %v946_v2, %v4642_v52  ;;  %v4650_v5 = vsel %vm280_vm2, %v950_v47, %v4595_v51  ;;  %v1559_v2 = vadd.f32 %v1558_v36, %v3778_v25  ;;  %v1584_v47 = vpop.f32.mrf.mxu1  ;;  %v4683_v36 = vadd.f32 %v1812_v28, %v3754_v20 }
 0x161   :  { %5788 = vst [vmem:[#allocation35_spill] sm:$0xff] %v4646_v4 }
 0x162   :  { %5789 = vst [vmem:[#allocation36_spill] sm:$0xff] %v4650_v5  ;;  %v1603_v37 = vmax.f32 %v1559_v2, 0.0  ;;  %v664_v2 = vsel %vm280_vm2, %v4577_v12, %v4601_v45 }
 0x163   :  { %5794 = vst [vmem:[#allocation39_spill] sm:$0xff] %v4683_v36 }
 0x164   :  { %1657 = vrot.lane.b32.xlu2 %v1598_v48, %s3143_s26  ;;  %v5700_v48 = vmax.f32 %v4662_v24, 0.0  ;;  %v5796_v24 = vmax.f32 %v4089_v57, 0.0 }
 0x165   :  { %1655 = vrot.lane.b32.xlu1 %v1597_v40, %s3143_s26  ;;  %684 = vrot.lane.b32.xlu0 %v672_v29, %s3144_s0  ;;  %v5792_v40 = vmax.f32 %v3993_v19, 0.0  ;;  %v4676_v44 = vpop.f32.mrf.mxu2  ;;  %v663_v19 = vsel %vm280_vm2, %v4579_v7, %v4490_v50  ;;  %v1585_v50 = vadd.f32 %v1584_v47, %v3778_v25 }
 0x166   :  { %v4659_v49 = vpop.permute.xlu2 %1280  ;;  %5793 = vst [vmem:[#allocation38_spill] sm:$0xff] %v4676_v44  ;;  %v676_v5 = vmax.f32 %v5796_v24, %v664_v2  ;;  %v1815_v4 = vpop.f32.mrf.mxu3 }
 0x167   :  { %v4668_v11 = vpop.permute.xlu0 %983  ;;  %v4670_v3 = vpop.permute.xlu1 %979  ;;  %v674_v29 = vmax.f32 %v5792_v40, %v662_v15 }
 0x168   :  { %v1861_v52 = vpop.f32.mrf.mxu1 }
 0x169   :  { %v4714_v57 = vadd.f32 %v1861_v52, %v3681_v58 }
 0x16b   :  { %5798 = vst [vmem:[#allocation41_spill] sm:$0xff] %v4714_v57  ;;  %v5705_v2 = vmax.f32 %v4714_v57, 0.0 }
 0x16c   :  { %688 = vrot.lane.b32.xlu2 %v674_v29, %s3144_s0  ;;  %v5703_v29 = vmax.f32 %v4683_v36, 0.0 }
 0x16d   :  { %1661 = vrot.lane.b32.xlu1 %v1603_v37, %s3143_s26  ;;  %1946 = vrot.lane.b32.xlu0 %v5700_v48, %s3143_s26  ;;  %v1835_v37 = vpop.f32.mrf.mxu0  ;;  %v5795_v48 = vmax.f32 %v4039_v1, 0.0  ;;  %v4708_v12 = vpop.f32.mrf.mxu2  ;;  %v4711_v1 = vadd.f32 %v1815_v4, %v3778_v25 }
 0x16e   :  { %v994_v6 = vpop.permute.xlu2 %993  ;;  %v4734_v4 = vadd.f32 %v1835_v37, %v3681_v58  ;;  %v1913_v36 = vpop.f32.mrf.mxu3 }
 0x16f   :  { %v4691_v15 = vpop.permute.xlu0 %989  ;;  %v4693_v40 = vpop.permute.xlu1 %985  ;;  %v675_v28 = vmax.f32 %v5795_v48, %v663_v19  ;;  %5797 = vst [vmem:[#allocation40_spill] sm:$0xff] %v4711_v1  ;;  %v5707_v47 = vmax.f32 %v4711_v1, 0.0 }
 0x170   :  { %5799 = vst [vmem:[#allocation42_spill] sm:$0xff] %v4734_v4  ;;  %v1864_v51 = vpop.f32.mrf.mxu1  ;;  %v5712_v37 = vmax.f32 %v4734_v4, 0.0 }
 0x174   :  { %1950 = vrot.lane.b32.xlu2 %v5703_v29, %s3143_s26 }
 0x175   :  { %690 = vrot.lane.b32.xlu0 %v675_v28, %s3144_s0  ;;  %692 = vrot.lane.b32.xlu1 %v676_v5, %s3144_s0  ;;  %v1604_v5 = vmax.f32 %v1585_v50, 0.0  ;;  %v1838_v28 = vpop.f32.mrf.mxu0  ;;  %v1887_v1 = vpop.f32.mrf.mxu2 }
 0x176   :  { %v4706_v7 = vpop.permute.xlu2 %1316  ;;  %v4740_v50 = vadd.f32 %v1838_v28, %v3754_v20  ;;  %v4764_v28 = vadd.f32 %v1864_v51, %v3754_v20 }
 0x177   :  { %v1277_v24 = vpop.permute.xlu0 %1276  ;;  %v4716_v48 = vpop.permute.xlu1 %991 }
 0x178   :  { %v4720_v19 = vsel %vm280_vm2, %v4716_v48, %v994_v6  ;;  %v665_v6 = vsel %vm280_vm2, %v4601_v45, %v4545_v23  ;;  %5800 = vst [vmem:[#allocation43_spill] sm:$0xff] %v4740_v50  ;;  %v5710_v44 = vmax.f32 %v4740_v50, 0.0  ;;  %v1114_v23 = vadd.f32 %v4280_v35, %v3681_v58 }
 0x179   :  { %v1117_v45 = vadd.f32 %v4329_v27, %v3754_v20  ;;  %v1888_v35 = vadd.f32 %v1887_v1, %v3681_v58 }
 0x17c   :  { %1663 = vrot.lane.b32.xlu2 %v1604_v5, %s3143_s26 }
 0x17d   :  { %1982 = vrot.lane.b32.xlu0 %v5705_v2, %s3143_s26  ;;  %1954 = vrot.lane.b32.xlu1 %v5707_v47, %s3143_s26  ;;  %v1120_v2 = vadd.f32 %v4366_v34, %v3778_v25  ;;  %v5801_v47 = vmax.f32 %v4058_v22, 0.0  ;;  %v1914_v22 = vadd.f32 %v1913_v36, %v3681_v58 }
 0x17e   :  { %v4731_v52 = vpop.permute.xlu2 %1322 }
 0x17f   :  { %v1313_v5 = vpop.permute.xlu0 %1312  ;;  %v1285_v29 = vpop.permute.xlu1 %1284  ;;  %v677_v57 = vmax.f32 %v5801_v47, %v665_v6  ;;  %v1264_v34 = vmax.f32 %v1120_v2, 0.0  ;;  %v1258_v6 = vmax.f32 %v1117_v45, 0.0  ;;  %v1927_v51 = vmax.f32 %v1914_v22, 0.0 }
 0x180   :  { %v1916_v45 = vpop.f32.mrf.mxu3 }
 0x184   :  { %694 = vrot.lane.b32.xlu2 %v677_v57, %s3144_s0  ;;  %v1252_v57 = vmax.f32 %v1114_v23, 0.0  ;;  %v5714_v23 = vmax.f32 %v4764_v28, 0.0 }
 0x185   :  { %1952 = vrot.lane.b32.xlu0 %v5710_v44, %s3143_s26  ;;  %1948 = vrot.lane.b32.xlu1 %v5712_v37, %s3143_s26 }
 0x186   :  { %v4760_v47 = vpop.permute.xlu2 %1286 }
 0x187   :  { %5802 = vst [vmem:[#allocation44_spill] sm:$0xff] %v4760_v47  ;;  %v1290_v27 = vsel %vm280_vm2, %v1285_v29, %v4760_v47  ;;  %v4770_v50 = vpop.permute.xlu0 %1282  ;;  %v4772_v37 = vpop.permute.xlu1 %1278  ;;  %v1926_v29 = vmax.f32 %v1888_v35, 0.0 }
 0x188   :  { %v4768_v44 = vmax.f32 %v1264_v34, %v1290_v27  ;;  %5804 = vst [vmem:[#allocation46_spill] sm:$0xff] %v4770_v50  ;;  %v1289_v36 = vsel %vm280_vm2, %v4659_v49, %v4770_v50  ;;  %v1288_v1 = vsel %vm280_vm2, %v1277_v24, %v4772_v37  ;;  %v1890_v34 = vpop.f32.mrf.mxu2  ;;  %v1867_v27 = vpop.f32.mrf.mxu1  ;;  %v1917_v49 = vadd.f32 %v1916_v45, %v3754_v20 }
 0x189   :  { %5805 = vst [vmem:[#allocation47_spill] sm:$0xff] %v4772_v37  ;;  %v4779_v2 = vmax.f32 %v1258_v6, %v1289_v36  ;;  %v4781_v4 = vmax.f32 %v1252_v57, %v1288_v1  ;;  %v1891_v22 = vadd.f32 %v1890_v34, %v3754_v20  ;;  %v4794_v35 = vadd.f32 %v1867_v27, %v3778_v25 }
 0x18a   :  { %5803 = vst [vmem:[#allocation45_spill] sm:$0xff] %v4768_v44  ;;  %v1933_v1 = vmax.f32 %v1917_v49, 0.0  ;;  %v996_v27 = vsel %vm280_vm2, %v4670_v3, %v4613_v17  ;;  %v5809_v17 = vmax.f32 %v4159_v39, 0.0 }
 0x18b   :  { %5806 = vst [vmem:[#allocation48_spill] sm:$0xff] %v4779_v2  ;;  %v5808_v2 = vmax.f32 %v4156_v13, 0.0 }
 0x18c   :  { %5807 = vst [vmem:[#allocation49_spill] sm:$0xff] %v4781_v4  ;;  %1986 = vrot.lane.b32.xlu2 %v1927_v51, %s3143_s26  ;;  %v1932_v51 = vmax.f32 %v1891_v22, 0.0 }
 0x18d   :  { %1988 = vrot.lane.b32.xlu0 %v5714_v23, %s3143_s26  ;;  %1984 = vrot.lane.b32.xlu1 %v1926_v29, %s3143_s26  ;;  %v1841_v23 = vpop.f32.mrf.mxu0  ;;  %v5715_v29 = vmax.f32 %v4794_v35, 0.0 }
 0x18e   :  { %v4790_v24 = vpop.permute.xlu2 %1328  ;;  %v4809_v45 = vadd.f32 %v1841_v23, %v3778_v25  ;;  %v106_v23 = vadd.f32 %v3683_v59, %v3681_v58 }
 0x18f   :  { %v1319_v57 = vpop.permute.xlu0 %1318  ;;  %v4796_v6 = vpop.permute.xlu1 %1314 }
 0x190   :  { %v4800_v36 = vsel %vm280_vm2, %v1313_v5, %v4796_v6  ;;  %v995_v5 = vsel %vm280_vm2, %v4620_v8, %v4670_v3  ;;  %v1893_v44 = vpop.f32.mrf.mxu2  ;;  %v1919_v8 = vpop.f32.mrf.mxu3  ;;  %v1008_v3 = vmax.f32 %v5809_v17, %v996_v27  ;;  %v244_v13 = vmax.f32 %v106_v23, 0.0 }
 0x191   :  { %v1007_v50 = vmax.f32 %v5808_v2, %v995_v5  ;;  %v2144_v4 = vpop.f32.mrf.mxu1  ;;  %v1920_v2 = vadd.f32 %v1919_v8, %v3778_v25  ;;  %v1894_v27 = vadd.f32 %v1893_v44, %v3778_v25 }
 0x193   :  { %v1939_v8 = vmax.f32 %v1920_v2, 0.0  ;;  %v1938_v47 = vmax.f32 %v1894_v27, 0.0 }
 0x194   :  { %1992 = vrot.lane.b32.xlu2 %v1933_v1, %s3143_s26 }
 0x195   :  { %1994 = vrot.lane.b32.xlu0 %v5715_v29, %s3143_s26  ;;  %1990 = vrot.lane.b32.xlu1 %v1932_v51, %s3143_s26  ;;  %v5717_v29 = vmax.f32 %v4809_v45, 0.0  ;;  %v4839_v59 = vpop.f32.mrf.mxu0 }
 0x196   :  { %v4811_v34 = vpop.permute.xlu2 %351 }
 0x197   :  { %v1325_v49 = vpop.permute.xlu0 %1324  ;;  %v1321_v22 = vpop.permute.xlu1 %1320 }
 0x198   :  { %v4820_v1 = vsel %vm280_vm2, %v1319_v57, %v1321_v22  ;;  %v4824_v51 = vsel %vm280_vm2, %v1321_v22, %v4731_v52  ;;  %v281_v52 = vsel %vm280_vm2, %v4361_v30, %v4236_v63  ;;  %v5810_v57 = vmax.f32 %v3686_v61, 0.0  ;;  %v2170_v61 = vpop.f32.mrf.mxu2 }
 0x199   :  { %v4851_v30 = vadd.f32 %v2144_v4, %v3681_v58  ;;  %v290_v22 = vmax.f32 %v244_v13, %v281_v52  ;;  %v4871_v52 = vadd.f32 %v2170_v61, %v3681_v58 }
 0x19a   :  { %v291_v5 = vmax.f32 %v5810_v57, %v4236_v63  ;;  %v5812_v63 = vmax.f32 %v3789_v33, 0.0  ;;  %v998_v33 = vsel %vm280_vm2, %v4693_v40, %v4637_v38  ;;  %v5813_v38 = vmax.f32 %v4191_v0, 0.0 }
 0x19b   :  { %5811 = vst [vmem:[#allocation50_spill] sm:$0xff] %v4851_v30  ;;  %v5723_v37 = vmax.f32 %v4851_v30, 0.0 }
 0x19c   :  { %1956 = vrot.lane.b32.xlu2 %v5717_v29, %s3143_s26  ;;  %v295_v44 = vmax.f32 %v5812_v63, %v4331_v21 }
 0x19d   :  { %1021 = vrot.lane.b32.xlu1 %v1008_v3, %s3144_s0  ;;  %1019 = vrot.lane.b32.xlu0 %v1007_v50, %s3144_s0  ;;  %v4873_v13 = vpop.f32.mrf.mxu0 }
 0x19e   :  { %v4844_v39 = vpop.permute.xlu2 %1615 }
 0x19f   :  { %v348_v17 = vpop.permute.xlu0 %347  ;;  %v350_v3 = vpop.permute.xlu1 %349 }
 0x1a0   :  { %v360_v50 = vsel %vm359_vm3, %v348_v17, %v350_v3  ;;  %v370_v23 = vmax.f32 %v291_v5, %v350_v3  ;;  %v5730_v17 = vmax.f32 %v4871_v52, 0.0  ;;  %v5814_v3 = vmax.f32 %v4250_v14, 0.0 }
 0x1a1   :  { %v369_v29 = vmax.f32 %v290_v22, %v360_v50  ;;  %v2147_v22 = vpop.f32.mrf.mxu1 }
 0x1a2   :  { %377 = vst.msk [vmem:[%s5630_s3 + $0x8] sm:$0xff] %vm376_vm4, %v370_v23  ;;  %v1010_v50 = vmax.f32 %v5814_v3, %v998_v33  ;;  %v2196_v23 = vpop.f32.mrf.mxu3  ;;  %v4910_v0 = vadd.f32 %v2147_v22, %v3754_v20  ;;  %v2173_v33 = vpop.f32.mrf.mxu2  ;;  %v5817_v3 = vmax.f32 %v4234_v62, 0.0 }
 0x1a3   :  { %375 = vst [vmem:[%s5630_s3] sm:$0xff] %v369_v29  ;;  %v997_v29 = vsel %vm280_vm2, %v4668_v11, %v4693_v40  ;;  %v109_v11 = vadd.f32 %v3731_v10, %v3754_v20  ;;  %v4918_v61 = vadd.f32 %v2196_v23, %v3681_v58 }
 0x1a4   :  { %1998 = vrot.lane.b32.xlu2 %v1939_v8, %s3143_s26  ;;  %v1009_v40 = vmax.f32 %v5813_v38, %v997_v29  ;;  %5815 = vst [vmem:[#allocation51_spill] sm:$0xff] %v4910_v0  ;;  %v5720_v22 = vmax.f32 %v4910_v0, 0.0 }
 0x1a5   :  { %1996 = vrot.lane.b32.xlu1 %v1938_v47, %s3143_s26  ;;  %2281 = vrot.lane.b32.xlu0 %v5723_v37, %s3143_s26  ;;  %v250_v10 = vmax.f32 %v109_v11, 0.0  ;;  %v4932_v38 = vpop.f32.mrf.mxu0 }
 0x1a6   :  { %v358_v4 = vpop.permute.xlu2 %357 }
 0x1a7   :  { %v374_v2 = vmax.f32 %v295_v44, %v358_v4  ;;  %v1612_v47 = vpop.permute.xlu0 %1611  ;;  %v1327_v57 = vpop.permute.xlu1 %1326  ;;  %v999_v44 = vsel %vm280_vm2, %v4691_v15, %v4716_v48  ;;  %v5729_v48 = vmax.f32 %v4918_v61, 0.0 }
 0x1a8   :  { %v4886_v5 = vsel %vm280_vm2, %v1325_v49, %v1327_v57  ;;  %v4890_v27 = vsel %vm280_vm2, %v1327_v57, %v4790_v24  ;;  %v1449_v49 = vadd.f32 %v4485_v46, %v3681_v58  ;;  %v282_v24 = vsel %vm280_vm2, %v4304_v55, %v4382_v53 }
 0x1a9   :  { %382 = vst.msk [vmem:[%s5630_s3 + $0x28] sm:$0xf] %vm381_vm5, %v374_v2  ;;  %v5816_v46 = vmax.f32 %v3781_v26, 0.0  ;;  %v292_v55 = vmax.f32 %v250_v10, %v282_v24 }
 0x1aa   :  { %v1587_v63 = vmax.f32 %v1449_v49, 0.0  ;;  %v4957_v49 = vadd.f32 %v2173_v33, %v3754_v20  ;;  %v2199_v23 = vpop.f32.mrf.mxu3  ;;  %v2176_v33 = vpop.f32.mrf.mxu2 }
 0x1ab   :  { %v293_v8 = vmax.f32 %v5816_v46, %v4382_v53  ;;  %v112_v53 = vadd.f32 %v3786_v31, %v3778_v25  ;;  %v283_v31 = vsel %vm280_vm2, %v4399_v16, %v4331_v21  ;;  %v5819_v21 = vmax.f32 %v4311_v56, 0.0 }
 0x1ac   :  { %1023 = vrot.lane.b32.xlu2 %v1009_v40, %s3144_s0  ;;  %v4983_v56 = vadd.f32 %v2176_v33, %v3778_v25  ;;  %v1331_v33 = vsel %vm280_vm2, %v4796_v6, %v4706_v7 }
 0x1ad   :  { %2283 = vrot.lane.b32.xlu1 %v5730_v17, %s3143_s26  ;;  %1025 = vrot.lane.b32.xlu0 %v1010_v50, %s3144_s0  ;;  %v1011_v50 = vmax.f32 %v5817_v3, %v999_v44  ;;  %v256_v62 = vmax.f32 %v112_v53, 0.0  ;;  %v5728_v44 = vmax.f32 %v4957_v49, 0.0 }
 0x1ae   :  { %v4912_v14 = vpop.permute.xlu2 %1621 }
 0x1af   :  { %v354_v29 = vpop.permute.xlu0 %353  ;;  %v4923_v2 = vpop.permute.xlu1 %1613  ;;  %v294_v10 = vmax.f32 %v256_v62, %v283_v31  ;;  %v5725_v62 = vmax.f32 %v4983_v56, 0.0 }
 0x1b0   :  { %v361_v57 = vsel %vm359_vm3, %v4811_v34, %v354_v29  ;;  %v372_v11 = vmax.f32 %v293_v8, %v354_v29  ;;  %v1623_v26 = vsel %vm280_vm2, %v1612_v47, %v4923_v2  ;;  %v2150_v34 = vpop.f32.mrf.mxu1 }
 0x1b1   :  { %v371_v40 = vmax.f32 %v292_v55, %v361_v57  ;;  %v4934_v15 = vmax.f32 %v1587_v63, %v1623_v26  ;;  %v4960_v24 = vadd.f32 %v2150_v34, %v3778_v25  ;;  %v1012_v55 = vmax.f32 %v5819_v21, %v4720_v19  ;;  %v2222_v26 = vpop.f32.mrf.mxu0 }
 0x1b2   :  { %379 = vst.msk [vmem:[%s5630_s3 + $0x18] sm:$0xff] %vm376_vm4, %v372_v11  ;;  %v1452_v57 = vadd.f32 %v4515_v9, %v3754_v20  ;;  %v1455_v11 = vadd.f32 %v4556_v43, %v3778_v25  ;;  %v4988_v43 = vadd.f32 %v2199_v23, %v3754_v20  ;;  %v2223_v19 = vadd.f32 %v2222_v26, %v3681_v58 }
 0x1b3   :  { %378 = vst [vmem:[%s5630_s3 + $0x10] sm:$0xff] %v371_v40  ;;  %v5721_v29 = vmax.f32 %v4960_v24, 0.0 }
 0x1b4   :  { %2285 = vrot.lane.b32.xlu2 %v5720_v22, %s3143_s26  ;;  %5818 = vst [vmem:[#allocation52_spill] sm:$0xff] %v4960_v24  ;;  %v1599_v53 = vmax.f32 %v1455_v11, 0.0  ;;  %v2261_v21 = vmax.f32 %v2223_v19, 0.0 }
 0x1b5   :  { %2317 = vrot.lane.b32.xlu0 %v5729_v48, %s3143_s26  ;;  %1027 = vrot.lane.b32.xlu1 %v1011_v50, %s3144_s0  ;;  %v5839_v48 = vld [vmem:[#allocation23_spill] sm:$0xff] }
 0x1b6   :  { %v1652_v47 = vpop.permute.xlu2 %1651 }
 0x1b7   :  { %v1648_v46 = vpop.permute.xlu0 %1647  ;;  %v356_v8 = vpop.permute.xlu1 %355 }
 0x1b8   :  { %v362_v16 = vsel %vm359_vm3, %v356_v8, %v358_v4  ;;  %v1593_v4 = vmax.f32 %v1452_v57, 0.0  ;;  %v2248_v50 = vpop.f32.mrf.mxu1 }
 0x1b9   :  { %v373_v63 = vmax.f32 %v294_v10, %v362_v16  ;;  %v2202_v10 = vpop.f32.mrf.mxu3  ;;  %v5727_v16 = vmax.f32 %v4988_v43, 0.0 }
 0x1bb   :  { %380 = vst [vmem:[%s5630_s3 + $0x20] sm:$0xf] %v373_v63  ;;  %v5015_v63 = vadd.f32 %v2202_v10, %v3778_v25  ;;  %v5030_v10 = vpop.f32.mrf.mxu2 }
 0x1bc   :  { %1029 = vrot.lane.b32.xlu2 %v1012_v55, %s3144_s0 }
 0x1bd   :  { %2287 = vrot.lane.b32.xlu0 %v5728_v44, %s3143_s26  ;;  %2289 = vrot.lane.b32.xlu1 %v5721_v29, %s3143_s26 }
 0x1be   :  { %v4985_v9 = vpop.permute.xlu2 %1657 }
 0x1bf   :  { %v4991_v40 = vpop.permute.xlu0 %1617  ;;  %v1620_v3 = vpop.permute.xlu1 %1619 }
 0x1c0   :  { %v1624_v34 = vsel %vm280_vm2, %v4844_v39, %v4991_v40  ;;  %v1625_v31 = vsel %vm280_vm2, %v1620_v3, %v4912_v14  ;;  %v2249_v39 = vadd.f32 %v2248_v50, %v3681_v58  ;;  %v2251_v3 = vpop.f32.mrf.mxu1  ;;  %v5821_v50 = vmax.f32 %v4364_v32, 0.0 }
 0x1c1   :  { %v4999_v23 = vmax.f32 %v1593_v4, %v1624_v34  ;;  %v5001_v8 = vmax.f32 %v1599_v53, %v1625_v31  ;;  %v5724_v53 = vmax.f32 %v5015_v63, 0.0  ;;  %v2479_v31 = vpop.f32.mrf.mxu3  ;;  %v2252_v7 = vadd.f32 %v2251_v3, %v3754_v20 }
 0x1c2   :  { %v2262_v4 = vmax.f32 %v2249_v39, 0.0  ;;  %v1343_v34 = vmax.f32 %v5821_v50, %v1331_v33 }
 0x1c3   :  { %5820 = vst [vmem:[#allocation53_spill] sm:$0xff] %v5001_v8  ;;  %v2268_v50 = vmax.f32 %v2252_v7, 0.0 }
 0x1c4   :  { %2291 = vrot.lane.b32.xlu2 %v5725_v62, %s3143_s26 }
 0x1c5   :  { %2323 = vrot.lane.b32.xlu0 %v5727_v16, %s3143_s26  ;;  %2319 = vrot.lane.b32.xlu1 %v2261_v21, %s3143_s26 }
 0x1c6   :  { %v5012_v55 = vpop.permute.xlu2 %688 }
 0x1c7   :  { %v1654_v57 = vpop.permute.xlu0 %1653  ;;  %v1650_v11 = vpop.permute.xlu1 %1649 }
 0x1c8   :  { %v5021_v26 = vsel %vm280_vm2, %v1648_v46, %v1650_v11  ;;  %v5024_v19 = vsel %vm280_vm2, %v1650_v11, %v1652_v47  ;;  %v5822_v47 = vmax.f32 %v3902_v18, 0.0  ;;  %v5043_v46 = vadd.f32 %v2479_v31, %v3681_v58  ;;  %v5826_v18 = vld [vmem:[#allocation18_spill] sm:$0xff] }
 0x1c9   :  { %v444_v11 = vadd.f32 %v3852_v54, %v3681_v58  ;;  %v618_v31 = vsel %vm280_vm2, %v5826_v18, %v4525_v42  ;;  %v2254_v54 = vpop.f32.mrf.mxu1  ;;  %v5827_v18 = vld [vmem:[#allocation14_spill] sm:$0xff] }
 0x1ca   :  { %v628_v32 = vmax.f32 %v5822_v47, %v4525_v42  ;;  %5823 = vst [vmem:[#allocation54_spill] sm:$0xff] %v5043_v46  ;;  %v5722_v3 = vmax.f32 %v5043_v46, 0.0  ;;  %v5066_v47 = vpop.f32.mrf.mxu2 }
 0x1cb   :  { %v582_v7 = vmax.f32 %v444_v11, 0.0 }
 0x1cc   :  { %2321 = vrot.lane.b32.xlu2 %v2262_v4, %s3143_s26  ;;  %v2225_v4 = vpop.f32.mrf.mxu0 }
 0x1cd   :  { %2329 = vrot.lane.b32.xlu0 %v5724_v53, %s3143_s26  ;;  %1356 = vrot.lane.b32.xlu1 %v1343_v34, %s3144_s0  ;;  %v5824_v34 = vld [vmem:[#allocation13_spill] sm:$0xff] }
 0x1ce   :  { %v5037_v6 = vpop.permute.xlu2 %1950  ;;  %v5825_v22 = vmax.f32 %v5824_v34, 0.0 }
 0x1cf   :  { %v5045_v21 = vpop.permute.xlu0 %1659  ;;  %v687_v39 = vpop.permute.xlu1 %686 }
 0x1d0   :  { %v706_v33 = vmax.f32 %v628_v32, %v687_v39  ;;  %v1342_v29 = vmax.f32 %v5825_v22, %v4800_v36  ;;  %v2226_v22 = vadd.f32 %v2225_v4, %v3754_v20  ;;  %v627_v32 = vmax.f32 %v582_v7, %v618_v31  ;;  %v5829_v4 = vld [vmem:[#allocation15_spill] sm:$0xff]  ;;  %v2482_v31 = vpop.f32.mrf.mxu3 }
 0x1d1   :  { %v5830_v53 = vmax.f32 %v5829_v4, 0.0  ;;  %v5834_v4 = vld [vmem:[#allocation22_spill] sm:$0xff] }
 0x1d2   :  { %2805 = vst.msk [vmem:[%s5630_s3 + $0x38] sm:$0xff] %vm376_vm4, %v706_v33  ;;  %v2267_v37 = vmax.f32 %v2226_v22, 0.0  ;;  %v2531_v22 = vpop.f32.mrf.mxu1 }
 0x1d3   :  { %v1345_v62 = vmax.f32 %v5830_v53, %v4824_v51  ;;  %v5092_v51 = vadd.f32 %v2482_v31, %v3754_v20  ;;  %v5835_v31 = vld [vmem:[#allocation2_spill] sm:$0xff] }
 0x1d4   :  { %2327 = vrot.lane.b32.xlu2 %v2268_v50, %s3143_s26  ;;  %v2228_v7 = vpop.f32.mrf.mxu0 }
 0x1d5   :  { %2616 = vrot.lane.b32.xlu1 %v5722_v3, %s3143_s26  ;;  %1354 = vrot.lane.b32.xlu0 %v1342_v29, %s3144_s0  ;;  %v5828_v3 = vmax.f32 %v5827_v18, 0.0  ;;  %5833 = vst [vmem:[#allocation13_spill] sm:$0xff] %v5092_v51  ;;  %v2229_v53 = vadd.f32 %v2228_v7, %v3778_v25 }
 0x1d6   :  { %v1664_v36 = vpop.permute.xlu2 %1663 }
 0x1d7   :  { %v685_v33 = vpop.permute.xlu0 %684  ;;  %v5068_v50 = vpop.permute.xlu1 %1655  ;;  %v1344_v29 = vmax.f32 %v5828_v3, %v4820_v1  ;;  %v2255_v1 = vadd.f32 %v2254_v54, %v3778_v25  ;;  %v5726_v54 = vmax.f32 %v5092_v51, 0.0  ;;  %v5841_v51 = vld [vmem:[#allocation17_spill] sm:$0xff] }
 0x1d8   :  { %v696_v34 = vsel %vm359_vm3, %v685_v33, %v687_v39  ;;  %v5073_v42 = vsel %vm280_vm2, %v1654_v57, %v5068_v50  ;;  %v5831_v57 = vld [vmem:[#allocation3_spill] sm:$0xff]  ;;  %v2485_v17 = vpop.f32.mrf.mxu3  ;;  %v5842_v46 = vmax.f32 %v5841_v51, 0.0 }
 0x1d9   :  { %v705_v11 = vmax.f32 %v627_v32, %v696_v34  ;;  %v5832_v39 = vmax.f32 %v5831_v57, 0.0 }
 0x1da   :  { %v1346_v0 = vmax.f32 %v5842_v46, %v4886_v5  ;;  %v5151_v5 = vadd.f32 %v2485_v17, %v3778_v25 }
 0x1db   :  { %2804 = vst [vmem:[%s5630_s3 + $0x30] sm:$0xff] %v705_v11  ;;  %v632_v33 = vmax.f32 %v5832_v39, %v4508_v60  ;;  %v5121_v39 = vadd.f32 %v2531_v22, %v3681_v58 }
 0x1dc   :  { %1358 = vrot.lane.b32.xlu2 %v1344_v29, %s3144_s0  ;;  %v2273_v29 = vmax.f32 %v2229_v53, 0.0  ;;  %v2505_v57 = vpop.f32.mrf.mxu0  ;;  %5843 = vst [vmem:[#allocation18_spill] sm:$0xff] %v5151_v5  ;;  %v5734_v51 = vmax.f32 %v5151_v5, 0.0 }
 0x1dd   :  { %2325 = vrot.lane.b32.xlu1 %v2267_v37, %s3143_s26  ;;  %1360 = vrot.lane.b32.xlu0 %v1345_v62, %s3144_s0  ;;  %v2274_v37 = vmax.f32 %v2255_v1, 0.0  ;;  %v5107_v62 = vpop.f32.mrf.mxu2  ;;  %v5737_v22 = vmax.f32 %v5121_v39, 0.0 }
 0x1de   :  { %v695_v3 = vpop.permute.xlu2 %694 }
 0x1df   :  { %v710_v32 = vmax.f32 %v632_v33, %v695_v3  ;;  %v5095_v34 = vpop.permute.xlu0 %1946  ;;  %v5097_v18 = vpop.permute.xlu1 %1661 }
 0x1e0   :  { %v5105_v60 = vsel %vm280_vm2, %v5097_v18, %v1664_v36  ;;  %v5836_v36 = vmax.f32 %v5835_v31, 0.0 }
 0x1e1   :  { %2809 = vst.msk [vmem:[%s5630_s3 + $0x58] sm:$0xf] %vm381_vm5, %v710_v32 }
 0x1e2   :  { %v630_v7 = vmax.f32 %v5836_v36, %v5834_v4  ;;  %v5840_v4 = vld [vmem:[#allocation21_spill] sm:$0xff] }
 0x1e4   :  { %2333 = vrot.lane.b32.xlu2 %v2274_v37, %s3143_s26 }
 0x1e5   :  { %2331 = vrot.lane.b32.xlu1 %v2273_v29, %s3143_s26  ;;  %2620 = vrot.lane.b32.xlu0 %v5726_v54, %s3143_s26  ;;  %v2534_v29 = vpop.f32.mrf.mxu1  ;;  %v5837_v54 = vld [vmem:[#allocation16_spill] sm:$0xff] }
 0x1e6   :  { %v5115_v11 = vpop.permute.xlu2 %1986  ;;  %v5838_v16 = vmax.f32 %v5837_v54, 0.0  ;;  %v2508_v54 = vpop.f32.mrf.mxu0 }
 0x1e7   :  { %v691_v33 = vpop.permute.xlu0 %690  ;;  %v693_v1 = vpop.permute.xlu1 %692 }
 0x1e8   :  { %v697_v53 = vsel %vm359_vm3, %v5012_v55, %v691_v33  ;;  %v708_v32 = vmax.f32 %v630_v7, %v691_v33  ;;  %v698_v37 = vsel %vm359_vm3, %v693_v1, %v695_v3  ;;  %v1347_v44 = vmax.f32 %v5838_v16, %v4890_v27  ;;  %v2557_v55 = vpop.f32.mrf.mxu2  ;;  %v5844_v33 = vld [vmem:[#allocation38_spill] sm:$0xff] }
 0x1e9   :  { %v707_v31 = vmax.f32 %v5839_v48, %v697_v53  ;;  %v709_v36 = vmax.f32 %v5840_v4, %v698_v37  ;;  %v2558_v48 = vadd.f32 %v2557_v55, %v3681_v58  ;;  %v5157_v16 = vadd.f32 %v2534_v29, %v3754_v20 }
 0x1ea   :  { %2807 = vst.msk [vmem:[%s5630_s3 + $0x48] sm:$0xff] %vm376_vm4, %v708_v32  ;;  %v1790_v3 = vadd.f32 %v4708_v12, %v3778_v25  ;;  %v1784_v7 = vadd.f32 %v4652_v41, %v3681_v58  ;;  %v1787_v1 = vadd.f32 %v5844_v33, %v3754_v20  ;;  %v5177_v32 = vadd.f32 %v2505_v57, %v3681_v58  ;;  %v2583_v41 = vpop.f32.mrf.mxu3 }
 0x1eb   :  { %2806 = vst [vmem:[%s5630_s3 + $0x40] sm:$0xff] %v707_v31  ;;  %v5735_v17 = vmax.f32 %v5157_v16, 0.0  ;;  %v5182_v29 = vadd.f32 %v2508_v54, %v3754_v20 }
 0x1ec   :  { %1364 = vrot.lane.b32.xlu2 %v1347_v44, %s3144_s0  ;;  %2808 = vst [vmem:[%s5630_s3 + $0x50] sm:$0xf] %v709_v36  ;;  %v1934_v12 = vmax.f32 %v1790_v3, 0.0  ;;  %v1922_v36 = vmax.f32 %v1784_v7, 0.0  ;;  %v1928_v55 = vmax.f32 %v1787_v1, 0.0  ;;  %v5739_v33 = vmax.f32 %v5177_v32, 0.0 }
 0x1ed   :  { %2652 = vrot.lane.b32.xlu0 %v5737_v22, %s3143_s26  ;;  %1362 = vrot.lane.b32.xlu1 %v1346_v0, %s3144_s0  ;;  %v2596_v0 = vmax.f32 %v2558_v48, 0.0  ;;  %v2537_v53 = vpop.f32.mrf.mxu1  ;;  %v5738_v7 = vmax.f32 %v5182_v29, 0.0 }
 0x1ee   :  { %v5153_v27 = vpop.permute.xlu2 %1992  ;;  %v5185_v31 = vadd.f32 %v2537_v53, %v3778_v25 }
 0x1ef   :  { %v5159_v44 = vpop.permute.xlu0 %1982  ;;  %v1955_v46 = vpop.permute.xlu1 %1954 }
 0x1f0   :  { %5846 = vst [vmem:[#allocation15_spill] sm:$0xff] %v5185_v31  ;;  %v5736_v1 = vmax.f32 %v5185_v31, 0.0 }
 0x1f4   :  { %2624 = vrot.lane.b32.xlu2 %v5734_v51, %s3143_s26  ;;  %v2586_v51 = vpop.f32.mrf.mxu3 }
 0x1f5   :  { %2658 = vrot.lane.b32.xlu0 %v5735_v17, %s3143_s26  ;;  %2654 = vrot.lane.b32.xlu1 %v2596_v0, %s3143_s26 }
 0x1f6   :  { %v5179_v37 = vpop.permute.xlu2 %1956 }
 0x1f7   :  { %5845 = vst [vmem:[#allocation14_spill] sm:$0xff] %v5179_v37  ;;  %v1960_v4 = vsel %vm280_vm2, %v1955_v46, %v5179_v37  ;;  %v5191_v3 = vpop.permute.xlu0 %1952  ;;  %v5193_v57 = vpop.permute.xlu1 %1948  ;;  %v5861_v37 = vld [vmem:[#allocation30_spill] sm:$0xff] }
 0x1f8   :  { %v5189_v48 = vmax.f32 %v1934_v12, %v1960_v4  ;;  %5848 = vst [vmem:[#allocation22_spill] sm:$0xff] %v5191_v3  ;;  %v1959_v0 = vsel %vm280_vm2, %v5037_v6, %v5191_v3  ;;  %v1958_v54 = vsel %vm280_vm2, %v5095_v34, %v5193_v57  ;;  %v2560_v12 = vpop.f32.mrf.mxu2  ;;  %v2511_v4 = vpop.f32.mrf.mxu0  ;;  %v2584_v6 = vadd.f32 %v2583_v41, %v3681_v58 }
 0x1f9   :  { %5849 = vst [vmem:[#allocation2_spill] sm:$0xff] %v5193_v57  ;;  %v5202_v53 = vmax.f32 %v1928_v55, %v1959_v0  ;;  %v5204_v46 = vmax.f32 %v1922_v36, %v1958_v54  ;;  %v2561_v36 = vadd.f32 %v2560_v12, %v3754_v20  ;;  %v5222_v55 = vadd.f32 %v2511_v4, %v3778_v25  ;;  %v5858_v57 = vld [vmem:[#allocation5_spill] sm:$0xff] }
 0x1fa   :  { %5847 = vst [vmem:[#allocation3_spill] sm:$0xff] %v5189_v48  ;;  %v2597_v17 = vmax.f32 %v2584_v6, 0.0  ;;  %v2587_v41 = vadd.f32 %v2586_v51, %v3754_v20  ;;  %v5852_v6 = vld [vmem:[#allocation4_spill] sm:$0xff]  ;;  %v5862_v31 = vmax.f32 %v5861_v37, 0.0 }
 0x1fb   :  { %5850 = vst [vmem:[#allocation16_spill] sm:$0xff] %v5202_v53  ;;  %v5743_v22 = vmax.f32 %v5222_v55, 0.0  ;;  %v5857_v53 = vld [vmem:[#allocation32_spill] sm:$0xff] }
 0x1fc   :  { %5851 = vst [vmem:[#allocation23_spill] sm:$0xff] %v5204_v46  ;;  %2618 = vrot.lane.b32.xlu2 %v5739_v33, %s3143_s26  ;;  %v2603_v33 = vmax.f32 %v2587_v41, 0.0  ;;  %v2589_v5 = vpop.f32.mrf.mxu3 }
 0x1fd   :  { %2664 = vrot.lane.b32.xlu0 %v5736_v1, %s3143_s26  ;;  %2622 = vrot.lane.b32.xlu1 %v5738_v7, %s3143_s26  ;;  %v2602_v1 = vmax.f32 %v2561_v36, 0.0  ;;  %v779_v36 = vadd.f32 %v5852_v6, %v3681_v58  ;;  %v2590_v6 = vadd.f32 %v2589_v5, %v3778_v25 }
 0x1fe   :  { %v5218_v34 = vpop.permute.xlu2 %1998 }
 0x1ff   :  { %v5224_v0 = vpop.permute.xlu0 %1988  ;;  %v5226_v54 = vpop.permute.xlu1 %1984  ;;  %v917_v51 = vmax.f32 %v779_v36, 0.0  ;;  %v2609_v5 = vmax.f32 %v2590_v6, 0.0 }
 0x200   :  { %v2563_v46 = vpop.f32.mrf.mxu2 }
 0x204   :  { %2656 = vrot.lane.b32.xlu2 %v2597_v17, %s3143_s26  ;;  %v5853_v17 = vld [vmem:[#allocation20_spill] sm:$0xff] }
 0x205   :  { %2626 = vrot.lane.b32.xlu0 %v5743_v22, %s3143_s26  ;;  %2660 = vrot.lane.b32.xlu1 %v2602_v1, %s3143_s26  ;;  %v5854_v24 = vmax.f32 %v5853_v17, 0.0  ;;  %v5855_v22 = vld [vmem:[#allocation25_spill] sm:$0xff]  ;;  %v5859_v17 = vmax.f32 %v5858_v57, 0.0 }
 0x206   :  { %v1024_v12 = vpop.permute.xlu2 %1023  ;;  %v5856_v48 = vmax.f32 %v5855_v22, 0.0  ;;  %v5860_v22 = vld [vmem:[#allocation33_spill] sm:$0xff] }
 0x207   :  { %v5235_v4 = vpop.permute.xlu0 %1994  ;;  %v5237_v7 = vpop.permute.xlu1 %1990  ;;  %v1677_v30 = vmax.f32 %v5854_v24, %v5021_v26  ;;  %v963_v24 = vmax.f32 %v5859_v17, %v5857_v53  ;;  %v2564_v26 = vadd.f32 %v2563_v46, %v3778_v25 }
 0x208   :  { %v1678_v1 = vmax.f32 %v5856_v48, %v5024_v19  ;;  %v962_v19 = vmax.f32 %v917_v51, %v5860_v22  ;;  %v1668_v48 = vsel %vm280_vm2, %v5068_v50, %v4985_v9  ;;  %v5863_v9 = vld [vmem:[#allocation29_spill] sm:$0xff]  ;;  %v1669_v51 = vsel %vm280_vm2, %v5045_v21, %v5097_v18 }
 0x209   :  { %v2608_v8 = vmax.f32 %v2564_v26, 0.0  ;;  %v1680_v57 = vmax.f32 %v5862_v31, %v1668_v48  ;;  %v5864_v50 = vld [vmem:[#allocation9_spill] sm:$0xff]  ;;  %v5867_v26 = vld [vmem:[#allocation26_spill] sm:$0xff]  ;;  %v5869_v48 = vld [vmem:[#allocation28_spill] sm:$0xff] }
 0x20a   :  { %v5865_v53 = vmax.f32 %v5864_v50, 0.0  ;;  %v5868_v22 = vmax.f32 %v5867_v26, 0.0  ;;  %v5870_v21 = vmax.f32 %v5869_v48, 0.0 }
 0x20c   :  { %2662 = vrot.lane.b32.xlu2 %v2603_v33, %s3143_s26  ;;  %v967_v46 = vmax.f32 %v5865_v53, %v5863_v9  ;;  %v1681_v18 = vmax.f32 %v5870_v21, %v1669_v51  ;;  %v5876_v53 = vld [vmem:[#allocation35_spill] sm:$0xff]  ;;  %v2003_v51 = vsel %vm280_vm2, %v5237_v7, %v5153_v27  ;;  %v5880_v27 = vld [vmem:[#allocation41_spill] sm:$0xff] }
 0x20d   :  { %1691 = vrot.lane.b32.xlu1 %v1678_v1, %s3144_s0  ;;  %1689 = vrot.lane.b32.xlu0 %v1677_v30, %s3144_s0  ;;  %v5878_v21 = vld [vmem:[#allocation31_spill] sm:$0xff] }
 0x20e   :  { %v5251_v41 = vpop.permute.xlu2 %2285 }
 0x20f   :  { %v1020_v33 = vpop.permute.xlu0 %1019  ;;  %v1022_v1 = vpop.permute.xlu1 %1021 }
 0x210   :  { %v1031_v30 = vsel %vm359_vm3, %v1020_v33, %v1022_v1  ;;  %v1041_v36 = vmax.f32 %v963_v24, %v1022_v1  ;;  %v5871_v33 = vld [vmem:[#allocation42_spill] sm:$0xff] }
 0x211   :  { %v1040_v3 = vmax.f32 %v962_v19, %v1031_v30  ;;  %v1679_v19 = vmax.f32 %v5868_v22, %v5073_v42  ;;  %v5872_v1 = vmax.f32 %v5871_v33, 0.0  ;;  %v2119_v30 = vadd.f32 %v4839_v59, %v3681_v58  ;;  %v5874_v42 = vld [vmem:[#allocation8_spill] sm:$0xff] }
 0x212   :  { %2859 = vst.msk [vmem:[%s5630_s3 + $0x68] sm:$0xff] %vm376_vm4, %v1041_v36  ;;  %v5875_v9 = vmax.f32 %v5874_v42, 0.0  ;;  %v2001_v59 = vsel %vm280_vm2, %v5226_v54, %v5115_v11 }
 0x213   :  { %2858 = vst [vmem:[%s5630_s3 + $0x60] sm:$0xff] %v1040_v3  ;;  %v2000_v3 = vsel %vm280_vm2, %v5159_v44, %v5226_v54 }
 0x214   :  { %2668 = vrot.lane.b32.xlu2 %v2609_v5, %s3143_s26  ;;  %v2012_v44 = vmax.f32 %v5872_v1, %v2000_v3  ;;  %v5881_v1 = vmax.f32 %v5880_v27, 0.0 }
 0x215   :  { %2666 = vrot.lane.b32.xlu1 %v2608_v8, %s3143_s26  ;;  %1695 = vrot.lane.b32.xlu0 %v1680_v57, %s3144_s0  ;;  %v5866_v8 = vld [vmem:[#allocation6_spill] sm:$0xff] }
 0x216   :  { %v1030_v37 = vpop.permute.xlu2 %1029  ;;  %v782_v24 = vadd.f32 %v5866_v8, %v3754_v20  ;;  %v5873_v57 = vld [vmem:[#allocation34_spill] sm:$0xff] }
 0x217   :  { %v1045_v31 = vmax.f32 %v967_v46, %v1030_v37  ;;  %v2282_v6 = vpop.permute.xlu0 %2281  ;;  %v1997_v17 = vpop.permute.xlu1 %1996  ;;  %v965_v50 = vmax.f32 %v5875_v9, %v5873_v57 }
 0x218   :  { %v923_v36 = vmax.f32 %v782_v24, 0.0  ;;  %v2004_v42 = vsel %vm280_vm2, %v5235_v4, %v1997_v17  ;;  %v2005_v4 = vsel %vm280_vm2, %v1997_v17, %v5218_v34 }
 0x219   :  { %2863 = vst.msk [vmem:[%s5630_s3 + $0x88] sm:$0xf] %vm381_vm5, %v1045_v31  ;;  %v2257_v31 = vmax.f32 %v2119_v30, 0.0  ;;  %v5882_v30 = vmax.f32 %v4764_v28, 0.0  ;;  %v2002_v28 = vsel %vm280_vm2, %v5224_v0, %v5237_v7  ;;  %v2125_v7 = vadd.f32 %v4932_v38, %v3778_v25 }
 0x21a   :  { %v964_v46 = vmax.f32 %v923_v36, %v5876_v53  ;;  %v5883_v36 = vld [vmem:[#allocation36_spill] sm:$0xff] }
 0x21c   :  { %1693 = vrot.lane.b32.xlu2 %v1679_v19, %s3144_s0  ;;  %v5877_v19 = vld [vmem:[#allocation7_spill] sm:$0xff] }
 0x21d   :  { %1697 = vrot.lane.b32.xlu1 %v1681_v18, %s3144_s0  ;;  %2024 = vrot.lane.b32.xlu0 %v2012_v44, %s3144_s0  ;;  %v785_v48 = vadd.f32 %v5877_v19, %v3778_v25  ;;  %v5879_v18 = vmax.f32 %v5878_v21, 0.0  ;;  %v2013_v44 = vmax.f32 %v5881_v1, %v2001_v59 }
 0x21e   :  { %v5301_v5 = vpop.permute.xlu2 %2291 }
 0x21f   :  { %v1026_v3 = vpop.permute.xlu0 %1025  ;;  %v5313_v8 = vpop.permute.xlu1 %2283  ;;  %v1682_v11 = vmax.f32 %v5879_v18, %v5105_v60  ;;  %v929_v60 = vmax.f32 %v785_v48, 0.0  ;;  %v5887_v48 = vmax.f32 %v4794_v35, 0.0 }
 0x220   :  { %v1032_v24 = vsel %vm359_vm3, %v1024_v12, %v1026_v3  ;;  %v1043_v26 = vmax.f32 %v965_v50, %v1026_v3  ;;  %v2293_v22 = vsel %vm280_vm2, %v2282_v6, %v5313_v8  ;;  %v2015_v12 = vmax.f32 %v5882_v30, %v2003_v51 }
 0x221   :  { %v1042_v54 = vmax.f32 %v964_v46, %v1032_v24  ;;  %v5323_v33 = vmax.f32 %v2257_v31, %v2293_v22  ;;  %v966_v57 = vmax.f32 %v929_v60, %v5883_v36  ;;  %v5884_v46 = vld [vmem:[#allocation43_spill] sm:$0xff]  ;;  %v5886_v3 = vmax.f32 %v4809_v45, 0.0 }
 0x222   :  { %2861 = vst.msk [vmem:[%s5630_s3 + $0x78] sm:$0xff] %vm376_vm4, %v1043_v26  ;;  %v5885_v31 = vmax.f32 %v5884_v46, 0.0  ;;  %v2122_v26 = vadd.f32 %v4873_v13, %v3754_v20  ;;  %v2017_v21 = vmax.f32 %v5887_v48, %v2005_v4  ;;  %v5889_v30 = vmax.f32 %v4918_v61, 0.0  ;;  %v5890_v60 = vld [vmem:[#allocation47_spill] sm:$0xff]  ;;  %v5894_v61 = vld [vmem:[#allocation12_spill] sm:$0xff]  ;;  %v5897_v4 = vld [vmem:[#allocation46_spill] sm:$0xff] }
 0x223   :  { %2860 = vst [vmem:[%s5630_s3 + $0x70] sm:$0xff] %v1042_v54  ;;  %v2016_v24 = vmax.f32 %v5886_v3, %v2004_v42 }
 0x224   :  { %1699 = vrot.lane.b32.xlu2 %v1682_v11, %s3144_s0  ;;  %v2014_v59 = vmax.f32 %v5885_v31, %v2002_v28  ;;  %v2263_v45 = vmax.f32 %v2122_v26, 0.0  ;;  %v5891_v28 = vld [vmem:[#allocation10_spill] sm:$0xff] }
 0x225   :  { %2026 = vrot.lane.b32.xlu1 %v2013_v44, %s3144_s0  ;;  %2030 = vrot.lane.b32.xlu0 %v2015_v12, %s3144_s0  ;;  %v5892_v36 = vmax.f32 %v5891_v28, 0.0 }
 0x226   :  { %v2322_v6 = vpop.permute.xlu2 %2321 }
 0x227   :  { %v2318_v9 = vpop.permute.xlu0 %2317  ;;  %v1028_v50 = vpop.permute.xlu1 %1027 }
 0x228   :  { %v1033_v53 = vsel %vm359_vm3, %v1028_v50, %v1030_v37  ;;  %v2269_v37 = vmax.f32 %v2125_v7, 0.0 }
 0x229   :  { %v1044_v51 = vmax.f32 %v966_v57, %v1033_v53  ;;  %v1298_v57 = vmax.f32 %v5892_v36, %v5890_v60  ;;  %v5902_v60 = vmax.f32 %v4988_v43, 0.0 }
 0x22b   :  { %2862 = vst [vmem:[%s5630_s3 + $0x80] sm:$0xf] %v1044_v51 }
 0x22c   :  { %2028 = vrot.lane.b32.xlu2 %v2014_v59, %s3144_s0 }
 0x22d   :  { %2032 = vrot.lane.b32.xlu1 %v2016_v24, %s3144_s0  ;;  %v5896_v24 = vld [vmem:[#allocation49_spill] sm:$0xff] }
 0x22e   :  { %v2328_v0 = vpop.permute.xlu2 %2327 }
 0x22f   :  { %v5361_v22 = vpop.permute.xlu0 %2287  ;;  %v2290_v13 = vpop.permute.xlu1 %2289 }
 0x230   :  { %v2294_v38 = vsel %vm280_vm2, %v5251_v41, %v5361_v22  ;;  %v2295_v19 = vsel %vm280_vm2, %v2290_v13, %v5301_v5  ;;  %v5888_v41 = vmax.f32 %v4871_v52, 0.0  ;;  %v5893_v52 = vld [vmem:[#allocation44_spill] sm:$0xff] }
 0x231   :  { %v5370_v18 = vmax.f32 %v2263_v45, %v2294_v38  ;;  %v5372_v11 = vmax.f32 %v2269_v37, %v2295_v19  ;;  %v5898_v45 = vld [vmem:[#allocation11_spill] sm:$0xff] }
 0x232   :  { %v5899_v37 = vmax.f32 %v5898_v45, 0.0 }
 0x234   :  { %2034 = vrot.lane.b32.xlu2 %v2017_v21, %s3144_s0  ;;  %v1300_v13 = vmax.f32 %v5899_v37, %v5897_v4  ;;  %v5907_v4 = vmax.f32 %v5121_v39, 0.0  ;;  %v2460_v39 = vadd.f32 %v5107_v62, %v3778_v25  ;;  %v5910_v62 = vld [vmem:[#allocation27_spill] sm:$0xff] }
 0x236   :  { %v1359_v34 = vpop.permute.xlu2 %1358 }
 0x237   :  { %v2324_v17 = vpop.permute.xlu0 %2323  ;;  %v2320_v54 = vpop.permute.xlu1 %2319 }
 0x238   :  { %v2335_v27 = vsel %vm280_vm2, %v2318_v9, %v2320_v54  ;;  %v2336_v1 = vsel %vm280_vm2, %v2320_v54, %v2322_v6  ;;  %v5895_v6 = vmax.f32 %v5894_v61, 0.0 }
 0x239   :  { %v2347_v44 = vmax.f32 %v5888_v41, %v2335_v27  ;;  %v2348_v35 = vmax.f32 %v5889_v30, %v2336_v1  ;;  %v2454_v1 = vadd.f32 %v5030_v10, %v3681_v58  ;;  %v5900_v41 = vld [vmem:[#allocation48_spill] sm:$0xff]  ;;  %v5901_v30 = vmax.f32 %v4957_v49, 0.0 }
 0x23a   :  { %v1302_v53 = vmax.f32 %v5895_v6, %v5893_v52 }
 0x23b   :  { %2361 = vrot.lane.b32.xlu1 %v2348_v35, %s3144_s0  ;;  %2359 = vrot.lane.b32.xlu0 %v2347_v44, %s3144_s0  ;;  %v2592_v58 = vmax.f32 %v2454_v1, 0.0 }
 0x23e   :  { %v2334_v12 = vpop.permute.xlu2 %2333 }
 0x23f   :  { %v2330_v42 = vpop.permute.xlu0 %2329  ;;  %v1357_v50 = vpop.permute.xlu1 %1356 }
 0x240   :  { %v1376_v9 = vmax.f32 %v1298_v57, %v1357_v50  ;;  %v5903_v57 = vmax.f32 %v4983_v56, 0.0 }
 0x242   :  { %2913 = vst.msk [vmem:[%s5630_s3 + $0x98] sm:$0xff] %vm376_vm4, %v1376_v9  ;;  %v5904_v9 = vmax.f32 %v5015_v63, 0.0 }
 0x246   :  { %v1365_v46 = vpop.permute.xlu2 %1364 }
 0x247   :  { %v1380_v31 = vmax.f32 %v1302_v53, %v1365_v46  ;;  %v1355_v59 = vpop.permute.xlu0 %1354  ;;  %v2617_v51 = vpop.permute.xlu1 %2616 }
 0x248   :  { %v1366_v3 = vsel %vm359_vm3, %v1355_v59, %v1357_v50  ;;  %v5905_v59 = vld [vmem:[#allocation45_spill] sm:$0xff] }
 0x249   :  { %2917 = vst.msk [vmem:[%s5630_s3 + $0xb8] sm:$0xf] %vm381_vm5, %v1380_v31  ;;  %v1375_v26 = vmax.f32 %v5896_v24, %v1366_v3  ;;  %v5906_v24 = vmax.f32 %v5177_v32, 0.0 }
 0x24b   :  { %2912 = vst [vmem:[%s5630_s3 + $0x90] sm:$0xff] %v1375_v26 }
 0x24e   :  { %v2625_v7 = vpop.permute.xlu2 %2624 }
 0x24f   :  { %v1361_v38 = vpop.permute.xlu0 %1360  ;;  %v2326_v19 = vpop.permute.xlu1 %2325 }
 0x250   :  { %v1367_v48 = vsel %vm359_vm3, %v1359_v34, %v1361_v38  ;;  %v1378_v21 = vmax.f32 %v1300_v13, %v1361_v38  ;;  %v2337_v54 = vsel %vm280_vm2, %v2324_v17, %v2326_v19  ;;  %v2338_v27 = vsel %vm280_vm2, %v2326_v19, %v2328_v0 }
 0x251   :  { %v1377_v44 = vmax.f32 %v5900_v41, %v1367_v48  ;;  %v2349_v35 = vmax.f32 %v5901_v30, %v2337_v54  ;;  %v2350_v28 = vmax.f32 %v5902_v60, %v2338_v27  ;;  %v2604_v54 = vmax.f32 %v2460_v39, 0.0  ;;  %v5924_v39 = vld [vmem:[#allocation39_spill] sm:$0xff] }
 0x252   :  { %2915 = vst.msk [vmem:[%s5630_s3 + $0xa8] sm:$0xff] %vm376_vm4, %v1378_v21  ;;  %v5908_v30 = vmax.f32 %v5182_v29, 0.0  ;;  %v5909_v60 = vmax.f32 %v5157_v16, 0.0 }
 0x253   :  { %2914 = vst [vmem:[%s5630_s3 + $0xa0] sm:$0xff] %v1377_v44  ;;  %2365 = vrot.lane.b32.xlu0 %v2350_v28, %s3144_s0  ;;  %2363 = vrot.lane.b32.xlu2 %v2349_v35, %s3144_s0  ;;  %v5911_v28 = vmax.f32 %v5910_v62, 0.0 }
 0x256   :  { %v5424_v10 = vpop.permute.xlu2 %2618 }
 0x257   :  { %v2628_v49 = vsel %vm280_vm2, %v2617_v51, %v5424_v10  ;;  %v2621_v0 = vpop.permute.xlu0 %2620  ;;  %v2332_v34 = vpop.permute.xlu1 %2331 }
 0x258   :  { %v5428_v43 = vmax.f32 %v2592_v58, %v2628_v49  ;;  %v2339_v17 = vsel %vm280_vm2, %v2330_v42, %v2332_v34  ;;  %v2340_v36 = vsel %vm280_vm2, %v2332_v34, %v2334_v12  ;;  %v5912_v49 = vld [vmem:[#allocation19_spill] sm:$0xff] }
 0x259   :  { %v2351_v50 = vmax.f32 %v5903_v57, %v2339_v17  ;;  %v2352_v52 = vmax.f32 %v5904_v9, %v2340_v36 }
 0x25b   :  { %2369 = vrot.lane.b32.xlu2 %v2352_v52, %s3144_s0  ;;  %2367 = vrot.lane.b32.xlu1 %v2351_v50, %s3144_s0 }
 0x25e   :  { %v2657_v61 = vpop.permute.xlu2 %2656 }
 0x25f   :  { %v2653_v6 = vpop.permute.xlu0 %2652  ;;  %v1363_v53 = vpop.permute.xlu1 %1362 }
 0x260   :  { %v1368_v31 = vsel %vm359_vm3, %v1363_v53, %v1365_v46  ;;  %v2457_v46 = vadd.f32 %v5066_v47, %v3754_v20 }
 0x261   :  { %v1379_v51 = vmax.f32 %v5905_v59, %v1368_v31 }
 0x262   :  { %v2598_v13 = vmax.f32 %v2457_v46, 0.0 }
 0x263   :  { %2916 = vst [vmem:[%s5630_s3 + $0xb0] sm:$0xf] %v1379_v51 }
 0x266   :  { %v2663_v56 = vpop.permute.xlu2 %2662 }
 0x267   :  { %v2659_v12 = vpop.permute.xlu0 %2658  ;;  %v2655_v42 = vpop.permute.xlu1 %2654 }
 0x268   :  { %v2670_v63 = vsel %vm280_vm2, %v2653_v6, %v2655_v42  ;;  %v2671_v3 = vsel %vm280_vm2, %v2655_v42, %v2657_v61  ;;  %v5917_v42 = vld [vmem:[#allocation15_spill] sm:$0xff] }
 0x269   :  { %v2682_v26 = vmax.f32 %v5906_v24, %v2670_v63  ;;  %v2683_v45 = vmax.f32 %v5907_v4, %v2671_v3  ;;  %v5918_v63 = vmax.f32 %v5917_v42, 0.0 }
 0x26b   :  { %2696 = vrot.lane.b32.xlu1 %v2683_v45, %s3144_s0  ;;  %2694 = vrot.lane.b32.xlu0 %v2682_v26, %s3144_s0 }
 0x26e   :  { %v2669_v37 = vpop.permute.xlu2 %2668 }
 0x26f   :  { %v2665_v38 = vpop.permute.xlu0 %2664  ;;  %v5453_v19 = vpop.permute.xlu1 %2622 }
 0x270   :  { %v2629_v48 = vsel %vm280_vm2, %v2621_v0, %v5453_v19  ;;  %v5913_v0 = vmax.f32 %v5912_v49, 0.0 }
 0x271   :  { %v5457_v32 = vmax.f32 %v2598_v13, %v2629_v48  ;;  %v5922_v13 = vld [vmem:[#allocation53_spill] sm:$0xff]  ;;  %v5923_v48 = vld [vmem:[#allocation22_spill] sm:$0xff] }
 0x272   :  { %v1633_v34 = vmax.f32 %v5913_v0, %v4923_v2  ;;  %v5914_v2 = vld [vmem:[#allocation24_spill] sm:$0xff] }
 0x273   :  { %v5915_v9 = vmax.f32 %v5914_v2, 0.0 }
 0x275   :  { %v1635_v52 = vmax.f32 %v5915_v9, %v4991_v40  ;;  %v5919_v40 = vld [vmem:[#allocation14_spill] sm:$0xff] }
 0x276   :  { %v1694_v21 = vpop.permute.xlu2 %1693 }
 0x277   :  { %v5461_v20 = vpop.permute.xlu0 %2626  ;;  %v2661_v47 = vpop.permute.xlu1 %2660 }
 0x278   :  { %v2630_v27 = vsel %vm280_vm2, %v2625_v7, %v5461_v20  ;;  %v2672_v1 = vsel %vm280_vm2, %v2659_v12, %v2661_v47  ;;  %v2673_v41 = vsel %vm280_vm2, %v2661_v47, %v2663_v56  ;;  %v1637_v7 = vmax.f32 %v5911_v28, %v4912_v14  ;;  %v5926_v47 = vld [vmem:[#allocation2_spill] sm:$0xff]  ;;  %v5929_v28 = vld [vmem:[#allocation16_spill] sm:$0xff] }
 0x279   :  { %v5467_v44 = vmax.f32 %v2604_v54, %v2630_v27  ;;  %v2684_v35 = vmax.f32 %v5908_v30, %v2672_v1  ;;  %v2685_v25 = vmax.f32 %v5909_v60, %v2673_v41  ;;  %v5916_v56 = vmax.f32 %v5222_v55, 0.0  ;;  %v5927_v27 = vld [vmem:[#allocation37_spill] sm:$0xff] }
 0x27a   :  { %v5928_v1 = vmax.f32 %v5927_v27, 0.0 }
 0x27b   :  { %2700 = vrot.lane.b32.xlu0 %v2685_v25, %s3144_s0  ;;  %2698 = vrot.lane.b32.xlu2 %v2684_v35, %s3144_s0 }
 0x27c   :  { %v1968_v41 = vmax.f32 %v5928_v1, %v5926_v47 }
 0x27e   :  { %v1700_v58 = vpop.permute.xlu2 %1699 }
 0x27f   :  { %v1715_v17 = vmax.f32 %v1637_v7, %v1700_v58  ;;  %v1690_v36 = vpop.permute.xlu0 %1689  ;;  %v1692_v29 = vpop.permute.xlu1 %1691 }
 0x280   :  { %v1701_v16 = vsel %vm359_vm3, %v1690_v36, %v1692_v29  ;;  %v1711_v57 = vmax.f32 %v1633_v34, %v1692_v29  ;;  %v5931_v36 = vld [vmem:[#allocation3_spill] sm:$0xff] }
 0x281   :  { %2971 = vst.msk [vmem:[%s5630_s3 + $0xe8] sm:$0xf] %vm381_vm5, %v1715_v17  ;;  %v1710_v50 = vmax.f32 %v4934_v15, %v1701_v16  ;;  %v5932_v16 = vld [vmem:[#allocation50_spill] sm:$0xff] }
 0x282   :  { %2967 = vst.msk [vmem:[%s5630_s3 + $0xc8] sm:$0xff] %vm376_vm4, %v1711_v57  ;;  %v5933_v57 = vmax.f32 %v5932_v16, 0.0 }
 0x283   :  { %2966 = vst [vmem:[%s5630_s3 + $0xc0] sm:$0xff] %v1710_v50 }
 0x284   :  { %v2303_v50 = vmax.f32 %v5933_v57, %v5313_v8 }
 0x286   :  { %v2029_v14 = vpop.permute.xlu2 %2028 }
 0x287   :  { %v1696_v61 = vpop.permute.xlu0 %1695  ;;  %v2667_v6 = vpop.permute.xlu1 %2666 }
 0x288   :  { %v1702_v53 = vsel %vm359_vm3, %v1694_v21, %v1696_v61  ;;  %v1713_v31 = vmax.f32 %v1635_v52, %v1696_v61  ;;  %v2674_v15 = vsel %vm280_vm2, %v2665_v38, %v2667_v6  ;;  %v2675_v59 = vsel %vm280_vm2, %v2667_v6, %v2669_v37 }
 0x289   :  { %v1712_v51 = vmax.f32 %v4999_v23, %v1702_v53  ;;  %v2686_v12 = vmax.f32 %v5916_v56, %v2674_v15  ;;  %v2687_v3 = vmax.f32 %v5918_v63, %v2675_v59  ;;  %v5920_v23 = vld [vmem:[#allocation40_spill] sm:$0xff]  ;;  %v5925_v21 = vmax.f32 %v5924_v39, 0.0 }
 0x28a   :  { %2969 = vst.msk [vmem:[%s5630_s3 + $0xd8] sm:$0xff] %vm376_vm4, %v1713_v31  ;;  %v5921_v55 = vmax.f32 %v5920_v23, 0.0  ;;  %v5934_v53 = vld [vmem:[#allocation52_spill] sm:$0xff] }
 0x28b   :  { %2968 = vst [vmem:[%s5630_s3 + $0xd0] sm:$0xff] %v1712_v51  ;;  %2704 = vrot.lane.b32.xlu2 %v2687_v3, %s3144_s0  ;;  %2702 = vrot.lane.b32.xlu1 %v2686_v12, %s3144_s0  ;;  %v1970_v54 = vmax.f32 %v5925_v21, %v5923_v48  ;;  %v5935_v8 = vmax.f32 %v5934_v53, 0.0 }
 0x28c   :  { %v1972_v24 = vmax.f32 %v5921_v55, %v5919_v40 }
 0x28d   :  { %v2307_v31 = vmax.f32 %v5935_v8, %v5301_v5 }
 0x28e   :  { %v2035_v26 = vpop.permute.xlu2 %2034 }
 0x28f   :  { %v2050_v4 = vmax.f32 %v1972_v24, %v2035_v26  ;;  %v2025_v45 = vpop.permute.xlu0 %2024  ;;  %v1698_v46 = vpop.permute.xlu1 %1697 }
 0x290   :  { %v1703_v37 = vsel %vm359_vm3, %v1698_v46, %v1700_v58  ;;  %v5930_v58 = vld [vmem:[#allocation23_spill] sm:$0xff] }
 0x291   :  { %3025 = vst.msk [vmem:[%s5630_s3 + $0x118] sm:$0xf] %vm381_vm5, %v2050_v4  ;;  %v1714_v38 = vmax.f32 %v5922_v13, %v1703_v37 }
 0x293   :  { %2970 = vst [vmem:[%s5630_s3 + $0xe0] sm:$0xf] %v1714_v38 }
 0x297   :  { %v2031_v30 = vpop.permute.xlu0 %2030  ;;  %v2027_v35 = vpop.permute.xlu1 %2026 }
 0x298   :  { %v2037_v60 = vsel %vm359_vm3, %v2029_v14, %v2031_v30  ;;  %v2048_v25 = vmax.f32 %v1970_v54, %v2031_v30  ;;  %v2036_v62 = vsel %vm359_vm3, %v2025_v45, %v2027_v35  ;;  %v2046_v0 = vmax.f32 %v1968_v41, %v2027_v35 }
 0x299   :  { %v2047_v7 = vmax.f32 %v5929_v28, %v2037_v60  ;;  %v2045_v49 = vmax.f32 %v5930_v58, %v2036_v62 }
 0x29a   :  { %3023 = vst.msk [vmem:[%s5630_s3 + $0x108] sm:$0xff] %vm376_vm4, %v2048_v25 }
 0x29b   :  { %3022 = vst [vmem:[%s5630_s3 + $0x100] sm:$0xff] %v2047_v7 }
 0x29c   :  { %3020 = vst [vmem:[%s5630_s3 + $0xf0] sm:$0xff] %v2045_v49 }
 0x29d   :  { %3021 = vst.msk [vmem:[%s5630_s3 + $0xf8] sm:$0xff] %vm376_vm4, %v2046_v0 }
 0x29f   :  { %v2033_v34 = vpop.permute.xlu1 %2032 }
 0x2a0   :  { %v2038_v17 = vsel %vm359_vm3, %v2033_v34, %v2035_v26 }
 0x2a1   :  { %v2049_v29 = vmax.f32 %v5931_v36, %v2038_v17 }
 0x2a3   :  { %3024 = vst [vmem:[%s5630_s3 + $0x110] sm:$0xf] %v2049_v29 }
 0x2ad   :  { %v2360_v14 = vpop.permute.xlu0 %2359  ;;  %v2364_v2 = vpop.permute.xlu2 %2363 }
 0x2ae   :  { %v2362_v9 = vpop.permute.xlu1 %2361 }
 0x2af   :  { %v2371_v52 = vsel %vm359_vm3, %v2360_v14, %v2362_v9  ;;  %v2381_v61 = vmax.f32 %v2303_v50, %v2362_v9 }
 0x2b0   :  { %v2380_v6 = vmax.f32 %v5323_v33, %v2371_v52  ;;  %v5936_v33 = vld [vmem:[#allocation51_spill] sm:$0xff] }
 0x2b1   :  { %3075 = vst.msk [vmem:[%s5630_s3 + $0x128] sm:$0xff] %vm376_vm4, %v2381_v61  ;;  %v5937_v51 = vmax.f32 %v5936_v33, 0.0 }
 0x2b2   :  { %3074 = vst [vmem:[%s5630_s3 + $0x120] sm:$0xff] %v2380_v6 }
 0x2b3   :  { %v2305_v56 = vmax.f32 %v5937_v51, %v5361_v22 }
 0x2b5   :  { %v2370_v15 = vpop.permute.xlu2 %2369 }
 0x2b6   :  { %v2385_v59 = vmax.f32 %v2307_v31, %v2370_v15 }
 0x2b8   :  { %3079 = vst.msk [vmem:[%s5630_s3 + $0x148] sm:$0xf] %vm381_vm5, %v2385_v59 }
 0x2c5   :  { %v2366_v12 = vpop.permute.xlu0 %2365 }
 0x2c6   :  { %v2372_v42 = vsel %vm359_vm3, %v2364_v2, %v2366_v12  ;;  %v2383_v63 = vmax.f32 %v2305_v56, %v2366_v12 }
 0x2c7   :  { %v2382_v3 = vmax.f32 %v5370_v18, %v2372_v42  ;;  %v5938_v18 = vld [vmem:[#allocation54_spill] sm:$0xff] }
 0x2c8   :  { %3077 = vst.msk [vmem:[%s5630_s3 + $0x138] sm:$0xff] %vm376_vm4, %v2383_v63  ;;  %v5939_v23 = vmax.f32 %v5938_v18, 0.0 }
 0x2c9   :  { %3076 = vst [vmem:[%s5630_s3 + $0x130] sm:$0xff] %v2382_v3 }
 0x2ca   :  { %v2638_v55 = vmax.f32 %v5939_v23, %v5424_v10 }
 0x2cd   :  { %v2368_v5 = vpop.permute.xlu1 %2367 }
 0x2ce   :  { %v2373_v40 = vsel %vm359_vm3, %v2368_v5, %v2370_v15 }
 0x2cf   :  { %v2384_v22 = vmax.f32 %v5372_v11, %v2373_v40  ;;  %v5940_v11 = vld [vmem:[#allocation18_spill] sm:$0xff] }
 0x2d0   :  { %v5941_v10 = vmax.f32 %v5940_v11, 0.0 }
 0x2d1   :  { %3078 = vst [vmem:[%s5630_s3 + $0x140] sm:$0xf] %v2384_v22 }
 0x2d2   :  { %v2642_v13 = vmax.f32 %v5941_v10, %v5461_v20 }
 0x2d5   :  { %v2699_v24 = vpop.permute.xlu2 %2698 }
 0x2dd   :  { %v2695_v26 = vpop.permute.xlu0 %2694  ;;  %v2697_v4 = vpop.permute.xlu1 %2696 }
 0x2de   :  { %v2706_v45 = vsel %vm359_vm3, %v2695_v26, %v2697_v4  ;;  %v2716_v46 = vmax.f32 %v2638_v55, %v2697_v4 }
 0x2df   :  { %v2715_v37 = vmax.f32 %v5428_v43, %v2706_v45  ;;  %v5942_v43 = vld [vmem:[#allocation13_spill] sm:$0xff] }
 0x2e0   :  { %3129 = vst.msk [vmem:[%s5630_s3 + $0x158] sm:$0xff] %vm376_vm4, %v2716_v46  ;;  %v5943_v39 = vmax.f32 %v5942_v43, 0.0 }
 0x2e1   :  { %3128 = vst [vmem:[%s5630_s3 + $0x150] sm:$0xff] %v2715_v37 }
 0x2e2   :  { %v2640_v21 = vmax.f32 %v5943_v39, %v5453_v19 }
 0x2e5   :  { %v2705_v38 = vpop.permute.xlu2 %2704 }
 0x2e6   :  { %v2720_v48 = vmax.f32 %v2642_v13, %v2705_v38 }
 0x2e8   :  { %3133 = vst.msk [vmem:[%s5630_s3 + $0x178] sm:$0xf] %vm381_vm5, %v2720_v48 }
 0x2ed   :  { %v2701_v54 = vpop.permute.xlu0 %2700 }
 0x2ee   :  { %v2707_v47 = vsel %vm359_vm3, %v2699_v24, %v2701_v54  ;;  %v2718_v27 = vmax.f32 %v2640_v21, %v2701_v54 }
 0x2ef   :  { %v2717_v1 = vmax.f32 %v5457_v32, %v2707_v47 }
 0x2f0   :  { %3131 = vst.msk [vmem:[%s5630_s3 + $0x168] sm:$0xff] %vm376_vm4, %v2718_v27 }
 0x2f1   :  { %3130 = vst [vmem:[%s5630_s3 + $0x160] sm:$0xff] %v2717_v1 }
 0x2fd   :  { %v2703_v20 = vpop.permute.xlu1 %2702 }
 0x2fe   :  { %v2708_v41 = vsel %vm359_vm3, %v2703_v20, %v2705_v38 }
 0x2ff   :  { %v2719_v19 = vmax.f32 %v5467_v44, %v2708_v41 }
 0x301   :  { %3132 = vst [vmem:[%s5630_s3 + $0x170] sm:$0xf] %v2719_v19 }

</bundles_post_ra>
